<compile_context>
chip_gen: v5e
topology: v5e:2x2
jax: 0.10.0
libtpu: 0.0.40
codegen_flags: <defaults>
</compile_context>

<pallas_src>
import jax
import jax.numpy as jnp
from jax import lax
from jax.experimental import pallas as pl
from jax.experimental.pallas import tpu as pltpu

KSIZE = 7
PAD = (KSIZE - 1) // 2          # = 3
_CCHUNK = 8                     # channels folded per step of the static pooling sweep


# --------------------------------------------------------------------------------------
# In-kernel helpers
# --------------------------------------------------------------------------------------
def _channel_pool(x_ref, C):
    """Single fused sweep over C: returns (max, sum) over channels as (nb, HW) f32.

    Reads the block in small (nb, _CCHUNK, HW) chunks so the full (nb, C, HW) block
    is never held live across the conv (avoids vreg spills, per review)."""
    run_max = None
    run_sum = None
    for c0 in range(0, C, _CCHUNK):
        cc = min(_CCHUNK, C - c0)
        xc = x_ref[:, c0:c0 + cc, :].astype(jnp.float32)      # (nb, cc, HW)
        m = jnp.max(xc, axis=1)
        s = jnp.sum(xc, axis=1)
        run_max = m if run_max is None else jnp.maximum(run_max, m)
        run_sum = s if run_sum is None else run_sum + s
    return run_max, run_sum


def _gate_from_pool(ch_max, ch_mean, w_ref, bn_ref, H, W):
    """7x7 'same' conv over the 2-channel pooled map (flat HW layout) + folded
    inference BatchNorm + sigmoid.  Returns the gate as (nb, HW) f32.

    W % 128 == 0 : row (ki) taps are vreg-aligned slices of a row-zero-padded flat
                   map; only the 7 column (kj) shifts per channel cross lanes
                   (<= 14 lane-crossing ops total).
    otherwise    : small maps; keep the single-slice-per-tap scheme (98 slices of a
                   zero-padded flat map + per-kj column masks)."""
    nb, HW = ch_max.shape
    acc = jnp.zeros((nb, HW), jnp.float32)

    if W % 128 == 0:
        PW = PAD * W                                   # multiple of 128 -> aligned pads/slices
        Lp = HW + 2 * PW
        colp = lax.broadcasted_iota(jnp.int32, (1, Lp), 1) % W     # output column at each pos
        # column j of the output may only read columns j + dj inside [0, W)
        cmasks = [(colp >= -(kj - PAD)) & (colp < W - (kj - PAD)) for kj in range(KSIZE)]
        zp = jnp.zeros((nb, PW), jnp.float32)
        for c, pooled in enumerate((ch_max, ch_mean)):
            p = jnp.concatenate([zp, pooled, zp], axis=1)          # aligned concat (PW % 128 == 0)
            for kj in range(KSIZE):
                dj = kj - PAD
                # r[g] = p[g + dj] with zero fill: the single lane-crossing shift per (c, kj)
                if dj > 0:
                    r = jnp.concatenate(
                        [p[:, dj:], jnp.zeros((nb, dj), jnp.float32)], axis=1)
                elif dj < 0:
                    r = jnp.concatenate(
                        [jnp.zeros((nb, -dj), jnp.float32), p[:, :Lp + dj]], axis=1)
                else:
                    r = p
                r = jnp.where(cmasks[kj], r, 0.0)
                for ki in range(KSIZE):
                    wv = w_ref[c * KSIZE * KSIZE + ki * KSIZE + kj]
                    acc = acc + wv * r[:, ki * W: ki * W + HW]     # ki*W % 128 == 0 -> aligned
    else:
        L = PAD * (W + 1)       # zero pad so every flat tap slice is in bounds
        col = lax.broadcasted_iota(jnp.int32, (1, HW), 1) % W
        masks = [(col >= (PAD - kj)) & (col < (W + PAD - kj)) for kj in range(KSIZE)]
        zpad = jnp.zeros((nb, L), jnp.float32)
        for c, pooled in enumerate((ch_max, ch_mean)):
            p_pad = jnp.concatenate([zpad, pooled, zpad], axis=1)  # (nb, HW + 2L)
            for kj in range(KSIZE):
                part = jnp.zeros((nb, HW), jnp.float32)
                for ki in range(KSIZE):
                    wv = w_ref[c * KSIZE * KSIZE + ki * KSIZE + kj]
                    s = ki * W + kj
                    part = part + wv * p_pad[:, s:s + HW]
                acc = acc + jnp.where(masks[kj], part, 0.0)

    # Folded inference BatchNorm + sigmoid.
    return jax.nn.sigmoid(acc * bn_ref[0] + bn_ref[1])


# --------------------------------------------------------------------------------------
# Kernels
# --------------------------------------------------------------------------------------
def _make_fused_kernel(H, W, C):
    """Single-pass kernel: x is streamed exactly once (pool+conv+gate+multiply fused)."""
    def kernel(w_ref, bn_ref, x_ref, o_ref):
        # w_ref : (98,) SMEM   flattened conv weight (OIHW, O=1 squeezed)
        # bn_ref: (2,)  SMEM   [bn_scale, bn_shift]  (folded inference BatchNorm)
        # x_ref : (nb, C, HW)  VMEM lane-dense block
        ch_max, ch_sum = _channel_pool(x_ref, C)
        gate = _gate_from_pool(ch_max, ch_sum * (1.0 / C), w_ref, bn_ref, H, W)
        # Re-read x for the store (the block was not held live across the conv);
        # gate is cast to the input dtype so no f32 copy of the big block is made.
        o_ref[...] = x_ref[...] * gate[:, None, :].astype(o_ref.dtype)
    return kernel


def _make_pool_gate_kernel(H, W, C, CB):
    """Two-pass fallback, pass 1: C-tiled channel pool -> conv -> BN -> sigmoid."""
    need_mask = (C % CB) != 0

    def kernel(w_ref, bn_ref, x_ref, gate_ref, max_ref, sum_ref):
        cblk = pl.program_id(1)

        @pl.when(cblk == 0)
        def _():
            max_ref[...] = jnp.full(max_ref.shape, -jnp.inf, max_ref.dtype)
            sum_ref[...] = jnp.zeros(sum_ref.shape, sum_ref.dtype)

        run_max = max_ref[...]
        run_sum = sum_ref[...]
        c_base = cblk * CB
        for c0 in range(0, CB, _CCHUNK):
            cc = min(_CCHUNK, CB - c0)
            xc = x_ref[:, c0:c0 + cc, :].astype(jnp.float32)
            if need_mask:   # last C block may be ragged (padded rows are undefined)
                cidx = c_base + c0 + lax.broadcasted_iota(jnp.int32, (1, cc, 1), 1)
                valid = cidx < C
                xm = jnp.where(valid, xc, -jnp.inf)
                xs = jnp.where(valid, xc, 0.0)
            else:
                xm = xs = xc
            run_max = jnp.maximum(run_max, jnp.max(xm, axis=1))
            run_sum = run_sum + jnp.sum(xs, axis=1)
        max_ref[...] = run_max
        sum_ref[...] = run_sum

        @pl.when(cblk == pl.num_programs(1) - 1)
        def _():
            gate = _gate_from_pool(max_ref[...], sum_ref[...] * (1.0 / C),
                                   w_ref, bn_ref, H, W)
            gate_ref[...] = gate[:, None, :]

    return kernel


def _apply_gate_kernel(x_ref, gate_ref, o_ref):
    """Two-pass fallback, pass 2: lane-dense broadcast multiply."""
    o_ref[...] = x_ref[...] * gate_ref[...].astype(o_ref.dtype)


# --------------------------------------------------------------------------------------
# Wrapper
# --------------------------------------------------------------------------------------
def spatial_gate(x, conv_w, bn_scale, bn_shift, *,
                 block_bytes=None, vmem_limit_bytes=None, two_pass=None):
    """x: (N, C, H, W); conv_w: (1, 2, 7, 7); folded inference BatchNorm params."""
    N, C, H, W = x.shape
    assert conv_w.shape == (1, 2, KSIZE, KSIZE)
    assert W >= PAD, "flat-pad/column-mask 7x7 conv scheme assumes W >= 3"
    HW = H * W
    itemsize = jnp.dtype(x.dtype).itemsize

    w_flat = conv_w.reshape(-1).astype(jnp.float32)               # (98,)
    bn = jnp.asarray([bn_scale, bn_shift], dtype=jnp.float32)     # (2,)
    x_flat = x.reshape(N, C, HW)                                  # lane-dense: last dim = H*W

    # ---- VMEM / block budgets (generation-aware; conservative on v7x's 64 MiB VMEM) ----
    if vmem_limit_bytes is None:
        try:
            cap = int(pltpu.get_tpu_info().vmem_capacity_bytes)
            vmem_limit_bytes = max(32 * 1024 * 1024,
                                   min(64 * 1024 * 1024, (cap * 3) // 4))
        except Exception:
            vmem_limit_bytes = 48 * 1024 * 1024                   # safe on every generation
    if block_bytes is None:
        block_bytes = vmem_limit_bytes // 8   # 4x (double-buffered in+out) = half the limit

    budget = (vmem_limit_bytes * 17) // 20    # 85%: headroom for compiler scratch
    per_elem = C * HW * itemsize              # one batch element (input OR output)
    # VMEM per batch element in the fused kernel: double-buffered in + out blocks
    # plus ~16 f32 HW-sized pooling/conv temporaries.
    per_elem_vmem = 4 * per_elem + 16 * HW * 4

    if two_pass is None:
        two_pass = per_elem_vmem > budget     # single element does not fit -> C-tiled fallback

    def cparams(dims):
        return pltpu.CompilerParams(dimension_semantics=dims,
                                    vmem_limit_bytes=vmem_limit_bytes)

    if not two_pass:
        # -------- fused single-pass kernel (x read exactly once from HBM) --------
        nb = max(1, min(N, block_bytes // max(1, per_elem),
                        max(1, budget // per_elem_vmem)))
        nb = min(nb, max(1, N // 4))  # >= 2 grid steps when N >= 2 (v7x has 2 TCs;
                                      # also keeps the DMA/compute pipeline alive).
        out_flat = pl.pallas_call(
            _make_fused_kernel(H, W, C),
            out_shape=jax.ShapeDtypeStruct((N, C, HW), x.dtype),
            grid=(pl.cdiv(N, nb),),                               # ragged last block is fine
            in_specs=[
                pl.BlockSpec(memory_space=pltpu.MemorySpace.SMEM),  # conv weights
                pl.BlockSpec(memory_space=pltpu.MemorySpace.SMEM),  # folded BN params
                pl.BlockSpec((nb, C, HW), lambda n: (n, 0, 0)),
            ],
            out_specs=pl.BlockSpec((nb, C, HW), lambda n: (n, 0, 0)),
            compiler_params=cparams(("parallel",)),
        )(w_flat, bn, x_flat)
        return out_flat.reshape(N, C, H, W)

    # -------- two-pass fallback: C-tiled (large feature maps, e.g. v7x 64 MiB VMEM) --------
    sub = {1: 32, 2: 16, 4: 8}.get(itemsize, 8)   # second-minor tile for the dtype
    ch_bytes = HW * itemsize

    def pick_cb(extra_f32_rows):
        avail = max(budget - extra_f32_rows * HW * 4, 4 * sub * ch_bytes)
        cb = (avail // (4 * ch_bytes)) // sub * sub
        cb = max(sub, cb)
        return C if cb >= C else cb

    # pass 1: channel pool (tiled over C) -> 7x7 conv -> BN -> sigmoid => gate (N, 1, HW) f32
    cb1 = pick_cb(2 + 16)    # running max/sum scratch + conv temporaries
    gate = pl.pallas_call(
        _make_pool_gate_kernel(H, W, C, cb1),
        out_shape=jax.ShapeDtypeStruct((N, 1, HW), jnp.float32),
        grid=(N, pl.cdiv(C, cb1)),
        in_specs=[
            pl.BlockSpec(memory_space=pltpu.MemorySpace.SMEM),
            pl.BlockSpec(memory_space=pltpu.MemorySpace.SMEM),
            pl.BlockSpec((1, cb1, HW), lambda n, c: (n, c, 0)),
        ],
        out_specs=pl.BlockSpec((1, 1, HW), lambda n, c: (n, 0, 0)),
        scratch_shapes=[pltpu.VMEM((1, HW), jnp.float32),      # running max
                        pltpu.VMEM((1, HW), jnp.float32)],     # running sum
        compiler_params=cparams(("parallel", "arbitrary")),
    )(w_flat, bn, x_flat)

    # pass 2: lane-dense broadcast multiply, tiled over (N, C)
    cb2 = pick_cb(2)
    out_flat = pl.pallas_call(
        _apply_gate_kernel,
        out_shape=jax.ShapeDtypeStruct((N, C, HW), x.dtype),
        grid=(N, pl.cdiv(C, cb2)),
        in_specs=[
            pl.BlockSpec((1, cb2, HW), lambda n, c: (n, c, 0)),
            pl.BlockSpec((1, 1, HW), lambda n, c: (n, 0, 0)),
        ],
        out_specs=pl.BlockSpec((1, cb2, HW), lambda n, c: (n, c, 0)),
        compiler_params=cparams(("parallel", "parallel")),
    )(x_flat, gate)
    return out_flat.reshape(N, C, H, W)


# --------------------------------------------------------------------------------------
# Reference + test
# --------------------------------------------------------------------------------------
def reference_spatial_gate(x, conv_w, bn_scale, bn_shift):
    xf = x.astype(jnp.float32)
    pooled = jnp.stack([jnp.max(xf, axis=1), jnp.mean(xf, axis=1)], axis=1)  # (N,2,H,W)
    y = lax.conv_general_dilated(
        pooled, conv_w, window_strides=(1, 1),
        padding=[(PAD, PAD), (PAD, PAD)],
        dimension_numbers=("NCHW", "OIHW", "NCHW"))
    y = y * bn_scale + bn_shift
    return (xf * jax.nn.sigmoid(y)).astype(x.dtype)


if __name__ == "__main__":
    key = jax.random.PRNGKey(0)
    kx1, kx2, kw = jax.random.split(key, 3)

    # Deterministic conv weight (nn.Conv2d(2, 1, 7, bias=False) -> (1,2,7,7)).
    conv_w = (jax.random.normal(kw, (1, 2, KSIZE, KSIZE), dtype=jnp.float32)
              * (1.0 / (2 * KSIZE * KSIZE)))

    # BatchNorm2d(1) default params, inference mode: gamma=1, beta=0, mean=0, var=1.
    eps = 1e-5
    gamma, beta, run_mean, run_var = 1.0, 0.0, 0.0, 1.0
    bn_scale = float(gamma / (run_var + eps) ** 0.5)
    bn_shift = float(beta - run_mean * bn_scale)

    # 1) small W (lane-misaligned conv path), fused single-pass kernel
    x1 = jax.random.normal(kx1, (2, 4, 16, 16), dtype=jnp.float32)
    # 2) W multiple of 128 (aligned conv path, <= 14 lane-crossing shifts), fused kernel
    x2 = jax.random.normal(kx2, (2, 4, 8, 128), dtype=jnp.float32)

    for xin in (x1, x2):
        out = jax.block_until_ready(spatial_gate(xin, conv_w, bn_scale, bn_shift))
        ref = reference_spatial_gate(xin, conv_w, bn_scale, bn_shift)
        assert out.shape == xin.shape
        assert jnp.allclose(out, ref, atol=1e-5, rtol=1e-5), "fused kernel mismatch"

    # 3) two-pass C-tiled fallback path (forced), checked on the small config
    out = jax.block_until_ready(
        spatial_gate(x1, conv_w, bn_scale, bn_shift, two_pass=True))
    ref = reference_spatial_gate(x1, conv_w, bn_scale, bn_shift)
    assert jnp.allclose(out, ref, atol=1e-5, rtol=1e-5), "two-pass kernel mismatch"

    print("KERNEL_OK")
</pallas_src>

<mosaic_0001>
module attributes {stable_mosaic.version = 11 : i64} {
  func.func @kernel(%arg0: i32, %arg1: memref<98xf32, #tpu.memory_space<smem>>, %arg2: memref<2xf32, #tpu.memory_space<smem>>, %arg3: memref<1x4x256xf32, #tpu.memory_space<vmem>>, %arg4: memref<1x4x256xf32, #tpu.memory_space<vmem>>) attributes {dimension_semantics = [#tpu.dimension_semantics<parallel>], iteration_bounds = array<i64: 2>, scalar_prefetch = 0 : i64, scratch_operands = 0 : i64, tpu.core_type = #tpu.core_type<tc>, window_params = [{transform_indices = @transform_0, window_bounds = array<i64: 98>}, {transform_indices = @transform_1, window_bounds = array<i64: 2>}, {transform_indices = @transform_2, window_bounds = array<i64: 1, 4, 256>}, {transform_indices = @transform_3, window_bounds = array<i64: 1, 4, 256>}]} {
    %c0 = arith.constant 0 : index
    %c0_0 = arith.constant 0 : index
    %c0_1 = arith.constant 0 : index
    %0 = vector.load %arg3[%c0, %c0_0, %c0_1] : memref<1x4x256xf32, #tpu.memory_space<vmem>>, vector<1x4x256xf32>
    %cst = arith.constant dense<0xFF800000> : vector<1x256xf32>
    %1 = vector.multi_reduction <maximumf>, %0, %cst [1] : vector<1x4x256xf32> to vector<1x256xf32>
    %cst_2 = arith.constant dense<0.000000e+00> : vector<1x256xf32>
    %2 = vector.multi_reduction <add>, %0, %cst_2 [1] : vector<1x4x256xf32> to vector<1x256xf32>
    %cst_3 = arith.constant 2.500000e-01 : f32
    %3 = vector.broadcast %cst_3 : f32 to vector<1x256xf32>
    %4 = arith.mulf %2, %3 : vector<1x256xf32>
    %cst_4 = arith.constant 0.000000e+00 : f32
    %5 = vector.broadcast %cst_4 : f32 to vector<1x256xf32>
    %6 = tpu.iota {dimensions = array<i32: 1>} : vector<1x256xi32>
    %c16_i32 = arith.constant 16 : i32
    %c0_i32 = arith.constant 0 : i32
    %7 = arith.cmpi eq, %c16_i32, %c0_i32 : i32
    %c1_i32 = arith.constant 1 : i32
    %8 = arith.select %7, %c1_i32, %c16_i32 : i32
    %9 = vector.broadcast %8 : i32 to vector<1x256xi32>
    %10 = arith.remsi %6, %9 : vector<1x256xi32>
    %c0_i32_5 = arith.constant 0 : i32
    %11 = vector.broadcast %c0_i32_5 : i32 to vector<1x256xi32>
    %12 = arith.cmpi ne, %10, %11 : vector<1x256xi32>
    %c0_i32_6 = arith.constant 0 : i32
    %13 = vector.broadcast %c0_i32_6 : i32 to vector<1x256xi32>
    %14 = arith.cmpi slt, %10, %13 : vector<1x256xi32>
    %c0_i32_7 = arith.constant 0 : i32
    %15 = arith.cmpi slt, %8, %c0_i32_7 : i32
    %16 = vector.broadcast %15 : i1 to vector<1x256xi1>
    %17 = vector.broadcast %16 : vector<1x256xi1> to vector<1x256xi1>
    %18 = arith.xori %14, %17 : vector<1x256xi1>
    %19 = arith.andi %18, %12 : vector<1x256xi1>
    %20 = vector.broadcast %8 : i32 to vector<1x256xi32>
    %21 = arith.addi %10, %20 : vector<1x256xi32>
    %22 = arith.select %19, %21, %10 : vector<1x256xi1>, vector<1x256xi32>
    %c3_i32 = arith.constant 3 : i32
    %23 = vector.broadcast %c3_i32 : i32 to vector<1x256xi32>
    %24 = arith.cmpi sge, %22, %23 : vector<1x256xi32>
    %c19_i32 = arith.constant 19 : i32
    %25 = vector.broadcast %c19_i32 : i32 to vector<1x256xi32>
    %26 = arith.cmpi slt, %22, %25 : vector<1x256xi32>
    %27 = arith.andi %24, %26 : vector<1x256xi1>
    %c2_i32 = arith.constant 2 : i32
    %28 = vector.broadcast %c2_i32 : i32 to vector<1x256xi32>
    %29 = arith.cmpi sge, %22, %28 : vector<1x256xi32>
    %c18_i32 = arith.constant 18 : i32
    %30 = vector.broadcast %c18_i32 : i32 to vector<1x256xi32>
    %31 = arith.cmpi slt, %22, %30 : vector<1x256xi32>
    %32 = arith.andi %29, %31 : vector<1x256xi1>
    %c1_i32_8 = arith.constant 1 : i32
    %33 = vector.broadcast %c1_i32_8 : i32 to vector<1x256xi32>
    %34 = arith.cmpi sge, %22, %33 : vector<1x256xi32>
    %c17_i32 = arith.constant 17 : i32
    %35 = vector.broadcast %c17_i32 : i32 to vector<1x256xi32>
    %36 = arith.cmpi slt, %22, %35 : vector<1x256xi32>
    %37 = arith.andi %34, %36 : vector<1x256xi1>
    %c0_i32_9 = arith.constant 0 : i32
    %38 = vector.broadcast %c0_i32_9 : i32 to vector<1x256xi32>
    %39 = arith.cmpi sge, %22, %38 : vector<1x256xi32>
    %c16_i32_10 = arith.constant 16 : i32
    %40 = vector.broadcast %c16_i32_10 : i32 to vector<1x256xi32>
    %41 = arith.cmpi slt, %22, %40 : vector<1x256xi32>
    %42 = arith.andi %39, %41 : vector<1x256xi1>
    %c-1_i32 = arith.constant -1 : i32
    %43 = vector.broadcast %c-1_i32 : i32 to vector<1x256xi32>
    %44 = arith.cmpi sge, %22, %43 : vector<1x256xi32>
    %c15_i32 = arith.constant 15 : i32
    %45 = vector.broadcast %c15_i32 : i32 to vector<1x256xi32>
    %46 = arith.cmpi slt, %22, %45 : vector<1x256xi32>
    %47 = arith.andi %44, %46 : vector<1x256xi1>
    %c-2_i32 = arith.constant -2 : i32
    %48 = vector.broadcast %c-2_i32 : i32 to vector<1x256xi32>
    %49 = arith.cmpi sge, %22, %48 : vector<1x256xi32>
    %c14_i32 = arith.constant 14 : i32
    %50 = vector.broadcast %c14_i32 : i32 to vector<1x256xi32>
    %51 = arith.cmpi slt, %22, %50 : vector<1x256xi32>
    %52 = arith.andi %49, %51 : vector<1x256xi1>
    %c-3_i32 = arith.constant -3 : i32
    %53 = vector.broadcast %c-3_i32 : i32 to vector<1x256xi32>
    %54 = arith.cmpi sge, %22, %53 : vector<1x256xi32>
    %c13_i32 = arith.constant 13 : i32
    %55 = vector.broadcast %c13_i32 : i32 to vector<1x256xi32>
    %56 = arith.cmpi slt, %22, %55 : vector<1x256xi32>
    %57 = arith.andi %54, %56 : vector<1x256xi1>
    %cst_11 = arith.constant 0.000000e+00 : f32
    %58 = vector.broadcast %cst_11 : f32 to vector<1x51xf32>
    %59 = tpu.concatenate %58, %1, %58 in 1 : vector<1x51xf32>, vector<1x256xf32>, vector<1x51xf32> -> vector<1x358xf32>
    %cst_12 = arith.constant 0.000000e+00 : f32
    %60 = vector.broadcast %cst_12 : f32 to vector<1x256xf32>
    %c0_13 = arith.constant 0 : index
    %61 = memref.load %arg1[%c0_13] : memref<98xf32, #tpu.memory_space<smem>>
    %62 = vector.extract_strided_slice %59 {offsets = [0, 0], sizes = [1, 256], strides = [1, 1]} : vector<1x358xf32> to vector<1x256xf32>
    %63 = vector.broadcast %61 : f32 to vector<1x256xf32>
    %64 = arith.mulf %63, %62 : vector<1x256xf32>
    %65 = arith.addf %60, %64 : vector<1x256xf32>
    %c7 = arith.constant 7 : index
    %66 = memref.load %arg1[%c7] : memref<98xf32, #tpu.memory_space<smem>>
    %67 = vector.extract_strided_slice %59 {offsets = [0, 16], sizes = [1, 256], strides = [1, 1]} : vector<1x358xf32> to vector<1x256xf32>
    %68 = vector.broadcast %66 : f32 to vector<1x256xf32>
    %69 = arith.mulf %68, %67 : vector<1x256xf32>
    %70 = arith.addf %65, %69 : vector<1x256xf32>
    %c14 = arith.constant 14 : index
    %71 = memref.load %arg1[%c14] : memref<98xf32, #tpu.memory_space<smem>>
    %72 = vector.extract_strided_slice %59 {offsets = [0, 32], sizes = [1, 256], strides = [1, 1]} : vector<1x358xf32> to vector<1x256xf32>
    %73 = vector.broadcast %71 : f32 to vector<1x256xf32>
    %74 = arith.mulf %73, %72 : vector<1x256xf32>
    %75 = arith.addf %70, %74 : vector<1x256xf32>
    %c21 = arith.constant 21 : index
    %76 = memref.load %arg1[%c21] : memref<98xf32, #tpu.memory_space<smem>>
    %77 = vector.extract_strided_slice %59 {offsets = [0, 48], sizes = [1, 256], strides = [1, 1]} : vector<1x358xf32> to vector<1x256xf32>
    %78 = vector.broadcast %76 : f32 to vector<1x256xf32>
    %79 = arith.mulf %78, %77 : vector<1x256xf32>
    %80 = arith.addf %75, %79 : vector<1x256xf32>
    %c28 = arith.constant 28 : index
    %81 = memref.load %arg1[%c28] : memref<98xf32, #tpu.memory_space<smem>>
    %82 = vector.extract_strided_slice %59 {offsets = [0, 64], sizes = [1, 256], strides = [1, 1]} : vector<1x358xf32> to vector<1x256xf32>
    %83 = vector.broadcast %81 : f32 to vector<1x256xf32>
    %84 = arith.mulf %83, %82 : vector<1x256xf32>
    %85 = arith.addf %80, %84 : vector<1x256xf32>
    %c35 = arith.constant 35 : index
    %86 = memref.load %arg1[%c35] : memref<98xf32, #tpu.memory_space<smem>>
    %87 = vector.extract_strided_slice %59 {offsets = [0, 80], sizes = [1, 256], strides = [1, 1]} : vector<1x358xf32> to vector<1x256xf32>
    %88 = vector.broadcast %86 : f32 to vector<1x256xf32>
    %89 = arith.mulf %88, %87 : vector<1x256xf32>
    %90 = arith.addf %85, %89 : vector<1x256xf32>
    %c42 = arith.constant 42 : index
    %91 = memref.load %arg1[%c42] : memref<98xf32, #tpu.memory_space<smem>>
    %92 = vector.extract_strided_slice %59 {offsets = [0, 96], sizes = [1, 256], strides = [1, 1]} : vector<1x358xf32> to vector<1x256xf32>
    %93 = vector.broadcast %91 : f32 to vector<1x256xf32>
    %94 = arith.mulf %93, %92 : vector<1x256xf32>
    %95 = arith.addf %90, %94 : vector<1x256xf32>
    %cst_14 = arith.constant 0.000000e+00 : f32
    %96 = vector.broadcast %cst_14 : f32 to vector<1x256xf32>
    %97 = arith.select %27, %95, %96 : vector<1x256xi1>, vector<1x256xf32>
    %98 = arith.addf %5, %97 : vector<1x256xf32>
    %cst_15 = arith.constant 0.000000e+00 : f32
    %99 = vector.broadcast %cst_15 : f32 to vector<1x256xf32>
    %c1 = arith.constant 1 : index
    %100 = memref.load %arg1[%c1] : memref<98xf32, #tpu.memory_space<smem>>
    %101 = vector.extract_strided_slice %59 {offsets = [0, 1], sizes = [1, 256], strides = [1, 1]} : vector<1x358xf32> to vector<1x256xf32>
    %102 = vector.broadcast %100 : f32 to vector<1x256xf32>
    %103 = arith.mulf %102, %101 : vector<1x256xf32>
    %104 = arith.addf %99, %103 : vector<1x256xf32>
    %c8 = arith.constant 8 : index
    %105 = memref.load %arg1[%c8] : memref<98xf32, #tpu.memory_space<smem>>
    %106 = vector.extract_strided_slice %59 {offsets = [0, 17], sizes = [1, 256], strides = [1, 1]} : vector<1x358xf32> to vector<1x256xf32>
    %107 = vector.broadcast %105 : f32 to vector<1x256xf32>
    %108 = arith.mulf %107, %106 : vector<1x256xf32>
    %109 = arith.addf %104, %108 : vector<1x256xf32>
    %c15 = arith.constant 15 : index
    %110 = memref.load %arg1[%c15] : memref<98xf32, #tpu.memory_space<smem>>
    %111 = vector.extract_strided_slice %59 {offsets = [0, 33], sizes = [1, 256], strides = [1, 1]} : vector<1x358xf32> to vector<1x256xf32>
    %112 = vector.broadcast %110 : f32 to vector<1x256xf32>
    %113 = arith.mulf %112, %111 : vector<1x256xf32>
    %114 = arith.addf %109, %113 : vector<1x256xf32>
    %c22 = arith.constant 22 : index
    %115 = memref.load %arg1[%c22] : memref<98xf32, #tpu.memory_space<smem>>
    %116 = vector.extract_strided_slice %59 {offsets = [0, 49], sizes = [1, 256], strides = [1, 1]} : vector<1x358xf32> to vector<1x256xf32>
    %117 = vector.broadcast %115 : f32 to vector<1x256xf32>
    %118 = arith.mulf %117, %116 : vector<1x256xf32>
    %119 = arith.addf %114, %118 : vector<1x256xf32>
    %c29 = arith.constant 29 : index
    %120 = memref.load %arg1[%c29] : memref<98xf32, #tpu.memory_space<smem>>
    %121 = vector.extract_strided_slice %59 {offsets = [0, 65], sizes = [1, 256], strides = [1, 1]} : vector<1x358xf32> to vector<1x256xf32>
    %122 = vector.broadcast %120 : f32 to vector<1x256xf32>
    %123 = arith.mulf %122, %121 : vector<1x256xf32>
    %124 = arith.addf %119, %123 : vector<1x256xf32>
    %c36 = arith.constant 36 : index
    %125 = memref.load %arg1[%c36] : memref<98xf32, #tpu.memory_space<smem>>
    %126 = vector.extract_strided_slice %59 {offsets = [0, 81], sizes = [1, 256], strides = [1, 1]} : vector<1x358xf32> to vector<1x256xf32>
    %127 = vector.broadcast %125 : f32 to vector<1x256xf32>
    %128 = arith.mulf %127, %126 : vector<1x256xf32>
    %129 = arith.addf %124, %128 : vector<1x256xf32>
    %c43 = arith.constant 43 : index
    %130 = memref.load %arg1[%c43] : memref<98xf32, #tpu.memory_space<smem>>
    %131 = vector.extract_strided_slice %59 {offsets = [0, 97], sizes = [1, 256], strides = [1, 1]} : vector<1x358xf32> to vector<1x256xf32>
    %132 = vector.broadcast %130 : f32 to vector<1x256xf32>
    %133 = arith.mulf %132, %131 : vector<1x256xf32>
    %134 = arith.addf %129, %133 : vector<1x256xf32>
    %cst_16 = arith.constant 0.000000e+00 : f32
    %135 = vector.broadcast %cst_16 : f32 to vector<1x256xf32>
    %136 = arith.select %32, %134, %135 : vector<1x256xi1>, vector<1x256xf32>
    %137 = arith.addf %98, %136 : vector<1x256xf32>
    %cst_17 = arith.constant 0.000000e+00 : f32
    %138 = vector.broadcast %cst_17 : f32 to vector<1x256xf32>
    %c2 = arith.constant 2 : index
    %139 = memref.load %arg1[%c2] : memref<98xf32, #tpu.memory_space<smem>>
    %140 = vector.extract_strided_slice %59 {offsets = [0, 2], sizes = [1, 256], strides = [1, 1]} : vector<1x358xf32> to vector<1x256xf32>
    %141 = vector.broadcast %139 : f32 to vector<1x256xf32>
    %142 = arith.mulf %141, %140 : vector<1x256xf32>
    %143 = arith.addf %138, %142 : vector<1x256xf32>
    %c9 = arith.constant 9 : index
    %144 = memref.load %arg1[%c9] : memref<98xf32, #tpu.memory_space<smem>>
    %145 = vector.extract_strided_slice %59 {offsets = [0, 18], sizes = [1, 256], strides = [1, 1]} : vector<1x358xf32> to vector<1x256xf32>
    %146 = vector.broadcast %144 : f32 to vector<1x256xf32>
    %147 = arith.mulf %146, %145 : vector<1x256xf32>
    %148 = arith.addf %143, %147 : vector<1x256xf32>
    %c16 = arith.constant 16 : index
    %149 = memref.load %arg1[%c16] : memref<98xf32, #tpu.memory_space<smem>>
    %150 = vector.extract_strided_slice %59 {offsets = [0, 34], sizes = [1, 256], strides = [1, 1]} : vector<1x358xf32> to vector<1x256xf32>
    %151 = vector.broadcast %149 : f32 to vector<1x256xf32>
    %152 = arith.mulf %151, %150 : vector<1x256xf32>
    %153 = arith.addf %148, %152 : vector<1x256xf32>
    %c23 = arith.constant 23 : index
    %154 = memref.load %arg1[%c23] : memref<98xf32, #tpu.memory_space<smem>>
    %155 = vector.extract_strided_slice %59 {offsets = [0, 50], sizes = [1, 256], strides = [1, 1]} : vector<1x358xf32> to vector<1x256xf32>
    %156 = vector.broadcast %154 : f32 to vector<1x256xf32>
    %157 = arith.mulf %156, %155 : vector<1x256xf32>
    %158 = arith.addf %153, %157 : vector<1x256xf32>
    %c30 = arith.constant 30 : index
    %159 = memref.load %arg1[%c30] : memref<98xf32, #tpu.memory_space<smem>>
    %160 = vector.extract_strided_slice %59 {offsets = [0, 66], sizes = [1, 256], strides = [1, 1]} : vector<1x358xf32> to vector<1x256xf32>
    %161 = vector.broadcast %159 : f32 to vector<1x256xf32>
    %162 = arith.mulf %161, %160 : vector<1x256xf32>
    %163 = arith.addf %158, %162 : vector<1x256xf32>
    %c37 = arith.constant 37 : index
    %164 = memref.load %arg1[%c37] : memref<98xf32, #tpu.memory_space<smem>>
    %165 = vector.extract_strided_slice %59 {offsets = [0, 82], sizes = [1, 256], strides = [1, 1]} : vector<1x358xf32> to vector<1x256xf32>
    %166 = vector.broadcast %164 : f32 to vector<1x256xf32>
    %167 = arith.mulf %166, %165 : vector<1x256xf32>
    %168 = arith.addf %163, %167 : vector<1x256xf32>
    %c44 = arith.constant 44 : index
    %169 = memref.load %arg1[%c44] : memref<98xf32, #tpu.memory_space<smem>>
    %170 = vector.extract_strided_slice %59 {offsets = [0, 98], sizes = [1, 256], strides = [1, 1]} : vector<1x358xf32> to vector<1x256xf32>
    %171 = vector.broadcast %169 : f32 to vector<1x256xf32>
    %172 = arith.mulf %171, %170 : vector<1x256xf32>
    %173 = arith.addf %168, %172 : vector<1x256xf32>
    %cst_18 = arith.constant 0.000000e+00 : f32
    %174 = vector.broadcast %cst_18 : f32 to vector<1x256xf32>
    %175 = arith.select %37, %173, %174 : vector<1x256xi1>, vector<1x256xf32>
    %176 = arith.addf %137, %175 : vector<1x256xf32>
    %cst_19 = arith.constant 0.000000e+00 : f32
    %177 = vector.broadcast %cst_19 : f32 to vector<1x256xf32>
    %c3 = arith.constant 3 : index
    %178 = memref.load %arg1[%c3] : memref<98xf32, #tpu.memory_space<smem>>
    %179 = vector.extract_strided_slice %59 {offsets = [0, 3], sizes = [1, 256], strides = [1, 1]} : vector<1x358xf32> to vector<1x256xf32>
    %180 = vector.broadcast %178 : f32 to vector<1x256xf32>
    %181 = arith.mulf %180, %179 : vector<1x256xf32>
    %182 = arith.addf %177, %181 : vector<1x256xf32>
    %c10 = arith.constant 10 : index
    %183 = memref.load %arg1[%c10] : memref<98xf32, #tpu.memory_space<smem>>
    %184 = vector.extract_strided_slice %59 {offsets = [0, 19], sizes = [1, 256], strides = [1, 1]} : vector<1x358xf32> to vector<1x256xf32>
    %185 = vector.broadcast %183 : f32 to vector<1x256xf32>
    %186 = arith.mulf %185, %184 : vector<1x256xf32>
    %187 = arith.addf %182, %186 : vector<1x256xf32>
    %c17 = arith.constant 17 : index
    %188 = memref.load %arg1[%c17] : memref<98xf32, #tpu.memory_space<smem>>
    %189 = vector.extract_strided_slice %59 {offsets = [0, 35], sizes = [1, 256], strides = [1, 1]} : vector<1x358xf32> to vector<1x256xf32>
    %190 = vector.broadcast %188 : f32 to vector<1x256xf32>
    %191 = arith.mulf %190, %189 : vector<1x256xf32>
    %192 = arith.addf %187, %191 : vector<1x256xf32>
    %c24 = arith.constant 24 : index
    %193 = memref.load %arg1[%c24] : memref<98xf32, #tpu.memory_space<smem>>
    %194 = vector.extract_strided_slice %59 {offsets = [0, 51], sizes = [1, 256], strides = [1, 1]} : vector<1x358xf32> to vector<1x256xf32>
    %195 = vector.broadcast %193 : f32 to vector<1x256xf32>
    %196 = arith.mulf %195, %194 : vector<1x256xf32>
    %197 = arith.addf %192, %196 : vector<1x256xf32>
    %c31 = arith.constant 31 : index
    %198 = memref.load %arg1[%c31] : memref<98xf32, #tpu.memory_space<smem>>
    %199 = vector.extract_strided_slice %59 {offsets = [0, 67], sizes = [1, 256], strides = [1, 1]} : vector<1x358xf32> to vector<1x256xf32>
    %200 = vector.broadcast %198 : f32 to vector<1x256xf32>
    %201 = arith.mulf %200, %199 : vector<1x256xf32>
    %202 = arith.addf %197, %201 : vector<1x256xf32>
    %c38 = arith.constant 38 : index
    %203 = memref.load %arg1[%c38] : memref<98xf32, #tpu.memory_space<smem>>
    %204 = vector.extract_strided_slice %59 {offsets = [0, 83], sizes = [1, 256], strides = [1, 1]} : vector<1x358xf32> to vector<1x256xf32>
    %205 = vector.broadcast %203 : f32 to vector<1x256xf32>
    %206 = arith.mulf %205, %204 : vector<1x256xf32>
    %207 = arith.addf %202, %206 : vector<1x256xf32>
    %c45 = arith.constant 45 : index
    %208 = memref.load %arg1[%c45] : memref<98xf32, #tpu.memory_space<smem>>
    %209 = vector.extract_strided_slice %59 {offsets = [0, 99], sizes = [1, 256], strides = [1, 1]} : vector<1x358xf32> to vector<1x256xf32>
    %210 = vector.broadcast %208 : f32 to vector<1x256xf32>
    %211 = arith.mulf %210, %209 : vector<1x256xf32>
    %212 = arith.addf %207, %211 : vector<1x256xf32>
    %cst_20 = arith.constant 0.000000e+00 : f32
    %213 = vector.broadcast %cst_20 : f32 to vector<1x256xf32>
    %214 = arith.select %42, %212, %213 : vector<1x256xi1>, vector<1x256xf32>
    %215 = arith.addf %176, %214 : vector<1x256xf32>
    %cst_21 = arith.constant 0.000000e+00 : f32
    %216 = vector.broadcast %cst_21 : f32 to vector<1x256xf32>
    %c4 = arith.constant 4 : index
    %217 = memref.load %arg1[%c4] : memref<98xf32, #tpu.memory_space<smem>>
    %218 = vector.extract_strided_slice %59 {offsets = [0, 4], sizes = [1, 256], strides = [1, 1]} : vector<1x358xf32> to vector<1x256xf32>
    %219 = vector.broadcast %217 : f32 to vector<1x256xf32>
    %220 = arith.mulf %219, %218 : vector<1x256xf32>
    %221 = arith.addf %216, %220 : vector<1x256xf32>
    %c11 = arith.constant 11 : index
    %222 = memref.load %arg1[%c11] : memref<98xf32, #tpu.memory_space<smem>>
    %223 = vector.extract_strided_slice %59 {offsets = [0, 20], sizes = [1, 256], strides = [1, 1]} : vector<1x358xf32> to vector<1x256xf32>
    %224 = vector.broadcast %222 : f32 to vector<1x256xf32>
    %225 = arith.mulf %224, %223 : vector<1x256xf32>
    %226 = arith.addf %221, %225 : vector<1x256xf32>
    %c18 = arith.constant 18 : index
    %227 = memref.load %arg1[%c18] : memref<98xf32, #tpu.memory_space<smem>>
    %228 = vector.extract_strided_slice %59 {offsets = [0, 36], sizes = [1, 256], strides = [1, 1]} : vector<1x358xf32> to vector<1x256xf32>
    %229 = vector.broadcast %227 : f32 to vector<1x256xf32>
    %230 = arith.mulf %229, %228 : vector<1x256xf32>
    %231 = arith.addf %226, %230 : vector<1x256xf32>
    %c25 = arith.constant 25 : index
    %232 = memref.load %arg1[%c25] : memref<98xf32, #tpu.memory_space<smem>>
    %233 = vector.extract_strided_slice %59 {offsets = [0, 52], sizes = [1, 256], strides = [1, 1]} : vector<1x358xf32> to vector<1x256xf32>
    %234 = vector.broadcast %232 : f32 to vector<1x256xf32>
    %235 = arith.mulf %234, %233 : vector<1x256xf32>
    %236 = arith.addf %231, %235 : vector<1x256xf32>
    %c32 = arith.constant 32 : index
    %237 = memref.load %arg1[%c32] : memref<98xf32, #tpu.memory_space<smem>>
    %238 = vector.extract_strided_slice %59 {offsets = [0, 68], sizes = [1, 256], strides = [1, 1]} : vector<1x358xf32> to vector<1x256xf32>
    %239 = vector.broadcast %237 : f32 to vector<1x256xf32>
    %240 = arith.mulf %239, %238 : vector<1x256xf32>
    %241 = arith.addf %236, %240 : vector<1x256xf32>
    %c39 = arith.constant 39 : index
    %242 = memref.load %arg1[%c39] : memref<98xf32, #tpu.memory_space<smem>>
    %243 = vector.extract_strided_slice %59 {offsets = [0, 84], sizes = [1, 256], strides = [1, 1]} : vector<1x358xf32> to vector<1x256xf32>
    %244 = vector.broadcast %242 : f32 to vector<1x256xf32>
    %245 = arith.mulf %244, %243 : vector<1x256xf32>
    %246 = arith.addf %241, %245 : vector<1x256xf32>
    %c46 = arith.constant 46 : index
    %247 = memref.load %arg1[%c46] : memref<98xf32, #tpu.memory_space<smem>>
    %248 = vector.extract_strided_slice %59 {offsets = [0, 100], sizes = [1, 256], strides = [1, 1]} : vector<1x358xf32> to vector<1x256xf32>
    %249 = vector.broadcast %247 : f32 to vector<1x256xf32>
    %250 = arith.mulf %249, %248 : vector<1x256xf32>
    %251 = arith.addf %246, %250 : vector<1x256xf32>
    %cst_22 = arith.constant 0.000000e+00 : f32
    %252 = vector.broadcast %cst_22 : f32 to vector<1x256xf32>
    %253 = arith.select %47, %251, %252 : vector<1x256xi1>, vector<1x256xf32>
    %254 = arith.addf %215, %253 : vector<1x256xf32>
    %cst_23 = arith.constant 0.000000e+00 : f32
    %255 = vector.broadcast %cst_23 : f32 to vector<1x256xf32>
    %c5 = arith.constant 5 : index
    %256 = memref.load %arg1[%c5] : memref<98xf32, #tpu.memory_space<smem>>
    %257 = vector.extract_strided_slice %59 {offsets = [0, 5], sizes = [1, 256], strides = [1, 1]} : vector<1x358xf32> to vector<1x256xf32>
    %258 = vector.broadcast %256 : f32 to vector<1x256xf32>
    %259 = arith.mulf %258, %257 : vector<1x256xf32>
    %260 = arith.addf %255, %259 : vector<1x256xf32>
    %c12 = arith.constant 12 : index
    %261 = memref.load %arg1[%c12] : memref<98xf32, #tpu.memory_space<smem>>
    %262 = vector.extract_strided_slice %59 {offsets = [0, 21], sizes = [1, 256], strides = [1, 1]} : vector<1x358xf32> to vector<1x256xf32>
    %263 = vector.broadcast %261 : f32 to vector<1x256xf32>
    %264 = arith.mulf %263, %262 : vector<1x256xf32>
    %265 = arith.addf %260, %264 : vector<1x256xf32>
    %c19 = arith.constant 19 : index
    %266 = memref.load %arg1[%c19] : memref<98xf32, #tpu.memory_space<smem>>
    %267 = vector.extract_strided_slice %59 {offsets = [0, 37], sizes = [1, 256], strides = [1, 1]} : vector<1x358xf32> to vector<1x256xf32>
    %268 = vector.broadcast %266 : f32 to vector<1x256xf32>
    %269 = arith.mulf %268, %267 : vector<1x256xf32>
    %270 = arith.addf %265, %269 : vector<1x256xf32>
    %c26 = arith.constant 26 : index
    %271 = memref.load %arg1[%c26] : memref<98xf32, #tpu.memory_space<smem>>
    %272 = vector.extract_strided_slice %59 {offsets = [0, 53], sizes = [1, 256], strides = [1, 1]} : vector<1x358xf32> to vector<1x256xf32>
    %273 = vector.broadcast %271 : f32 to vector<1x256xf32>
    %274 = arith.mulf %273, %272 : vector<1x256xf32>
    %275 = arith.addf %270, %274 : vector<1x256xf32>
    %c33 = arith.constant 33 : index
    %276 = memref.load %arg1[%c33] : memref<98xf32, #tpu.memory_space<smem>>
    %277 = vector.extract_strided_slice %59 {offsets = [0, 69], sizes = [1, 256], strides = [1, 1]} : vector<1x358xf32> to vector<1x256xf32>
    %278 = vector.broadcast %276 : f32 to vector<1x256xf32>
    %279 = arith.mulf %278, %277 : vector<1x256xf32>
    %280 = arith.addf %275, %279 : vector<1x256xf32>
    %c40 = arith.constant 40 : index
    %281 = memref.load %arg1[%c40] : memref<98xf32, #tpu.memory_space<smem>>
    %282 = vector.extract_strided_slice %59 {offsets = [0, 85], sizes = [1, 256], strides = [1, 1]} : vector<1x358xf32> to vector<1x256xf32>
    %283 = vector.broadcast %281 : f32 to vector<1x256xf32>
    %284 = arith.mulf %283, %282 : vector<1x256xf32>
    %285 = arith.addf %280, %284 : vector<1x256xf32>
    %c47 = arith.constant 47 : index
    %286 = memref.load %arg1[%c47] : memref<98xf32, #tpu.memory_space<smem>>
    %287 = vector.extract_strided_slice %59 {offsets = [0, 101], sizes = [1, 256], strides = [1, 1]} : vector<1x358xf32> to vector<1x256xf32>
    %288 = vector.broadcast %286 : f32 to vector<1x256xf32>
    %289 = arith.mulf %288, %287 : vector<1x256xf32>
    %290 = arith.addf %285, %289 : vector<1x256xf32>
    %cst_24 = arith.constant 0.000000e+00 : f32
    %291 = vector.broadcast %cst_24 : f32 to vector<1x256xf32>
    %292 = arith.select %52, %290, %291 : vector<1x256xi1>, vector<1x256xf32>
    %293 = arith.addf %254, %292 : vector<1x256xf32>
    %cst_25 = arith.constant 0.000000e+00 : f32
    %294 = vector.broadcast %cst_25 : f32 to vector<1x256xf32>
    %c6 = arith.constant 6 : index
    %295 = memref.load %arg1[%c6] : memref<98xf32, #tpu.memory_space<smem>>
    %296 = vector.extract_strided_slice %59 {offsets = [0, 6], sizes = [1, 256], strides = [1, 1]} : vector<1x358xf32> to vector<1x256xf32>
    %297 = vector.broadcast %295 : f32 to vector<1x256xf32>
    %298 = arith.mulf %297, %296 : vector<1x256xf32>
    %299 = arith.addf %294, %298 : vector<1x256xf32>
    %c13 = arith.constant 13 : index
    %300 = memref.load %arg1[%c13] : memref<98xf32, #tpu.memory_space<smem>>
    %301 = vector.extract_strided_slice %59 {offsets = [0, 22], sizes = [1, 256], strides = [1, 1]} : vector<1x358xf32> to vector<1x256xf32>
    %302 = vector.broadcast %300 : f32 to vector<1x256xf32>
    %303 = arith.mulf %302, %301 : vector<1x256xf32>
    %304 = arith.addf %299, %303 : vector<1x256xf32>
    %c20 = arith.constant 20 : index
    %305 = memref.load %arg1[%c20] : memref<98xf32, #tpu.memory_space<smem>>
    %306 = vector.extract_strided_slice %59 {offsets = [0, 38], sizes = [1, 256], strides = [1, 1]} : vector<1x358xf32> to vector<1x256xf32>
    %307 = vector.broadcast %305 : f32 to vector<1x256xf32>
    %308 = arith.mulf %307, %306 : vector<1x256xf32>
    %309 = arith.addf %304, %308 : vector<1x256xf32>
    %c27 = arith.constant 27 : index
    %310 = memref.load %arg1[%c27] : memref<98xf32, #tpu.memory_space<smem>>
    %311 = vector.extract_strided_slice %59 {offsets = [0, 54], sizes = [1, 256], strides = [1, 1]} : vector<1x358xf32> to vector<1x256xf32>
    %312 = vector.broadcast %310 : f32 to vector<1x256xf32>
    %313 = arith.mulf %312, %311 : vector<1x256xf32>
    %314 = arith.addf %309, %313 : vector<1x256xf32>
    %c34 = arith.constant 34 : index
    %315 = memref.load %arg1[%c34] : memref<98xf32, #tpu.memory_space<smem>>
    %316 = vector.extract_strided_slice %59 {offsets = [0, 70], sizes = [1, 256], strides = [1, 1]} : vector<1x358xf32> to vector<1x256xf32>
    %317 = vector.broadcast %315 : f32 to vector<1x256xf32>
    %318 = arith.mulf %317, %316 : vector<1x256xf32>
    %319 = arith.addf %314, %318 : vector<1x256xf32>
    %c41 = arith.constant 41 : index
    %320 = memref.load %arg1[%c41] : memref<98xf32, #tpu.memory_space<smem>>
    %321 = vector.extract_strided_slice %59 {offsets = [0, 86], sizes = [1, 256], strides = [1, 1]} : vector<1x358xf32> to vector<1x256xf32>
    %322 = vector.broadcast %320 : f32 to vector<1x256xf32>
    %323 = arith.mulf %322, %321 : vector<1x256xf32>
    %324 = arith.addf %319, %323 : vector<1x256xf32>
    %c48 = arith.constant 48 : index
    %325 = memref.load %arg1[%c48] : memref<98xf32, #tpu.memory_space<smem>>
    %326 = vector.extract_strided_slice %59 {offsets = [0, 102], sizes = [1, 256], strides = [1, 1]} : vector<1x358xf32> to vector<1x256xf32>
    %327 = vector.broadcast %325 : f32 to vector<1x256xf32>
    %328 = arith.mulf %327, %326 : vector<1x256xf32>
    %329 = arith.addf %324, %328 : vector<1x256xf32>
    %cst_26 = arith.constant 0.000000e+00 : f32
    %330 = vector.broadcast %cst_26 : f32 to vector<1x256xf32>
    %331 = arith.select %57, %329, %330 : vector<1x256xi1>, vector<1x256xf32>
    %332 = arith.addf %293, %331 : vector<1x256xf32>
    %333 = tpu.concatenate %58, %4, %58 in 1 : vector<1x51xf32>, vector<1x256xf32>, vector<1x51xf32> -> vector<1x358xf32>
    %cst_27 = arith.constant 0.000000e+00 : f32
    %334 = vector.broadcast %cst_27 : f32 to vector<1x256xf32>
    %c49 = arith.constant 49 : index
    %335 = memref.load %arg1[%c49] : memref<98xf32, #tpu.memory_space<smem>>
    %336 = vector.extract_strided_slice %333 {offsets = [0, 0], sizes = [1, 256], strides = [1, 1]} : vector<1x358xf32> to vector<1x256xf32>
    %337 = vector.broadcast %335 : f32 to vector<1x256xf32>
    %338 = arith.mulf %337, %336 : vector<1x256xf32>
    %339 = arith.addf %334, %338 : vector<1x256xf32>
    %c56 = arith.constant 56 : index
    %340 = memref.load %arg1[%c56] : memref<98xf32, #tpu.memory_space<smem>>
    %341 = vector.extract_strided_slice %333 {offsets = [0, 16], sizes = [1, 256], strides = [1, 1]} : vector<1x358xf32> to vector<1x256xf32>
    %342 = vector.broadcast %340 : f32 to vector<1x256xf32>
    %343 = arith.mulf %342, %341 : vector<1x256xf32>
    %344 = arith.addf %339, %343 : vector<1x256xf32>
    %c63 = arith.constant 63 : index
    %345 = memref.load %arg1[%c63] : memref<98xf32, #tpu.memory_space<smem>>
    %346 = vector.extract_strided_slice %333 {offsets = [0, 32], sizes = [1, 256], strides = [1, 1]} : vector<1x358xf32> to vector<1x256xf32>
    %347 = vector.broadcast %345 : f32 to vector<1x256xf32>
    %348 = arith.mulf %347, %346 : vector<1x256xf32>
    %349 = arith.addf %344, %348 : vector<1x256xf32>
    %c70 = arith.constant 70 : index
    %350 = memref.load %arg1[%c70] : memref<98xf32, #tpu.memory_space<smem>>
    %351 = vector.extract_strided_slice %333 {offsets = [0, 48], sizes = [1, 256], strides = [1, 1]} : vector<1x358xf32> to vector<1x256xf32>
    %352 = vector.broadcast %350 : f32 to vector<1x256xf32>
    %353 = arith.mulf %352, %351 : vector<1x256xf32>
    %354 = arith.addf %349, %353 : vector<1x256xf32>
    %c77 = arith.constant 77 : index
    %355 = memref.load %arg1[%c77] : memref<98xf32, #tpu.memory_space<smem>>
    %356 = vector.extract_strided_slice %333 {offsets = [0, 64], sizes = [1, 256], strides = [1, 1]} : vector<1x358xf32> to vector<1x256xf32>
    %357 = vector.broadcast %355 : f32 to vector<1x256xf32>
    %358 = arith.mulf %357, %356 : vector<1x256xf32>
    %359 = arith.addf %354, %358 : vector<1x256xf32>
    %c84 = arith.constant 84 : index
    %360 = memref.load %arg1[%c84] : memref<98xf32, #tpu.memory_space<smem>>
    %361 = vector.extract_strided_slice %333 {offsets = [0, 80], sizes = [1, 256], strides = [1, 1]} : vector<1x358xf32> to vector<1x256xf32>
    %362 = vector.broadcast %360 : f32 to vector<1x256xf32>
    %363 = arith.mulf %362, %361 : vector<1x256xf32>
    %364 = arith.addf %359, %363 : vector<1x256xf32>
    %c91 = arith.constant 91 : index
    %365 = memref.load %arg1[%c91] : memref<98xf32, #tpu.memory_space<smem>>
    %366 = vector.extract_strided_slice %333 {offsets = [0, 96], sizes = [1, 256], strides = [1, 1]} : vector<1x358xf32> to vector<1x256xf32>
    %367 = vector.broadcast %365 : f32 to vector<1x256xf32>
    %368 = arith.mulf %367, %366 : vector<1x256xf32>
    %369 = arith.addf %364, %368 : vector<1x256xf32>
    %cst_28 = arith.constant 0.000000e+00 : f32
    %370 = vector.broadcast %cst_28 : f32 to vector<1x256xf32>
    %371 = arith.select %27, %369, %370 : vector<1x256xi1>, vector<1x256xf32>
    %372 = arith.addf %332, %371 : vector<1x256xf32>
    %cst_29 = arith.constant 0.000000e+00 : f32
    %373 = vector.broadcast %cst_29 : f32 to vector<1x256xf32>
    %c50 = arith.constant 50 : index
    %374 = memref.load %arg1[%c50] : memref<98xf32, #tpu.memory_space<smem>>
    %375 = vector.extract_strided_slice %333 {offsets = [0, 1], sizes = [1, 256], strides = [1, 1]} : vector<1x358xf32> to vector<1x256xf32>
    %376 = vector.broadcast %374 : f32 to vector<1x256xf32>
    %377 = arith.mulf %376, %375 : vector<1x256xf32>
    %378 = arith.addf %373, %377 : vector<1x256xf32>
    %c57 = arith.constant 57 : index
    %379 = memref.load %arg1[%c57] : memref<98xf32, #tpu.memory_space<smem>>
    %380 = vector.extract_strided_slice %333 {offsets = [0, 17], sizes = [1, 256], strides = [1, 1]} : vector<1x358xf32> to vector<1x256xf32>
    %381 = vector.broadcast %379 : f32 to vector<1x256xf32>
    %382 = arith.mulf %381, %380 : vector<1x256xf32>
    %383 = arith.addf %378, %382 : vector<1x256xf32>
    %c64 = arith.constant 64 : index
    %384 = memref.load %arg1[%c64] : memref<98xf32, #tpu.memory_space<smem>>
    %385 = vector.extract_strided_slice %333 {offsets = [0, 33], sizes = [1, 256], strides = [1, 1]} : vector<1x358xf32> to vector<1x256xf32>
    %386 = vector.broadcast %384 : f32 to vector<1x256xf32>
    %387 = arith.mulf %386, %385 : vector<1x256xf32>
    %388 = arith.addf %383, %387 : vector<1x256xf32>
    %c71 = arith.constant 71 : index
    %389 = memref.load %arg1[%c71] : memref<98xf32, #tpu.memory_space<smem>>
    %390 = vector.extract_strided_slice %333 {offsets = [0, 49], sizes = [1, 256], strides = [1, 1]} : vector<1x358xf32> to vector<1x256xf32>
    %391 = vector.broadcast %389 : f32 to vector<1x256xf32>
    %392 = arith.mulf %391, %390 : vector<1x256xf32>
    %393 = arith.addf %388, %392 : vector<1x256xf32>
    %c78 = arith.constant 78 : index
    %394 = memref.load %arg1[%c78] : memref<98xf32, #tpu.memory_space<smem>>
    %395 = vector.extract_strided_slice %333 {offsets = [0, 65], sizes = [1, 256], strides = [1, 1]} : vector<1x358xf32> to vector<1x256xf32>
    %396 = vector.broadcast %394 : f32 to vector<1x256xf32>
    %397 = arith.mulf %396, %395 : vector<1x256xf32>
    %398 = arith.addf %393, %397 : vector<1x256xf32>
    %c85 = arith.constant 85 : index
    %399 = memref.load %arg1[%c85] : memref<98xf32, #tpu.memory_space<smem>>
    %400 = vector.extract_strided_slice %333 {offsets = [0, 81], sizes = [1, 256], strides = [1, 1]} : vector<1x358xf32> to vector<1x256xf32>
    %401 = vector.broadcast %399 : f32 to vector<1x256xf32>
    %402 = arith.mulf %401, %400 : vector<1x256xf32>
    %403 = arith.addf %398, %402 : vector<1x256xf32>
    %c92 = arith.constant 92 : index
    %404 = memref.load %arg1[%c92] : memref<98xf32, #tpu.memory_space<smem>>
    %405 = vector.extract_strided_slice %333 {offsets = [0, 97], sizes = [1, 256], strides = [1, 1]} : vector<1x358xf32> to vector<1x256xf32>
    %406 = vector.broadcast %404 : f32 to vector<1x256xf32>
    %407 = arith.mulf %406, %405 : vector<1x256xf32>
    %408 = arith.addf %403, %407 : vector<1x256xf32>
    %cst_30 = arith.constant 0.000000e+00 : f32
    %409 = vector.broadcast %cst_30 : f32 to vector<1x256xf32>
    %410 = arith.select %32, %408, %409 : vector<1x256xi1>, vector<1x256xf32>
    %411 = arith.addf %372, %410 : vector<1x256xf32>
    %cst_31 = arith.constant 0.000000e+00 : f32
    %412 = vector.broadcast %cst_31 : f32 to vector<1x256xf32>
    %c51 = arith.constant 51 : index
    %413 = memref.load %arg1[%c51] : memref<98xf32, #tpu.memory_space<smem>>
    %414 = vector.extract_strided_slice %333 {offsets = [0, 2], sizes = [1, 256], strides = [1, 1]} : vector<1x358xf32> to vector<1x256xf32>
    %415 = vector.broadcast %413 : f32 to vector<1x256xf32>
    %416 = arith.mulf %415, %414 : vector<1x256xf32>
    %417 = arith.addf %412, %416 : vector<1x256xf32>
    %c58 = arith.constant 58 : index
    %418 = memref.load %arg1[%c58] : memref<98xf32, #tpu.memory_space<smem>>
    %419 = vector.extract_strided_slice %333 {offsets = [0, 18], sizes = [1, 256], strides = [1, 1]} : vector<1x358xf32> to vector<1x256xf32>
    %420 = vector.broadcast %418 : f32 to vector<1x256xf32>
    %421 = arith.mulf %420, %419 : vector<1x256xf32>
    %422 = arith.addf %417, %421 : vector<1x256xf32>
    %c65 = arith.constant 65 : index
    %423 = memref.load %arg1[%c65] : memref<98xf32, #tpu.memory_space<smem>>
    %424 = vector.extract_strided_slice %333 {offsets = [0, 34], sizes = [1, 256], strides = [1, 1]} : vector<1x358xf32> to vector<1x256xf32>
    %425 = vector.broadcast %423 : f32 to vector<1x256xf32>
    %426 = arith.mulf %425, %424 : vector<1x256xf32>
    %427 = arith.addf %422, %426 : vector<1x256xf32>
    %c72 = arith.constant 72 : index
    %428 = memref.load %arg1[%c72] : memref<98xf32, #tpu.memory_space<smem>>
    %429 = vector.extract_strided_slice %333 {offsets = [0, 50], sizes = [1, 256], strides = [1, 1]} : vector<1x358xf32> to vector<1x256xf32>
    %430 = vector.broadcast %428 : f32 to vector<1x256xf32>
    %431 = arith.mulf %430, %429 : vector<1x256xf32>
    %432 = arith.addf %427, %431 : vector<1x256xf32>
    %c79 = arith.constant 79 : index
    %433 = memref.load %arg1[%c79] : memref<98xf32, #tpu.memory_space<smem>>
    %434 = vector.extract_strided_slice %333 {offsets = [0, 66], sizes = [1, 256], strides = [1, 1]} : vector<1x358xf32> to vector<1x256xf32>
    %435 = vector.broadcast %433 : f32 to vector<1x256xf32>
    %436 = arith.mulf %435, %434 : vector<1x256xf32>
    %437 = arith.addf %432, %436 : vector<1x256xf32>
    %c86 = arith.constant 86 : index
    %438 = memref.load %arg1[%c86] : memref<98xf32, #tpu.memory_space<smem>>
    %439 = vector.extract_strided_slice %333 {offsets = [0, 82], sizes = [1, 256], strides = [1, 1]} : vector<1x358xf32> to vector<1x256xf32>
    %440 = vector.broadcast %438 : f32 to vector<1x256xf32>
    %441 = arith.mulf %440, %439 : vector<1x256xf32>
    %442 = arith.addf %437, %441 : vector<1x256xf32>
    %c93 = arith.constant 93 : index
    %443 = memref.load %arg1[%c93] : memref<98xf32, #tpu.memory_space<smem>>
    %444 = vector.extract_strided_slice %333 {offsets = [0, 98], sizes = [1, 256], strides = [1, 1]} : vector<1x358xf32> to vector<1x256xf32>
    %445 = vector.broadcast %443 : f32 to vector<1x256xf32>
    %446 = arith.mulf %445, %444 : vector<1x256xf32>
    %447 = arith.addf %442, %446 : vector<1x256xf32>
    %cst_32 = arith.constant 0.000000e+00 : f32
    %448 = vector.broadcast %cst_32 : f32 to vector<1x256xf32>
    %449 = arith.select %37, %447, %448 : vector<1x256xi1>, vector<1x256xf32>
    %450 = arith.addf %411, %449 : vector<1x256xf32>
    %cst_33 = arith.constant 0.000000e+00 : f32
    %451 = vector.broadcast %cst_33 : f32 to vector<1x256xf32>
    %c52 = arith.constant 52 : index
    %452 = memref.load %arg1[%c52] : memref<98xf32, #tpu.memory_space<smem>>
    %453 = vector.extract_strided_slice %333 {offsets = [0, 3], sizes = [1, 256], strides = [1, 1]} : vector<1x358xf32> to vector<1x256xf32>
    %454 = vector.broadcast %452 : f32 to vector<1x256xf32>
    %455 = arith.mulf %454, %453 : vector<1x256xf32>
    %456 = arith.addf %451, %455 : vector<1x256xf32>
    %c59 = arith.constant 59 : index
    %457 = memref.load %arg1[%c59] : memref<98xf32, #tpu.memory_space<smem>>
    %458 = vector.extract_strided_slice %333 {offsets = [0, 19], sizes = [1, 256], strides = [1, 1]} : vector<1x358xf32> to vector<1x256xf32>
    %459 = vector.broadcast %457 : f32 to vector<1x256xf32>
    %460 = arith.mulf %459, %458 : vector<1x256xf32>
    %461 = arith.addf %456, %460 : vector<1x256xf32>
    %c66 = arith.constant 66 : index
    %462 = memref.load %arg1[%c66] : memref<98xf32, #tpu.memory_space<smem>>
    %463 = vector.extract_strided_slice %333 {offsets = [0, 35], sizes = [1, 256], strides = [1, 1]} : vector<1x358xf32> to vector<1x256xf32>
    %464 = vector.broadcast %462 : f32 to vector<1x256xf32>
    %465 = arith.mulf %464, %463 : vector<1x256xf32>
    %466 = arith.addf %461, %465 : vector<1x256xf32>
    %c73 = arith.constant 73 : index
    %467 = memref.load %arg1[%c73] : memref<98xf32, #tpu.memory_space<smem>>
    %468 = vector.extract_strided_slice %333 {offsets = [0, 51], sizes = [1, 256], strides = [1, 1]} : vector<1x358xf32> to vector<1x256xf32>
    %469 = vector.broadcast %467 : f32 to vector<1x256xf32>
    %470 = arith.mulf %469, %468 : vector<1x256xf32>
    %471 = arith.addf %466, %470 : vector<1x256xf32>
    %c80 = arith.constant 80 : index
    %472 = memref.load %arg1[%c80] : memref<98xf32, #tpu.memory_space<smem>>
    %473 = vector.extract_strided_slice %333 {offsets = [0, 67], sizes = [1, 256], strides = [1, 1]} : vector<1x358xf32> to vector<1x256xf32>
    %474 = vector.broadcast %472 : f32 to vector<1x256xf32>
    %475 = arith.mulf %474, %473 : vector<1x256xf32>
    %476 = arith.addf %471, %475 : vector<1x256xf32>
    %c87 = arith.constant 87 : index
    %477 = memref.load %arg1[%c87] : memref<98xf32, #tpu.memory_space<smem>>
    %478 = vector.extract_strided_slice %333 {offsets = [0, 83], sizes = [1, 256], strides = [1, 1]} : vector<1x358xf32> to vector<1x256xf32>
    %479 = vector.broadcast %477 : f32 to vector<1x256xf32>
    %480 = arith.mulf %479, %478 : vector<1x256xf32>
    %481 = arith.addf %476, %480 : vector<1x256xf32>
    %c94 = arith.constant 94 : index
    %482 = memref.load %arg1[%c94] : memref<98xf32, #tpu.memory_space<smem>>
    %483 = vector.extract_strided_slice %333 {offsets = [0, 99], sizes = [1, 256], strides = [1, 1]} : vector<1x358xf32> to vector<1x256xf32>
    %484 = vector.broadcast %482 : f32 to vector<1x256xf32>
    %485 = arith.mulf %484, %483 : vector<1x256xf32>
    %486 = arith.addf %481, %485 : vector<1x256xf32>
    %cst_34 = arith.constant 0.000000e+00 : f32
    %487 = vector.broadcast %cst_34 : f32 to vector<1x256xf32>
    %488 = arith.select %42, %486, %487 : vector<1x256xi1>, vector<1x256xf32>
    %489 = arith.addf %450, %488 : vector<1x256xf32>
    %cst_35 = arith.constant 0.000000e+00 : f32
    %490 = vector.broadcast %cst_35 : f32 to vector<1x256xf32>
    %c53 = arith.constant 53 : index
    %491 = memref.load %arg1[%c53] : memref<98xf32, #tpu.memory_space<smem>>
    %492 = vector.extract_strided_slice %333 {offsets = [0, 4], sizes = [1, 256], strides = [1, 1]} : vector<1x358xf32> to vector<1x256xf32>
    %493 = vector.broadcast %491 : f32 to vector<1x256xf32>
    %494 = arith.mulf %493, %492 : vector<1x256xf32>
    %495 = arith.addf %490, %494 : vector<1x256xf32>
    %c60 = arith.constant 60 : index
    %496 = memref.load %arg1[%c60] : memref<98xf32, #tpu.memory_space<smem>>
    %497 = vector.extract_strided_slice %333 {offsets = [0, 20], sizes = [1, 256], strides = [1, 1]} : vector<1x358xf32> to vector<1x256xf32>
    %498 = vector.broadcast %496 : f32 to vector<1x256xf32>
    %499 = arith.mulf %498, %497 : vector<1x256xf32>
    %500 = arith.addf %495, %499 : vector<1x256xf32>
    %c67 = arith.constant 67 : index
    %501 = memref.load %arg1[%c67] : memref<98xf32, #tpu.memory_space<smem>>
    %502 = vector.extract_strided_slice %333 {offsets = [0, 36], sizes = [1, 256], strides = [1, 1]} : vector<1x358xf32> to vector<1x256xf32>
    %503 = vector.broadcast %501 : f32 to vector<1x256xf32>
    %504 = arith.mulf %503, %502 : vector<1x256xf32>
    %505 = arith.addf %500, %504 : vector<1x256xf32>
    %c74 = arith.constant 74 : index
    %506 = memref.load %arg1[%c74] : memref<98xf32, #tpu.memory_space<smem>>
    %507 = vector.extract_strided_slice %333 {offsets = [0, 52], sizes = [1, 256], strides = [1, 1]} : vector<1x358xf32> to vector<1x256xf32>
    %508 = vector.broadcast %506 : f32 to vector<1x256xf32>
    %509 = arith.mulf %508, %507 : vector<1x256xf32>
    %510 = arith.addf %505, %509 : vector<1x256xf32>
    %c81 = arith.constant 81 : index
    %511 = memref.load %arg1[%c81] : memref<98xf32, #tpu.memory_space<smem>>
    %512 = vector.extract_strided_slice %333 {offsets = [0, 68], sizes = [1, 256], strides = [1, 1]} : vector<1x358xf32> to vector<1x256xf32>
    %513 = vector.broadcast %511 : f32 to vector<1x256xf32>
    %514 = arith.mulf %513, %512 : vector<1x256xf32>
    %515 = arith.addf %510, %514 : vector<1x256xf32>
    %c88 = arith.constant 88 : index
    %516 = memref.load %arg1[%c88] : memref<98xf32, #tpu.memory_space<smem>>
    %517 = vector.extract_strided_slice %333 {offsets = [0, 84], sizes = [1, 256], strides = [1, 1]} : vector<1x358xf32> to vector<1x256xf32>
    %518 = vector.broadcast %516 : f32 to vector<1x256xf32>
    %519 = arith.mulf %518, %517 : vector<1x256xf32>
    %520 = arith.addf %515, %519 : vector<1x256xf32>
    %c95 = arith.constant 95 : index
    %521 = memref.load %arg1[%c95] : memref<98xf32, #tpu.memory_space<smem>>
    %522 = vector.extract_strided_slice %333 {offsets = [0, 100], sizes = [1, 256], strides = [1, 1]} : vector<1x358xf32> to vector<1x256xf32>
    %523 = vector.broadcast %521 : f32 to vector<1x256xf32>
    %524 = arith.mulf %523, %522 : vector<1x256xf32>
    %525 = arith.addf %520, %524 : vector<1x256xf32>
    %cst_36 = arith.constant 0.000000e+00 : f32
    %526 = vector.broadcast %cst_36 : f32 to vector<1x256xf32>
    %527 = arith.select %47, %525, %526 : vector<1x256xi1>, vector<1x256xf32>
    %528 = arith.addf %489, %527 : vector<1x256xf32>
    %cst_37 = arith.constant 0.000000e+00 : f32
    %529 = vector.broadcast %cst_37 : f32 to vector<1x256xf32>
    %c54 = arith.constant 54 : index
    %530 = memref.load %arg1[%c54] : memref<98xf32, #tpu.memory_space<smem>>
    %531 = vector.extract_strided_slice %333 {offsets = [0, 5], sizes = [1, 256], strides = [1, 1]} : vector<1x358xf32> to vector<1x256xf32>
    %532 = vector.broadcast %530 : f32 to vector<1x256xf32>
    %533 = arith.mulf %532, %531 : vector<1x256xf32>
    %534 = arith.addf %529, %533 : vector<1x256xf32>
    %c61 = arith.constant 61 : index
    %535 = memref.load %arg1[%c61] : memref<98xf32, #tpu.memory_space<smem>>
    %536 = vector.extract_strided_slice %333 {offsets = [0, 21], sizes = [1, 256], strides = [1, 1]} : vector<1x358xf32> to vector<1x256xf32>
    %537 = vector.broadcast %535 : f32 to vector<1x256xf32>
    %538 = arith.mulf %537, %536 : vector<1x256xf32>
    %539 = arith.addf %534, %538 : vector<1x256xf32>
    %c68 = arith.constant 68 : index
    %540 = memref.load %arg1[%c68] : memref<98xf32, #tpu.memory_space<smem>>
    %541 = vector.extract_strided_slice %333 {offsets = [0, 37], sizes = [1, 256], strides = [1, 1]} : vector<1x358xf32> to vector<1x256xf32>
    %542 = vector.broadcast %540 : f32 to vector<1x256xf32>
    %543 = arith.mulf %542, %541 : vector<1x256xf32>
    %544 = arith.addf %539, %543 : vector<1x256xf32>
    %c75 = arith.constant 75 : index
    %545 = memref.load %arg1[%c75] : memref<98xf32, #tpu.memory_space<smem>>
    %546 = vector.extract_strided_slice %333 {offsets = [0, 53], sizes = [1, 256], strides = [1, 1]} : vector<1x358xf32> to vector<1x256xf32>
    %547 = vector.broadcast %545 : f32 to vector<1x256xf32>
    %548 = arith.mulf %547, %546 : vector<1x256xf32>
    %549 = arith.addf %544, %548 : vector<1x256xf32>
    %c82 = arith.constant 82 : index
    %550 = memref.load %arg1[%c82] : memref<98xf32, #tpu.memory_space<smem>>
    %551 = vector.extract_strided_slice %333 {offsets = [0, 69], sizes = [1, 256], strides = [1, 1]} : vector<1x358xf32> to vector<1x256xf32>
    %552 = vector.broadcast %550 : f32 to vector<1x256xf32>
    %553 = arith.mulf %552, %551 : vector<1x256xf32>
    %554 = arith.addf %549, %553 : vector<1x256xf32>
    %c89 = arith.constant 89 : index
    %555 = memref.load %arg1[%c89] : memref<98xf32, #tpu.memory_space<smem>>
    %556 = vector.extract_strided_slice %333 {offsets = [0, 85], sizes = [1, 256], strides = [1, 1]} : vector<1x358xf32> to vector<1x256xf32>
    %557 = vector.broadcast %555 : f32 to vector<1x256xf32>
    %558 = arith.mulf %557, %556 : vector<1x256xf32>
    %559 = arith.addf %554, %558 : vector<1x256xf32>
    %c96 = arith.constant 96 : index
    %560 = memref.load %arg1[%c96] : memref<98xf32, #tpu.memory_space<smem>>
    %561 = vector.extract_strided_slice %333 {offsets = [0, 101], sizes = [1, 256], strides = [1, 1]} : vector<1x358xf32> to vector<1x256xf32>
    %562 = vector.broadcast %560 : f32 to vector<1x256xf32>
    %563 = arith.mulf %562, %561 : vector<1x256xf32>
    %564 = arith.addf %559, %563 : vector<1x256xf32>
    %cst_38 = arith.constant 0.000000e+00 : f32
    %565 = vector.broadcast %cst_38 : f32 to vector<1x256xf32>
    %566 = arith.select %52, %564, %565 : vector<1x256xi1>, vector<1x256xf32>
    %567 = arith.addf %528, %566 : vector<1x256xf32>
    %cst_39 = arith.constant 0.000000e+00 : f32
    %568 = vector.broadcast %cst_39 : f32 to vector<1x256xf32>
    %c55 = arith.constant 55 : index
    %569 = memref.load %arg1[%c55] : memref<98xf32, #tpu.memory_space<smem>>
    %570 = vector.extract_strided_slice %333 {offsets = [0, 6], sizes = [1, 256], strides = [1, 1]} : vector<1x358xf32> to vector<1x256xf32>
    %571 = vector.broadcast %569 : f32 to vector<1x256xf32>
    %572 = arith.mulf %571, %570 : vector<1x256xf32>
    %573 = arith.addf %568, %572 : vector<1x256xf32>
    %c62 = arith.constant 62 : index
    %574 = memref.load %arg1[%c62] : memref<98xf32, #tpu.memory_space<smem>>
    %575 = vector.extract_strided_slice %333 {offsets = [0, 22], sizes = [1, 256], strides = [1, 1]} : vector<1x358xf32> to vector<1x256xf32>
    %576 = vector.broadcast %574 : f32 to vector<1x256xf32>
    %577 = arith.mulf %576, %575 : vector<1x256xf32>
    %578 = arith.addf %573, %577 : vector<1x256xf32>
    %c69 = arith.constant 69 : index
    %579 = memref.load %arg1[%c69] : memref<98xf32, #tpu.memory_space<smem>>
    %580 = vector.extract_strided_slice %333 {offsets = [0, 38], sizes = [1, 256], strides = [1, 1]} : vector<1x358xf32> to vector<1x256xf32>
    %581 = vector.broadcast %579 : f32 to vector<1x256xf32>
    %582 = arith.mulf %581, %580 : vector<1x256xf32>
    %583 = arith.addf %578, %582 : vector<1x256xf32>
    %c76 = arith.constant 76 : index
    %584 = memref.load %arg1[%c76] : memref<98xf32, #tpu.memory_space<smem>>
    %585 = vector.extract_strided_slice %333 {offsets = [0, 54], sizes = [1, 256], strides = [1, 1]} : vector<1x358xf32> to vector<1x256xf32>
    %586 = vector.broadcast %584 : f32 to vector<1x256xf32>
    %587 = arith.mulf %586, %585 : vector<1x256xf32>
    %588 = arith.addf %583, %587 : vector<1x256xf32>
    %c83 = arith.constant 83 : index
    %589 = memref.load %arg1[%c83] : memref<98xf32, #tpu.memory_space<smem>>
    %590 = vector.extract_strided_slice %333 {offsets = [0, 70], sizes = [1, 256], strides = [1, 1]} : vector<1x358xf32> to vector<1x256xf32>
    %591 = vector.broadcast %589 : f32 to vector<1x256xf32>
    %592 = arith.mulf %591, %590 : vector<1x256xf32>
    %593 = arith.addf %588, %592 : vector<1x256xf32>
    %c90 = arith.constant 90 : index
    %594 = memref.load %arg1[%c90] : memref<98xf32, #tpu.memory_space<smem>>
    %595 = vector.extract_strided_slice %333 {offsets = [0, 86], sizes = [1, 256], strides = [1, 1]} : vector<1x358xf32> to vector<1x256xf32>
    %596 = vector.broadcast %594 : f32 to vector<1x256xf32>
    %597 = arith.mulf %596, %595 : vector<1x256xf32>
    %598 = arith.addf %593, %597 : vector<1x256xf32>
    %c97 = arith.constant 97 : index
    %599 = memref.load %arg1[%c97] : memref<98xf32, #tpu.memory_space<smem>>
    %600 = vector.extract_strided_slice %333 {offsets = [0, 102], sizes = [1, 256], strides = [1, 1]} : vector<1x358xf32> to vector<1x256xf32>
    %601 = vector.broadcast %599 : f32 to vector<1x256xf32>
    %602 = arith.mulf %601, %600 : vector<1x256xf32>
    %603 = arith.addf %598, %602 : vector<1x256xf32>
    %cst_40 = arith.constant 0.000000e+00 : f32
    %604 = vector.broadcast %cst_40 : f32 to vector<1x256xf32>
    %605 = arith.select %57, %603, %604 : vector<1x256xi1>, vector<1x256xf32>
    %606 = arith.addf %567, %605 : vector<1x256xf32>
    %c0_41 = arith.constant 0 : index
    %607 = memref.load %arg2[%c0_41] : memref<2xf32, #tpu.memory_space<smem>>
    %608 = vector.broadcast %607 : f32 to vector<1x256xf32>
    %609 = arith.mulf %606, %608 : vector<1x256xf32>
    %c1_42 = arith.constant 1 : index
    %610 = memref.load %arg2[%c1_42] : memref<2xf32, #tpu.memory_space<smem>>
    %611 = vector.broadcast %610 : f32 to vector<1x256xf32>
    %612 = arith.addf %609, %611 : vector<1x256xf32>
    %613 = arith.negf %612 : vector<1x256xf32>
    %614 = math.exp %613 : vector<1x256xf32>
    %cst_43 = arith.constant 1.000000e+00 : f32
    %615 = vector.broadcast %cst_43 : f32 to vector<1x256xf32>
    %616 = arith.addf %615, %614 : vector<1x256xf32>
    %617 = arith.divf %615, %616 : vector<1x256xf32>
    %c0_44 = arith.constant 0 : index
    %c0_45 = arith.constant 0 : index
    %c0_46 = arith.constant 0 : index
    %618 = vector.load %arg3[%c0_44, %c0_45, %c0_46] : memref<1x4x256xf32, #tpu.memory_space<vmem>>, vector<1x4x256xf32>
    %619 = vector.shape_cast %617 : vector<1x256xf32> to vector<1x1x256xf32>
    %620 = vector.broadcast %619 : vector<1x1x256xf32> to vector<1x4x256xf32>
    %621 = arith.mulf %618, %620 : vector<1x4x256xf32>
    %c0_47 = arith.constant 0 : index
    %c0_48 = arith.constant 0 : index
    %c0_49 = arith.constant 0 : index
    %622 = vector.load %arg4[%c0_47, %c0_48, %c0_49] : memref<1x4x256xf32, #tpu.memory_space<vmem>>, vector<1x4x256xf32>
    tpu.vector_store %arg4[%c0_47, %c0_48, %c0_49], %621 {strides = array<i32>} : memref<1x4x256xf32, #tpu.memory_space<vmem>>, vector<1x4x256xf32>,
    return
  }
  func.func @transform_0(%arg0: i32) -> i32 {
    %c0_i32 = arith.constant 0 : i32
    %c0_i32_0 = arith.constant 0 : i32
    return %c0_i32 : i32
  }
  func.func @transform_1(%arg0: i32) -> i32 {
    %c0_i32 = arith.constant 0 : i32
    %c0_i32_0 = arith.constant 0 : i32
    return %c0_i32 : i32
  }
  func.func @transform_2(%arg0: i32) -> (i32, i32, i32) {
    %c0_i32 = arith.constant 0 : i32
    %c0_i32_0 = arith.constant 0 : i32
    %c0_i32_1 = arith.constant 0 : i32
    return %arg0, %c0_i32, %c0_i32_0 : i32, i32, i32
  }
  func.func @transform_3(%arg0: i32) -> (i32, i32, i32) {
    %c0_i32 = arith.constant 0 : i32
    %c0_i32_0 = arith.constant 0 : i32
    %c0_i32_1 = arith.constant 0 : i32
    return %arg0, %c0_i32, %c0_i32_0 : i32, i32, i32
  }
}

</mosaic_0001>

<bundles_post_ra>
// kernel: tpu_custom_call.1
= control target key start
LH: loop header
LB: loop body
LE: loop exit
PB: predicated region body
PF: predicated region fallthrough
CT: control target
= control target key end

     0   :  { %8 = vsyncpa [#allocation5], 0  ;;  %s4383_s0 = inlined_call_operand.hbm [shape: f32[98], index: 0, kind: input, shape index: {}]   ;;  %s4384_s1 = inlined_call_operand.hbm [shape: f32[2], index: 1, kind: input, shape index: {}]   ;;  %s4385_s2 = inlined_call_operand.hbm [shape: f32[2,4,256], index: 2, kind: input, shape index: {}]   ;;  %s4386_s3 = inlined_call_operand.hbm [shape: f32[2,4,256], index: 3, kind: output, shape index: {}]  }
   0x1   :  { %9 = vsyncpa [#allocation7], 0 }
   0x2   :  { %10 = vsyncpa [#allocation3], 0 }
   0x3   :  { %12 = vsyncpa [#allocation3 + $0x1], 0 }
   0x4   :  { %13 = vsyncpa [#allocation4], 0 }
   0x5   :  { %15 = vsyncpa [#allocation4 + $0x1], 0  ;;  %s3052_s12 = smov 0   ;;  %s3054_s13 = smov 0  }
   0x6   :  { %s3056_s14 = smov 0   ;;  %s3058_s15 = smov 0  }
   0x7 LB: > { %s3073_s16 = sadd.s32 4294967295, %s3015_s15   ;;  %s2673_s17 = sadd.s32 4294967294, %s3015_s15   ;;  %s3015_s15 = sphi %s3058_s15, %s4427_s15   ;;  %s3011_s14 = sphi %s3056_s14, %s4426_s14   ;;  %s3007_s13 = sphi %s3054_s13, %s4425_s13   ;;  %s3003_s12 = sphi %s3052_s12, %s4424_s12  }
   0x8   : > { %p83_p0 = scmp.ne.s32.totalorder %s3007_s13, %s3003_s12  ;;  %p84_p1 = scmp.eq.s32.totalorder %s3073_s16, 0 }
   0x9   : > { %p107_p2 = scmp.eq.s32.totalorder %s3073_s16, 1  ;;  %p113_p3 = scmp.eq.s32.totalorder %s2673_s17, 1 }
   0xa   : > { %p3082_p4 = por %p84_p1, %p83_p0  ;;  %p2674_p5 = scmp.ge.s32.totalorder %s3015_s15, 1 }
   0xb   : > { %p3087_p6 = por %p113_p3, %p83_p0  ;;  %p120_p7 = scmp.lt.s32.totalorder %s3015_s15, 3 }
   0xc   : > { %s132_s22 = sshll.u32 %s4383_s0, 4  ;;  %s142_s26 = sshll.u32 %s4384_s1, 4  ;;  %s133_s22 = int_to_ptr.hbm [resolvable:$true] %s132_s22  ;;  %s143_s26 = int_to_ptr.hbm [resolvable:$true] %s142_s26 }
   0xd   : > { %p3095_p8 = pnand %p2674_p5, %p120_p7  ;;  %s3108_s27 = sadd.s32 1, %s3015_s15  }
   0xe   : > { %s67_s28 = ssub.s32 %s3015_s15, %s3108_s27  ;;  %s3017_s29 = smov [#allocation2]  }
   0xf   : > { %p2805_p10 = pneg %p3095_p8  ;;  %s3018_s30 = smov [#allocation6]  }
  0x10   : > { %p68_p12 = scmp.eq.s32.totalorder %s67_s28, 0  ;;  %s70_s4 = sadd.s32 1, %s3011_s14 }
  0x11   : > { %p2806_p11 = pnand %p2805_p10, %p84_p1  ;;  %p77_p13 = scmp.ne.s32.totalorder %s3011_s14, %s3007_s13 }
  0x12   : > { %p78_p0 = scmp.eq.s32.totalorder %s3015_s15, 0  ;;  %p2822_p7 = scmp.lt.s32.totalorder %s3015_s15, 2 }
  0x13   : > { %2808 = dma.hbm_to_smem (!%p2806_p11), %s133_s22, 16, %s3017_s29, [#allocation5]  }
  0x14   : > { %2811 = dma.hbm_to_smem (!%p2806_p11), %s143_s26, 16, %s3018_s30, [#allocation7]  }
  0x15   : > { %s3117_s5 = scalar_select %p68_p12, %s3011_s14, %s70_s4  }
  0x16   : > { %p79_p3 = por %p78_p0, %p77_p13  ;;  %p3121_p5 = por %p107_p2, %p77_p13 }
  0x17   : > { %s153_s7 = sand.u32 1, %s3011_s14   ;;  %s2791_s9 = sshll.u32 %s3015_s15, 3 }
  0x18   : > { %s2678_s8 = sshll.u32 %s153_s7, 3  ;;  %s162_s17 = scalar_lea.hbm %s4385_s2, %s2791_s9 }
  0x19   : > { %s157_s20 = scalar_lea.vmem [#allocation8], %s2678_s8  ;;  %s164_s22 = sshll.u32 %s162_s17, 4  ;;  %s165_s22 = int_to_ptr.hbm [resolvable:$true] %s164_s22 }
  0x1a   : > { %s166_s21 = sshll.u32 %s157_s20, 4  ;;  %p3131_p10 = pnand %p2822_p7, %p79_p3  ;;  %s167_s21 = int_to_ptr.vmem [resolvable:$true] %s166_s21 }
  0x1b   : > { %s154_s25 = scalar_lea.sflag [#allocation3], %s153_s7  ;;  %s2911_s26 = sshra.s32 %s165_s22, 4  ;;  %s2912_s26 = int_to_ptr.hbm [resolvable:$true] %s2911_s26 }
  0x1c   : > { %s2913_s28 = scalar_lea.hbm %s2912_s26, 8  ;;  %p2915_p11 = pneg %p3131_p10 }
  0x1d   : > { %p2914_p2 = scmp.ne.s32.totalorder %s2912_s26, %s2913_s28  ;;  %s2918_s4 = scalar_lea.hbm %s4385_s2, 16 }
  0x1e   : > { %p2919_p0 = scmp.lt.s32.totalorder %s2912_s26, %s4385_s2  ;;  %p2920_p3 = scmp.lt.s32.totalorder %s2918_s4, %s2913_s28 }
  0x1f   : > { %p2916_p12 = pnand %p2915_p11, %p2914_p2 }
  0x20   : > { %p2921_p7 = por %p2920_p3, %p2919_p0 }
  0x21   : > { %p2917_p13 = pneg %p2916_p12 }
  0x23   : > { %p2922_p9 = pnand %p2921_p7, %p2917_p13 }
  0x25   : > { %2925 = shalt.err (!%p2922_p9)
}
  0x26   : > { %2815 = dma.hbm_to_vmem [thread:$0]  (!%p3131_p10), %s165_s22, 128, %s167_s21, %s154_s25  }
  0x27   : > { %175 = sbr.rel (%p3095_p8) target bundleno = 1967 (0x7af), region = 32 }
  0x2c   : > { %2986 = dma.done.wait (%p84_p1), [#allocation5], 16  }
  0x2d   : > { %2988 = vsyncadd (%p84_p1), [#allocation5], 4294967280 }
  0x2e   : > { %2990 = dma.done.wait (%p84_p1), [#allocation7], 16  }
  0x2f   : > { %2992 = vsyncadd (%p84_p1), [#allocation7], 4294967280  ;;  %s3156_s7 = sand.u32 1, %s3007_s13  }
  0x30   : > { %s2684_s23 = sshll.u32 %s3156_s7, 3  ;;  %s188_s10 = scalar_lea.sflag [#allocation3], %s3156_s7 }
  0x31   : > { %s191_s11 = scalar_lea.vmem [#allocation8], %s2684_s23 }
  0x32   : > { %2994 = dma.done.wait (%p3082_p4), %s188_s10, 128  }
  0x33   : > { %2996 = vsyncadd (%p3082_p4), %s188_s10, 4294967168 }
  0x34   : > { %197 = sfence }
  0x35   : > { %v3166_v0 = vld [vmem:[%s191_s11] sm:$0xff]  ;;  %vm4388_vm0 = vcmask 1043456   ;;  %s3019_s18 = smov 51   ;;  %s2686_s17 = sld [smem:[#allocation2 + $0x7]]  ;;  %vm334_vm1 = vcmask 416768   ;;  %vm361_vm2 = vcmask 916480  }
  0x36   : > { %4401 = vst [vmem:[#allocation14_spill] sm:$0xff] %v3166_v0  ;;  %s2687_s20 = sld [smem:[#allocation2 + $0xe]]  ;;  %s3020_s21 = smov 112   ;;  %vm382_vm3 = vcmask 785408   ;;  %vm403_vm4 = vcmask 654336   ;;  %vm424_vm5 = vcmask 523264  }
  0x37   : > { %218 = vst [vmem:[#allocation1] ss:$2 sm:$0xff] %v3166_v0  ;;  %s2688_s22 = sld [smem:[#allocation2 + $0x15]]  ;;  %s3021_s24 = smov 96   ;;  %vm445_vm6 = vcmask 392192   ;;  %vm466_vm7 = vcmask 261120  }
  0x38   : > { %s2689_s25 = sld [smem:[#allocation2 + $0x1c]]  ;;  %s3022_s26 = smov 80   ;;  %vm626_vm8 = vcmask 1039360   ;;  %vm4394_vm9 = vcmask 1031168   ;;  %vm942_vm13 = vcmask 1022976   ;;  %vm4395_vm14 = vcmask 1014784  }
  0x39   : > { %s2690_s28 = sld [smem:[#allocation2 + $0x23]]  ;;  %s3023_s29 = smov 64   ;;  %vm1258_vm15 = vcmask 1006592  }
  0x3a   : > { %s2691_s30 = sld [smem:[#allocation2 + $0x2a]]  ;;  %s3024_s4 = smov 48  }
  0x3b   : > { %v348_v17 = vstv %s2686_s17  ;;  %s2693_s8 = sld [smem:[#allocation2 + $0x8]]  ;;  %s3025_s9 = smov 32  }
  0x3c   : > { %v369_v24 = vstv %s2687_s20  ;;  %s2694_s10 = sld [smem:[#allocation2 + $0xf]] }
  0x3d   : > { %v390_v28 = vstv %s2688_s22  ;;  %s2695_s11 = sld [smem:[#allocation2 + $0x16]] }
  0x3e   : > { %v219_v1 = vld.sshfl [vmem:[#allocation1] sm:$0xff pattern:$0x75316420]  ;;  %v220_v2 = vld.sshfl [vmem:[#allocation1 + $0x8] sm:$0xff pattern:$0x75316420]  ;;  %v411_v32 = vstv %s2689_s25 }
  0x3f   : > { %v224_v3 = vsel %vm4388_vm0, %v219_v1, -inf  ;;  %v231_v4 = vsel %vm4388_vm0, %v220_v2, -inf  ;;  %238 = vst [vmem:[#allocation1] ss:$2 sm:$0xff] %v3166_v0  ;;  %v432_v36 = vstv %s2690_s28  ;;  %s2696_s17 = sld [smem:[#allocation2 + $0x1d]] }
  0x40   : > { %v225_v5 = vrot.slane %v224_v3, 4  ;;  %v232_v6 = vrot.slane %v231_v4, 4  ;;  %v453_v40 = vstv %s2691_s30  ;;  %s2697_s20 = sld [smem:[#allocation2 + $0x24]] }
  0x41   : > { %v486_v44 = vstv %s2693_s8  ;;  %s2698_s22 = sld [smem:[#allocation2 + $0x2b]] }
  0x42   : > { %v226_v7 = vmax.f32 %v224_v3, %v225_v5  ;;  %v233_v8 = vmax.f32 %v231_v4, %v232_v6  ;;  %v508_v48 = vstv %s2694_s10  ;;  %s2700_s25 = sld [smem:[#allocation2 + $0x9]] }
  0x43   : > { %v530_v52 = vstv %s2695_s11  ;;  %s2701_s28 = sld [smem:[#allocation2 + $0x10]] }
  0x44   : > { %v227_v9 = vrot.slane %v226_v7, 2  ;;  %v234_v10 = vrot.slane %v233_v8, 2  ;;  %s2702_s30 = sld [smem:[#allocation2 + $0x17]] }
  0x45   : > { %v552_v56 = vstv %s2696_s17  ;;  %s2703_s8 = sld [smem:[#allocation2 + $0x1e]] }
  0x46   : > { %v228_v11 = vmax.f32 %v226_v7, %v227_v9  ;;  %v235_v13 = vmax.f32 %v233_v8, %v234_v10  ;;  %v574_v60 = vstv %s2697_s20  ;;  %s2704_s10 = sld [smem:[#allocation2 + $0x25]] }
  0x47   : > { %v596_v1 = vstv %s2698_s22  ;;  %s2705_s11 = sld [smem:[#allocation2 + $0x2c]] }
  0x48   : > { %v229_v12 = vrot.slane %v228_v11, 1  ;;  %v236_v15 = vrot.slane %v235_v13, 1  ;;  %v644_v5 = vstv %s2700_s25  ;;  %s2707_s17 = sld [smem:[#allocation2 + $0xa]] }
  0x49   : > { %v666_v10 = vstv %s2701_s28  ;;  %s2708_s20 = sld [smem:[#allocation2 + $0x11]] }
  0x4a   : > { %v230_v14 = vmax.f32 %v228_v11, %v229_v12  ;;  %v237_v16 = vmax.f32 %v235_v13, %v236_v15  ;;  %v688_v15 = vstv %s2702_s30  ;;  %s2709_s22 = sld [smem:[#allocation2 + $0x18]] }
  0x4b   : > { %s2710_s25 = sld [smem:[#allocation2 + $0x1f]] }
  0x4c   : > { %330 = vrot.lane.b32.xlu0 %v230_v14, %s3019_s18  ;;  %s2711_s28 = sld [smem:[#allocation2 + $0x26]] }
  0x4d   : > { %s2712_s30 = sld [smem:[#allocation2 + $0x2d]] }
  0x54   : > { %332 = vrot.lane.b32.xlu0 %v237_v16, %s3019_s18 }
  0xbe   : > { %v331_v18 = vpop.permute.xlu0 %330 }
  0xbf   : > { %v3175_v19 = vsel %vm334_vm1, 0.0, %v331_v18 }
  0xc0   : > { %v349_v20 = vmul.f32 %v348_v17, %v3175_v19  ;;  %v370_v29 = vmul.f32 %v369_v24, %v3175_v19  ;;  %v391_v33 = vmul.f32 %v390_v28, %v3175_v19  ;;  %v412_v37 = vmul.f32 %v411_v32, %v3175_v19 }
  0xc1   : > { %v433_v41 = vmul.f32 %v432_v36, %v3175_v19  ;;  %v454_v45 = vmul.f32 %v453_v40, %v3175_v19  ;;  %v487_v49 = vmul.f32 %v486_v44, %v3175_v19  ;;  %v509_v53 = vmul.f32 %v508_v48, %v3175_v19 }
  0xc2   : > { %355 = vrot.lane.b32.xlu1 %v349_v20, %s3020_s21  ;;  %v531_v57 = vmul.f32 %v530_v52, %v3175_v19  ;;  %v553_v61 = vmul.f32 %v552_v56, %v3175_v19  ;;  %v575_v2 = vmul.f32 %v574_v60, %v3175_v19  ;;  %v597_v6 = vmul.f32 %v596_v1, %v3175_v19 }
  0xc3   : > { %v645_v11 = vmul.f32 %v644_v5, %v3175_v19  ;;  %v667_v16 = vmul.f32 %v666_v10, %v3175_v19 }
  0xc6   : > { %v333_v21 = vpop.permute.xlu0 %332 }
  0xc7   : > { %v3180_v22 = vsel %vm334_vm1, %v331_v18, %v333_v21  ;;  %v3183_v23 = vsel %vm334_vm1, %v333_v21, 0.0 }
  0xc8   : > { %v351_v25 = vmul.f32 %v348_v17, %v3183_v23  ;;  %v371_v26 = vmul.f32 %v369_v24, %v3180_v22  ;;  %v350_v27 = vmul.f32 %v348_v17, %v3180_v22  ;;  %v392_v30 = vmul.f32 %v390_v28, %v3180_v22 }
  0xc9   : > { %v372_v31 = vmul.f32 %v369_v24, %v3183_v23  ;;  %v413_v34 = vmul.f32 %v411_v32, %v3180_v22  ;;  %v393_v35 = vmul.f32 %v390_v28, %v3183_v23  ;;  %v434_v38 = vmul.f32 %v432_v36, %v3180_v22 }
  0xca   : > { %359 = vrot.lane.b32.xlu2 %v351_v25, %s3020_s21  ;;  %378 = vrot.lane.b32.xlu0 %v371_v26, %s3021_s24  ;;  %v414_v39 = vmul.f32 %v411_v32, %v3183_v23  ;;  %v455_v42 = vmul.f32 %v453_v40, %v3180_v22  ;;  %v435_v43 = vmul.f32 %v432_v36, %v3183_v23  ;;  %v710_v24 = vstv %s2703_s8  ;;  %s2714_s8 = sld [smem:[#allocation2 + $0xb]] }
  0xcb   : > { %357 = vrot.lane.b32.xlu1 %v350_v27, %s3020_s21  ;;  %v488_v46 = vmul.f32 %v486_v44, %v3180_v22  ;;  %v456_v47 = vmul.f32 %v453_v40, %v3183_v23  ;;  %v510_v50 = vmul.f32 %v508_v48, %v3180_v22  ;;  %v489_v51 = vmul.f32 %v486_v44, %v3183_v23 }
  0xcc   : > { %v532_v54 = vmul.f32 %v530_v52, %v3180_v22  ;;  %v511_v55 = vmul.f32 %v508_v48, %v3183_v23  ;;  %v554_v58 = vmul.f32 %v552_v56, %v3180_v22  ;;  %v533_v59 = vmul.f32 %v530_v52, %v3183_v23 }
  0xcd   : > { %v576_v62 = vmul.f32 %v574_v60, %v3180_v22  ;;  %v555_v63 = vmul.f32 %v552_v56, %v3183_v23  ;;  %v598_v3 = vmul.f32 %v596_v1, %v3180_v22  ;;  %v577_v4 = vmul.f32 %v574_v60, %v3183_v23 }
  0xce   : > { %v646_v7 = vmul.f32 %v644_v5, %v3180_v22  ;;  %v599_v8 = vmul.f32 %v596_v1, %v3183_v23  ;;  %v668_v12 = vmul.f32 %v666_v10, %v3180_v22  ;;  %v647_v13 = vmul.f32 %v644_v5, %v3183_v23 }
  0xcf   : > { %v690_v17 = vmul.f32 %v688_v15, %v3180_v22  ;;  %v669_v18 = vmul.f32 %v666_v10, %v3183_v23  ;;  %v689_v25 = vmul.f32 %v688_v15, %v3175_v19  ;;  %v712_v26 = vmul.f32 %v710_v24, %v3180_v22 }
  0xd0   : > { %v691_v27 = vmul.f32 %v688_v15, %v3183_v23  ;;  %v711_v32 = vmul.f32 %v710_v24, %v3175_v19  ;;  %v824_v52 = vstv %s2708_s20  ;;  %s2718_s20 = sld [smem:[#allocation2 + $0x27]] }
  0xd1   : > { %v825_v60 = vmul.f32 %v824_v52, %v3175_v19 }
  0xd2   : > { %376 = vrot.lane.b32.xlu2 %v370_v29, %s3021_s24  ;;  %399 = vrot.lane.b32.xlu0 %v392_v30, %s3022_s26 }
  0xd3   : > { %380 = vrot.lane.b32.xlu1 %v372_v31, %s3021_s24  ;;  %v732_v31 = vstv %s2704_s10  ;;  %s2715_s10 = sld [smem:[#allocation2 + $0x12]] }
  0xda   : > { %397 = vrot.lane.b32.xlu2 %v391_v33, %s3022_s26  ;;  %420 = vrot.lane.b32.xlu0 %v413_v34, %s3023_s29  ;;  %v734_v33 = vmul.f32 %v732_v31, %v3180_v22  ;;  %v713_v34 = vmul.f32 %v710_v24, %v3183_v23  ;;  %v912_v24 = vstv %s2712_s30  ;;  %s3026_s30 = smov 127  }
  0xdb   : > { %401 = vrot.lane.b32.xlu1 %v393_v35, %s3022_s26 }
  0xe2   : > { %418 = vrot.lane.b32.xlu2 %v412_v37, %s3023_s29  ;;  %441 = vrot.lane.b32.xlu0 %v434_v38, %s3024_s4  ;;  %v754_v38 = vstv %s2705_s11  ;;  %s2716_s11 = sld [smem:[#allocation2 + $0x19]] }
  0xe3   : > { %422 = vrot.lane.b32.xlu1 %v414_v39, %s3023_s29  ;;  %v733_v39 = vmul.f32 %v732_v31, %v3175_v19  ;;  %v756_v40 = vmul.f32 %v754_v38, %v3180_v22  ;;  %v757_v48 = vmul.f32 %v754_v38, %v3183_v23 }
  0xea   : > { %439 = vrot.lane.b32.xlu2 %v433_v41, %s3024_s4  ;;  %462 = vrot.lane.b32.xlu0 %v455_v42, %s3025_s9  ;;  %v735_v41 = vmul.f32 %v732_v31, %v3183_v23 }
  0xeb   : > { %443 = vrot.lane.b32.xlu1 %v435_v43, %s3024_s4 }
  0xf2   : > { %460 = vrot.lane.b32.xlu2 %v454_v45, %s3025_s9  ;;  %495 = vrot.lane.b32.xlu0 %v488_v46, %s3020_s21  ;;  %v802_v45 = vstv %s2707_s17  ;;  %v755_v46 = vmul.f32 %v754_v38, %v3175_v19  ;;  %v913_v38 = vmul.f32 %v912_v24, %v3175_v19  ;;  %s2717_s17 = sld [smem:[#allocation2 + $0x20]] }
  0xf3   : > { %464 = vrot.lane.b32.xlu1 %v456_v47, %s3025_s9  ;;  %v804_v47 = vmul.f32 %v802_v45, %v3180_v22 }
  0xfa   : > { %493 = vrot.lane.b32.xlu2 %v487_v49, %s3020_s21  ;;  %517 = vrot.lane.b32.xlu0 %v510_v50, %s3021_s24 }
  0xfb   : > { %497 = vrot.lane.b32.xlu1 %v489_v51, %s3020_s21 }
 0x102   : > { %515 = vrot.lane.b32.xlu2 %v509_v53, %s3021_s24  ;;  %539 = vrot.lane.b32.xlu0 %v532_v54, %s3022_s26  ;;  %v803_v53 = vmul.f32 %v802_v45, %v3175_v19  ;;  %v826_v54 = vmul.f32 %v824_v52, %v3180_v22 }
 0x103   : > { %519 = vrot.lane.b32.xlu1 %v511_v55, %s3021_s24  ;;  %v805_v55 = vmul.f32 %v802_v45, %v3183_v23 }
 0x10a   : > { %537 = vrot.lane.b32.xlu2 %v531_v57, %s3022_s26  ;;  %561 = vrot.lane.b32.xlu0 %v554_v58, %s3023_s29 }
 0x10b   : > { %541 = vrot.lane.b32.xlu1 %v533_v59, %s3022_s26  ;;  %v846_v59 = vstv %s2709_s22  ;;  %s2692_s22 = sld [smem:[#allocation2 + $0x1]] }
 0x112   : > { %559 = vrot.lane.b32.xlu2 %v553_v61, %s3023_s29  ;;  %583 = vrot.lane.b32.xlu0 %v576_v62, %s3024_s4  ;;  %v848_v61 = vmul.f32 %v846_v59, %v3180_v22  ;;  %v827_v62 = vmul.f32 %v824_v52, %v3183_v23 }
 0x113   : > { %563 = vrot.lane.b32.xlu1 %v555_v63, %s3023_s29 }
 0x11a   : > { %581 = vrot.lane.b32.xlu2 %v575_v2, %s3024_s4  ;;  %605 = vrot.lane.b32.xlu0 %v598_v3, %s3025_s9  ;;  %v868_v3 = vstv %s2710_s25  ;;  %s2719_s25 = sld [smem:[#allocation2 + $0x2e]] }
 0x11b   : > { %585 = vrot.lane.b32.xlu1 %v577_v4, %s3024_s4  ;;  %v847_v4 = vmul.f32 %v846_v59, %v3175_v19  ;;  %v870_v5 = vmul.f32 %v868_v3, %v3180_v22  ;;  %v871_v15 = vmul.f32 %v868_v3, %v3183_v23 }
 0x122   : > { %603 = vrot.lane.b32.xlu2 %v597_v6, %s3025_s9  ;;  %653 = vrot.lane.b32.xlu0 %v646_v7, %s3020_s21  ;;  %v849_v6 = vmul.f32 %v846_v59, %v3183_v23 }
 0x123   : > { %607 = vrot.lane.b32.xlu1 %v599_v8, %s3025_s9 }
 0x124   : > { %v3257_v9 = vpop.permute.xlu2 %359 }
 0x12a   : > { %651 = vrot.lane.b32.xlu2 %v645_v11, %s3020_s21  ;;  %675 = vrot.lane.b32.xlu0 %v668_v12, %s3021_s24  ;;  %v890_v11 = vstv %s2711_s28  ;;  %v869_v12 = vmul.f32 %v868_v3, %v3175_v19  ;;  %s2699_s28 = sld [smem:[#allocation2 + $0x2]] }
 0x12b   : > { %655 = vrot.lane.b32.xlu1 %v647_v13, %s3020_s21  ;;  %v892_v13 = vmul.f32 %v890_v11, %v3180_v22 }
 0x12c   : > { %v3265_v14 = vpop.permute.xlu2 %376 }
 0x132   : > { %673 = vrot.lane.b32.xlu2 %v667_v16, %s3021_s24  ;;  %697 = vrot.lane.b32.xlu0 %v690_v17, %s3022_s26 }
 0x133   : > { %677 = vrot.lane.b32.xlu1 %v669_v18, %s3021_s24 }
 0x134   : > { %v3273_v20 = vpop.permute.xlu1 %355  ;;  %v3275_v21 = vpop.permute.xlu2 %397 }
 0x13a   : > { %695 = vrot.lane.b32.xlu2 %v689_v25, %s3022_s26  ;;  %719 = vrot.lane.b32.xlu0 %v712_v26, %s3023_s29  ;;  %v891_v25 = vmul.f32 %v890_v11, %v3175_v19  ;;  %v914_v26 = vmul.f32 %v912_v24, %v3180_v22 }
 0x13b   : > { %699 = vrot.lane.b32.xlu1 %v691_v27, %s3022_s26  ;;  %v893_v27 = vmul.f32 %v890_v11, %v3183_v23  ;;  %v1026_v11 = vstv %s2717_s17  ;;  %s2713_s17 = sld [smem:[#allocation2 + $0x4]] }
 0x13c   : > { %v3283_v28 = vpop.permute.xlu2 %418  ;;  %v3285_v29 = vpop.permute.xlu0 %378 }
 0x13d   : > { %v3287_v30 = vpop.permute.xlu1 %357 }
 0x142   : > { %717 = vrot.lane.b32.xlu2 %v711_v32, %s3023_s29  ;;  %741 = vrot.lane.b32.xlu0 %v734_v33, %s3024_s4 }
 0x143   : > { %721 = vrot.lane.b32.xlu1 %v713_v34, %s3023_s29  ;;  %v960_v34 = vstv %s2714_s8  ;;  %s3027_s8 = smov 126  }
 0x144   : > { %v3295_v35 = vpop.permute.xlu2 %439  ;;  %v3297_v36 = vpop.permute.xlu0 %399 }
 0x145   : > { %v3299_v37 = vpop.permute.xlu1 %380 }
 0x14a   : > { %739 = vrot.lane.b32.xlu2 %v733_v39, %s3024_s4  ;;  %763 = vrot.lane.b32.xlu0 %v756_v40, %s3025_s9  ;;  %v962_v39 = vmul.f32 %v960_v34, %v3180_v22  ;;  %v915_v40 = vmul.f32 %v912_v24, %v3183_v23 }
 0x14b   : > { %743 = vrot.lane.b32.xlu1 %v735_v41, %s3024_s4 }
 0x14c   : > { %v3307_v42 = vpop.permute.xlu2 %460  ;;  %v3309_v43 = vpop.permute.xlu0 %420 }
 0x14d   : > { %v3311_v44 = vpop.permute.xlu1 %401 }
 0x152   : > { %761 = vrot.lane.b32.xlu2 %v755_v46, %s3025_s9  ;;  %811 = vrot.lane.b32.xlu0 %v804_v47, %s3020_s21  ;;  %v982_v47 = vstv %s2715_s10  ;;  %s2706_s10 = sld [smem:[#allocation2 + $0x3]] }
 0x153   : > { %765 = vrot.lane.b32.xlu1 %v757_v48, %s3025_s9  ;;  %v961_v48 = vmul.f32 %v960_v34, %v3175_v19  ;;  %v984_v52 = vmul.f32 %v982_v47, %v3180_v22  ;;  %v985_v3 = vmul.f32 %v982_v47, %v3183_v23 }
 0x154   : > { %v3319_v49 = vpop.permute.xlu2 %493  ;;  %v3321_v50 = vpop.permute.xlu0 %441 }
 0x155   : > { %v3323_v51 = vpop.permute.xlu1 %422 }
 0x15a   : > { %809 = vrot.lane.b32.xlu2 %v803_v53, %s3020_s21  ;;  %833 = vrot.lane.b32.xlu0 %v826_v54, %s3021_s24  ;;  %v963_v53 = vmul.f32 %v960_v34, %v3183_v23  ;;  %v1027_v34 = vmul.f32 %v1026_v11, %v3175_v19 }
 0x15b   : > { %813 = vrot.lane.b32.xlu1 %v805_v55, %s3020_s21 }
 0x15c   : > { %v3331_v56 = vpop.permute.xlu2 %515  ;;  %v3333_v57 = vpop.permute.xlu0 %462 }
 0x15d   : > { %v3335_v58 = vpop.permute.xlu1 %443 }
 0x15e   : > { %4402 = vst [vmem:[#allocation15_spill] sm:$0xff] %v3335_v58 }
 0x162   : > { %831 = vrot.lane.b32.xlu2 %v825_v60, %s3021_s24  ;;  %855 = vrot.lane.b32.xlu0 %v848_v61, %s3022_s26  ;;  %v1004_v60 = vstv %s2716_s11  ;;  %v983_v61 = vmul.f32 %v982_v47, %v3175_v19  ;;  %s3028_s11 = smov 125  }
 0x163   : > { %835 = vrot.lane.b32.xlu1 %v827_v62, %s3021_s24  ;;  %v1006_v62 = vmul.f32 %v1004_v60, %v3180_v22 }
 0x164   : > { %v3343_v63 = vpop.permute.xlu2 %537  ;;  %v3345_v1 = vpop.permute.xlu0 %495 }
 0x165   : > { %v3347_v2 = vpop.permute.xlu1 %464 }
 0x166   : > { %4403 = vst [vmem:[#allocation16_spill] sm:$0xff] %v3347_v2 }
 0x16a   : > { %853 = vrot.lane.b32.xlu2 %v847_v4, %s3022_s26  ;;  %877 = vrot.lane.b32.xlu0 %v870_v5, %s3023_s29 }
 0x16b   : > { %857 = vrot.lane.b32.xlu1 %v849_v6, %s3022_s26 }
 0x16c   : > { %v3355_v7 = vpop.permute.xlu2 %559  ;;  %v3357_v8 = vpop.permute.xlu0 %517 }
 0x16d   : > { %v3359_v10 = vpop.permute.xlu1 %497 }
 0x16e   : > { %v500_v47 = vsel %vm361_vm2, %v3345_v1, %v3359_v10 }
 0x172   : > { %875 = vrot.lane.b32.xlu2 %v869_v12, %s3023_s29  ;;  %899 = vrot.lane.b32.xlu0 %v892_v13, %s3024_s4  ;;  %v1005_v12 = vmul.f32 %v1004_v60, %v3175_v19  ;;  %v1028_v13 = vmul.f32 %v1026_v11, %v3180_v22 }
 0x173   : > { %879 = vrot.lane.b32.xlu1 %v871_v15, %s3023_s29  ;;  %v1007_v15 = vmul.f32 %v1004_v60, %v3183_v23 }
 0x174   : > { %v3367_v16 = vpop.permute.xlu2 %581  ;;  %v3369_v17 = vpop.permute.xlu0 %539 }
 0x175   : > { %v3371_v18 = vpop.permute.xlu1 %519 }
 0x176   : > { %v522_v60 = vsel %vm382_vm3, %v3357_v8, %v3371_v18 }
 0x17a   : > { %897 = vrot.lane.b32.xlu2 %v891_v25, %s3024_s4  ;;  %921 = vrot.lane.b32.xlu0 %v914_v26, %s3025_s9 }
 0x17b   : > { %901 = vrot.lane.b32.xlu1 %v893_v27, %s3024_s4  ;;  %v1048_v27 = vstv %s2718_s20  ;;  %s2721_s20 = sld [smem:[#allocation2 + $0xc]] }
 0x17c   : > { %v3379_v31 = vpop.permute.xlu2 %603  ;;  %v3381_v32 = vpop.permute.xlu0 %561 }
 0x17d   : > { %v3383_v33 = vpop.permute.xlu1 %541 }
 0x182   : > { %919 = vrot.lane.b32.xlu2 %v913_v38, %s3025_s9  ;;  %969 = vrot.lane.b32.xlu0 %v962_v39, %s3020_s21  ;;  %v1050_v38 = vmul.f32 %v1048_v27, %v3180_v22  ;;  %v1029_v39 = vmul.f32 %v1026_v11, %v3183_v23  ;;  %v1070_v11 = vstv %s2719_s25  ;;  %s2722_s25 = sld [smem:[#allocation2 + $0x13]] }
 0x183   : > { %923 = vrot.lane.b32.xlu1 %v915_v40, %s3025_s9  ;;  %v478_v40 = vstv %s2692_s22  ;;  %v1071_v2 = vmul.f32 %v1070_v11, %v3175_v19  ;;  %s3029_s22 = smov 124  }
 0x184   : > { %v3391_v41 = vpop.permute.xlu2 %651  ;;  %v3393_v45 = vpop.permute.xlu0 %583 }
 0x185   : > { %v3395_v46 = vpop.permute.xlu1 %563 }
 0x18a   : > { %967 = vrot.lane.b32.xlu2 %v961_v48, %s3020_s21  ;;  %991 = vrot.lane.b32.xlu0 %v984_v52, %s3021_s24  ;;  %v480_v48 = vmul.f32 %v478_v40, %v3180_v22 }
 0x18b   : > { %971 = vrot.lane.b32.xlu1 %v963_v53, %s3020_s21 }
 0x18c   : > { %v3403_v54 = vpop.permute.xlu2 %673  ;;  %v3405_v55 = vpop.permute.xlu0 %605 }
 0x18d   : > { %v3407_v59 = vpop.permute.xlu1 %585 }
 0x192   : > { %989 = vrot.lane.b32.xlu2 %v983_v61, %s3021_s24  ;;  %1013 = vrot.lane.b32.xlu0 %v1006_v62, %s3022_s26  ;;  %v505_v62 = vadd.f32 %v500_v47, %v480_v48  ;;  %v499_v47 = vsel %vm361_vm2, %v3319_v49, %v3345_v1  ;;  %v588_v48 = vsel %vm445_vm6, %v3393_v45, %v3407_v59 }
 0x193   : > { %993 = vrot.lane.b32.xlu1 %v985_v3, %s3021_s24  ;;  %v544_v3 = vsel %vm403_vm4, %v3369_v17, %v3383_v33 }
 0x194   : > { %v3415_v4 = vpop.permute.xlu2 %695  ;;  %v3417_v5 = vpop.permute.xlu0 %653 }
 0x195   : > { %v3419_v6 = vpop.permute.xlu1 %607 }
 0x196   : > { %v610_v49 = vsel %vm466_vm7, %v3405_v55, %v3419_v6 }
 0x19a   : > { %1011 = vrot.lane.b32.xlu2 %v1005_v12, %s3022_s26  ;;  %1035 = vrot.lane.b32.xlu0 %v1028_v13, %s3023_s29  ;;  %v527_v12 = vadd.f32 %v522_v60, %v505_v62  ;;  %v1049_v13 = vmul.f32 %v1048_v27, %v3175_v19  ;;  %v479_v60 = vmul.f32 %v478_v40, %v3175_v19 }
 0x19b   : > { %1015 = vrot.lane.b32.xlu1 %v1007_v15, %s3022_s26  ;;  %v1072_v15 = vmul.f32 %v1070_v11, %v3180_v22 }
 0x19c   : > { %v3427_v24 = vpop.permute.xlu2 %717  ;;  %v3429_v25 = vpop.permute.xlu0 %675 }
 0x19d   : > { %v3431_v26 = vpop.permute.xlu1 %655 }
 0x1a2   : > { %1033 = vrot.lane.b32.xlu2 %v1027_v34, %s3023_s29  ;;  %1057 = vrot.lane.b32.xlu0 %v1050_v38, %s3024_s4  ;;  %v566_v34 = vsel %vm424_vm5, %v3381_v32, %v3395_v46  ;;  %v1051_v38 = vmul.f32 %v1048_v27, %v3183_v23 }
 0x1a3   : > { %1037 = vrot.lane.b32.xlu1 %v1029_v39, %s3023_s29  ;;  %v549_v39 = vadd.f32 %v544_v3, %v527_v12  ;;  %v521_v12 = vsel %vm382_vm3, %v3331_v56, %v3357_v8  ;;  %v565_v8 = vsel %vm424_vm5, %v3355_v7, %v3381_v32  ;;  %v609_v32 = vsel %vm466_vm7, %v3379_v31, %v3405_v55 }
 0x1a4   : > { %v3443_v52 = vpop.permute.xlu2 %739  ;;  %v3445_v53 = vpop.permute.xlu0 %697 }
 0x1a5   : > { %v3450_v61 = vpop.permute.xlu1 %677  ;;  %v571_v27 = vadd.f32 %v566_v34, %v549_v39  ;;  %v543_v34 = vsel %vm403_vm4, %v3343_v63, %v3369_v17 }
 0x1a7   : > { %v593_v0 = vadd.f32 %v588_v48, %v571_v27 }
 0x1a9   : > { %v615_v58 = vadd.f32 %v610_v49, %v593_v0  ;;  %v587_v0 = vsel %vm445_vm6, %v3367_v16, %v3393_v45  ;;  %v679_v16 = vsel %vm382_vm3, %v3403_v54, %v3429_v25  ;;  %v658_v54 = vsel %vm361_vm2, %v3417_v5, %v3431_v26 }
 0x1aa   : > { %1055 = vrot.lane.b32.xlu2 %v1049_v13, %s3024_s4  ;;  %1079 = vrot.lane.b32.xlu0 %v1072_v15, %s3025_s9  ;;  %v481_v13 = vmul.f32 %v478_v40, %v3183_v23  ;;  %v504_v15 = vadd.f32 %v499_v47, %v479_v60  ;;  %v636_v40 = vstv %s2699_s28  ;;  %v1073_v47 = vmul.f32 %v1070_v11, %v3183_v23  ;;  %s2723_s28 = sld [smem:[#allocation2 + $0x1a]] }
 0x1ab   : > { %1059 = vrot.lane.b32.xlu1 %v1051_v38, %s3024_s4  ;;  %v637_v17 = vmul.f32 %v636_v40, %v3175_v19  ;;  %v701_v60 = vsel %vm403_vm4, %v3415_v4, %v3445_v53  ;;  %v639_v55 = vmul.f32 %v636_v40, %v3183_v23 }
 0x1ac   : > { %v762_v62 = vpop.permute.xlu2 %761  ;;  %v720_v3 = vpop.permute.xlu0 %719  ;;  %v506_v38 = vadd.f32 %v3359_v10, %v481_v13  ;;  %v526_v39 = vadd.f32 %v521_v12, %v504_v15  ;;  %v657_v10 = vsel %vm361_vm2, %v3391_v41, %v3417_v5 }
 0x1ad   : > { %v700_v1 = vpop.permute.xlu1 %699  ;;  %v662_v45 = vadd.f32 %v657_v10, %v637_v17  ;;  %v723_v31 = vsel %vm424_vm5, %v3427_v24, %v720_v3  ;;  %v680_v24 = vsel %vm382_vm3, %v3429_v25, %v3450_v61 }
 0x1ae   : > { %v528_v56 = vadd.f32 %v3371_v18, %v506_v38  ;;  %v548_v48 = vadd.f32 %v543_v34, %v526_v39 }
 0x1af   : > { %v684_v27 = vadd.f32 %v679_v16, %v662_v45 }
 0x1b0   : > { %v550_v63 = vadd.f32 %v3383_v33, %v528_v56  ;;  %v570_v7 = vadd.f32 %v565_v8, %v548_v48 }
 0x1b1   : > { %v706_v13 = vadd.f32 %v701_v60, %v684_v27  ;;  %v794_v27 = vstv %s2706_s10  ;;  %s2724_s10 = sld [smem:[#allocation2 + $0x21]] }
 0x1b2   : > { %1077 = vrot.lane.b32.xlu2 %v1071_v2, %s3025_s9  ;;  %622 = vrot.lane.b32.xlu0 %v615_v58, %s3026_s30  ;;  %v572_v58 = vadd.f32 %v3395_v46, %v550_v63  ;;  %v592_v41 = vadd.f32 %v587_v0, %v570_v7 }
 0x1b3   : > { %1081 = vrot.lane.b32.xlu1 %v1073_v47, %s3025_s9  ;;  %v728_v49 = vadd.f32 %v723_v31, %v706_v13  ;;  %v795_v31 = vmul.f32 %v794_v27, %v3175_v19 }
 0x1b4   : > { %v3499_v18 = vpop.permute.xlu2 %809  ;;  %v742_v2 = vpop.permute.xlu0 %741  ;;  %v594_v11 = vadd.f32 %v3407_v59, %v572_v58  ;;  %v614_v12 = vadd.f32 %v609_v32, %v592_v41  ;;  %v638_v59 = vmul.f32 %v636_v40, %v3180_v22 }
 0x1b5   : > { %v722_v33 = vpop.permute.xlu1 %721  ;;  %v745_v4 = vsel %vm445_vm6, %v3443_v52, %v742_v2  ;;  %v702_v52 = vsel %vm403_vm4, %v3445_v53, %v700_v1 }
 0x1b6   : > { %v616_v46 = vadd.f32 %v3419_v6, %v594_v11  ;;  %v664_v6 = vadd.f32 %v3431_v26, %v639_v55  ;;  %v663_v5 = vadd.f32 %v658_v54, %v638_v59  ;;  %v750_v8 = vadd.f32 %v745_v4, %v728_v49 }
 0x1b7   : > { %v724_v26 = vsel %vm424_vm5, %v720_v3, %v722_v33 }
 0x1b8   : > { %v686_v56 = vadd.f32 %v3450_v61, %v664_v6  ;;  %v685_v40 = vadd.f32 %v680_v24, %v663_v5  ;;  %v797_v5 = vmul.f32 %v794_v27, %v3183_v23 }
 0x1ba   : > { %620 = vrot.lane.b32.xlu2 %v614_v12, %s3026_s30  ;;  %v708_v47 = vadd.f32 %v700_v1, %v686_v56  ;;  %v707_v63 = vadd.f32 %v702_v52, %v685_v40  ;;  %v796_v56 = vmul.f32 %v794_v27, %v3180_v22 }
 0x1bb   : > { %624 = vrot.lane.b32.xlu1 %v616_v46, %s3026_s30 }
 0x1bc   : > { %v832_v15 = vpop.permute.xlu2 %831  ;;  %v764_v38 = vpop.permute.xlu0 %763  ;;  %v730_v25 = vadd.f32 %v722_v33, %v708_v47 }
 0x1bd   : > { %v767_v34 = vsel %vm466_vm7, %v762_v62, %v764_v38  ;;  %v744_v39 = vpop.permute.xlu1 %743  ;;  %v729_v62 = vadd.f32 %v724_v26, %v707_v63 }
 0x1be   : > { %v772_v48 = vadd.f32 %v767_v34, %v750_v8  ;;  %v746_v0 = vsel %vm445_vm6, %v742_v2, %v744_v39  ;;  %v752_v10 = vadd.f32 %v744_v39, %v730_v25 }
 0x1bf   : > { %v751_v17 = vadd.f32 %v746_v0, %v729_v62 }
 0x1c2   : > { %778 = vrot.lane.b32.xlu2 %v772_v48, %s3027_s8 }
 0x1c4   : > { %v854_v7 = vpop.permute.xlu2 %853  ;;  %v812_v61 = vpop.permute.xlu0 %811 }
 0x1c5   : > { %v766_v58 = vpop.permute.xlu1 %765  ;;  %v815_v46 = vsel %vm361_vm2, %v3499_v18, %v812_v61 }
 0x1c6   : > { %v768_v53 = vsel %vm466_vm7, %v764_v38, %v766_v58  ;;  %v774_v32 = vadd.f32 %v766_v58, %v752_v10  ;;  %v820_v54 = vadd.f32 %v815_v46, %v795_v31 }
 0x1c7   : > { %v773_v1 = vadd.f32 %v768_v53, %v751_v17 }
 0x1c8   : > { %782 = vrot.lane.b32.xlu1 %v774_v32, %s3027_s8 }
 0x1c9   : > { %780 = vrot.lane.b32.xlu0 %v773_v1, %s3027_s8 }
 0x1cc   : > { %v876_v3 = vpop.permute.xlu2 %875  ;;  %v834_v16 = vpop.permute.xlu0 %833 }
 0x1cd   : > { %v814_v2 = vpop.permute.xlu1 %813  ;;  %v837_v55 = vsel %vm382_vm3, %v832_v15, %v834_v16 }
 0x1ce   : > { %v842_v6 = vadd.f32 %v837_v55, %v820_v54  ;;  %v816_v34 = vsel %vm361_vm2, %v812_v61, %v814_v2  ;;  %v822_v15 = vadd.f32 %v814_v2, %v797_v5 }
 0x1cf   : > { %v821_v47 = vadd.f32 %v816_v34, %v796_v56 }
 0x1d4   : > { %v856_v33 = vpop.permute.xlu0 %855  ;;  %v898_v45 = vpop.permute.xlu2 %897 }
 0x1d5   : > { %v836_v41 = vpop.permute.xlu1 %835  ;;  %v859_v59 = vsel %vm403_vm4, %v854_v7, %v856_v33 }
 0x1d6   : > { %v864_v49 = vadd.f32 %v859_v59, %v842_v6  ;;  %v838_v52 = vsel %vm382_vm3, %v834_v16, %v836_v41  ;;  %v844_v63 = vadd.f32 %v836_v41, %v822_v15 }
 0x1d7   : > { %v843_v62 = vadd.f32 %v838_v52, %v821_v47 }
 0x1dc   : > { %v878_v11 = vpop.permute.xlu0 %877  ;;  %v920_v12 = vpop.permute.xlu2 %919 }
 0x1dd   : > { %v858_v60 = vpop.permute.xlu1 %857  ;;  %v881_v24 = vsel %vm424_vm5, %v876_v3, %v878_v11 }
 0x1de   : > { %v886_v18 = vadd.f32 %v881_v24, %v864_v49  ;;  %v860_v25 = vsel %vm403_vm4, %v856_v33, %v858_v60  ;;  %v866_v10 = vadd.f32 %v858_v60, %v844_v63 }
 0x1df   : > { %v865_v61 = vadd.f32 %v860_v25, %v843_v62 }
 0x1e4   : > { %v900_v13 = vpop.permute.xlu0 %899  ;;  %v968_v39 = vpop.permute.xlu2 %967 }
 0x1e5   : > { %v880_v4 = vpop.permute.xlu1 %879  ;;  %v903_v38 = vsel %vm445_vm6, %v898_v45, %v900_v13 }
 0x1e6   : > { %v908_v8 = vadd.f32 %v903_v38, %v886_v18  ;;  %v882_v7 = vsel %vm424_vm5, %v878_v11, %v880_v4  ;;  %v888_v17 = vadd.f32 %v880_v4, %v866_v10 }
 0x1e7   : > { %v887_v53 = vadd.f32 %v882_v7, %v865_v61 }
 0x1ec   : > { %v922_v40 = vpop.permute.xlu0 %921  ;;  %v990_v32 = vpop.permute.xlu2 %989 }
 0x1ed   : > { %v925_v26 = vsel %vm466_vm7, %v920_v12, %v922_v40  ;;  %v902_v48 = vpop.permute.xlu1 %901 }
 0x1ee   : > { %v930_v0 = vadd.f32 %v925_v26, %v908_v8  ;;  %v904_v58 = vsel %vm445_vm6, %v900_v13, %v902_v48  ;;  %v910_v1 = vadd.f32 %v902_v48, %v888_v17  ;;  %v952_v13 = vstv %s2713_s17  ;;  %s2725_s17 = sld [smem:[#allocation2 + $0x28]] }
 0x1ef   : > { %v909_v16 = vadd.f32 %v904_v58, %v887_v53  ;;  %v953_v4 = vmul.f32 %v952_v13, %v3175_v19  ;;  %v955_v8 = vmul.f32 %v952_v13, %v3183_v23  ;;  %v954_v47 = vmul.f32 %v952_v13, %v3180_v22 }
 0x1f0   : > { %936 = vrot.lane.b32.xlu2 %v930_v0, %s3028_s11 }
 0x1f4   : > { %v970_v3 = vpop.permute.xlu0 %969  ;;  %v1012_v27 = vpop.permute.xlu2 %1011 }
 0x1f5   : > { %v924_v2 = vpop.permute.xlu1 %923  ;;  %v973_v59 = vsel %vm361_vm2, %v968_v39, %v970_v3 }
 0x1f6   : > { %v926_v33 = vsel %vm466_vm7, %v922_v40, %v924_v2  ;;  %v932_v41 = vadd.f32 %v924_v2, %v910_v1  ;;  %v978_v49 = vadd.f32 %v973_v59, %v953_v4  ;;  %v1162_v4 = vstv %s2723_s28  ;;  %s2728_s28 = sld [smem:[#allocation2 + $0xd]] }
 0x1f7   : > { %v931_v45 = vadd.f32 %v926_v33, %v909_v16 }
 0x1f8   : > { %940 = vrot.lane.b32.xlu1 %v932_v41, %s3028_s11  ;;  %v1118_v41 = vstv %s2721_s20  ;;  %s2726_s20 = sld [smem:[#allocation2 + $0x2f]] }
 0x1f9   : > { %938 = vrot.lane.b32.xlu0 %v931_v45, %s3028_s11  ;;  %v1120_v59 = vmul.f32 %v1118_v41, %v3180_v22 }
 0x1fc   : > { %v992_v11 = vpop.permute.xlu0 %991  ;;  %v1034_v31 = vpop.permute.xlu2 %1033 }
 0x1fd   : > { %v972_v60 = vpop.permute.xlu1 %971  ;;  %v995_v24 = vsel %vm382_vm3, %v990_v32, %v992_v11 }
 0x1fe   : > { %v1000_v18 = vadd.f32 %v995_v24, %v978_v49  ;;  %v974_v39 = vsel %vm361_vm2, %v970_v3, %v972_v60  ;;  %v980_v26 = vadd.f32 %v972_v60, %v955_v8  ;;  %v1163_v24 = vmul.f32 %v1162_v4, %v3175_v19 }
 0x1ff   : > { %v979_v62 = vadd.f32 %v974_v39, %v954_v47  ;;  %v1228_v39 = vstv %s2726_s20  ;;  %s2730_s20 = sld [smem:[#allocation2 + $0x1b]] }
 0x200   : > { %v1229_v47 = vmul.f32 %v1228_v39, %v3175_v19 }
 0x204   : > { %v1014_v12 = vpop.permute.xlu0 %1013  ;;  %v1056_v6 = vpop.permute.xlu2 %1055 }
 0x205   : > { %v994_v46 = vpop.permute.xlu1 %993  ;;  %v1017_v5 = vsel %vm403_vm4, %v1012_v27, %v1014_v12 }
 0x206   : > { %v1022_v15 = vadd.f32 %v1017_v5, %v1000_v18  ;;  %v996_v48 = vsel %vm382_vm3, %v992_v11, %v994_v46  ;;  %v1002_v61 = vadd.f32 %v994_v46, %v980_v26  ;;  %v1119_v46 = vmul.f32 %v1118_v41, %v3175_v19 }
 0x207   : > { %v1001_v53 = vadd.f32 %v996_v48, %v979_v62  ;;  %v1165_v5 = vmul.f32 %v1162_v4, %v3183_v23  ;;  %v1164_v18 = vmul.f32 %v1162_v4, %v3180_v22  ;;  %v1231_v48 = vmul.f32 %v1228_v39, %v3183_v23 }
 0x20c   : > { %v1036_v55 = vpop.permute.xlu0 %1035  ;;  %v1078_v63 = vpop.permute.xlu2 %1077 }
 0x20d   : > { %v1016_v54 = vpop.permute.xlu1 %1015  ;;  %v1039_v56 = vsel %vm424_vm5, %v1034_v31, %v1036_v55 }
 0x20e   : > { %v1044_v40 = vadd.f32 %v1039_v56, %v1022_v15  ;;  %v1018_v17 = vsel %vm403_vm4, %v1014_v12, %v1016_v54  ;;  %v1024_v32 = vadd.f32 %v1016_v54, %v1002_v61  ;;  %v1121_v54 = vmul.f32 %v1118_v41, %v3183_v23 }
 0x20f   : > { %v1023_v3 = vadd.f32 %v1018_v17, %v1001_v53  ;;  %v1206_v56 = vstv %s2725_s17  ;;  %s2729_s17 = sld [smem:[#allocation2 + $0x14]] }
 0x210   : > { %v1208_v26 = vmul.f32 %v1206_v56, %v3180_v22 }
 0x214   : > { %v1058_v38 = vpop.permute.xlu0 %1057 }
 0x215   : > { %v1038_v34 = vpop.permute.xlu1 %1037  ;;  %v1061_v52 = vsel %vm445_vm6, %v1056_v6, %v1058_v38 }
 0x216   : > { %v1066_v25 = vadd.f32 %v1061_v52, %v1044_v40  ;;  %v1040_v1 = vsel %vm424_vm5, %v1036_v55, %v1038_v34  ;;  %v1046_v16 = vadd.f32 %v1038_v34, %v1024_v32  ;;  %v1140_v55 = vstv %s2722_s25  ;;  %s2720_s25 = sld [smem:[#allocation2 + $0x5]] }
 0x217   : > { %v1045_v33 = vadd.f32 %v1040_v1, %v1023_v3  ;;  %v1141_v13 = vmul.f32 %v1140_v55, %v3175_v19  ;;  %v1143_v6 = vmul.f32 %v1140_v55, %v3183_v23  ;;  %v1142_v49 = vmul.f32 %v1140_v55, %v3180_v22 }
 0x218   : > { %v1207_v52 = vmul.f32 %v1206_v56, %v3175_v19  ;;  %v1209_v40 = vmul.f32 %v1206_v56, %v3183_v23 }
 0x21c   : > { %v1080_v0 = vpop.permute.xlu0 %1079 }
 0x21d   : > { %v1083_v10 = vsel %vm466_vm7, %v1078_v63, %v1080_v0  ;;  %v1060_v7 = vpop.permute.xlu1 %1059  ;;  %v1230_v63 = vmul.f32 %v1228_v39, %v3180_v22 }
 0x21e   : > { %v1088_v58 = vadd.f32 %v1083_v10, %v1066_v25  ;;  %v1062_v2 = vsel %vm445_vm6, %v1058_v38, %v1060_v7  ;;  %v1068_v45 = vadd.f32 %v1060_v7, %v1046_v16  ;;  %v1184_v38 = vstv %s2724_s10  ;;  %v3611_v25 = vpop.permute.xlu2 %620  ;;  %s3030_s10 = smov 123  }
 0x21f   : > { %v1067_v11 = vadd.f32 %v1062_v2, %v1045_v33  ;;  %v1185_v34 = vmul.f32 %v1184_v38, %v3175_v19  ;;  %v1187_v15 = vmul.f32 %v1184_v38, %v3183_v23  ;;  %v1186_v8 = vmul.f32 %v1184_v38, %v3180_v22 }
 0x220   : > { %1094 = vrot.lane.b32.xlu2 %v1088_v58, %s3029_s22 }
 0x224   : > { %v3617_v10 = vpop.permute.xlu0 %622 }
 0x225   : > { %v1082_v60 = vpop.permute.xlu1 %1081 }
 0x226   : > { %v1084_v27 = vsel %vm466_vm7, %v1080_v0, %v1082_v60  ;;  %v1090_v12 = vadd.f32 %v1082_v60, %v1068_v45  ;;  %v3613_v0 = vpop.permute.xlu2 %778 }
 0x227   : > { %v1089_v31 = vadd.f32 %v1084_v27, %v1067_v11 }
 0x228   : > { %1098 = vrot.lane.b32.xlu1 %v1090_v12, %s3029_s22  ;;  %1125 = vrot.lane.b32.xlu2 %v1119_v46, %s3020_s21 }
 0x229   : > { %1096 = vrot.lane.b32.xlu0 %v1089_v31, %s3029_s22 }
 0x22d   : > { %v3615_v62 = vpop.permute.xlu1 %624 }
 0x230   : > { %1129 = vrot.lane.b32.xlu1 %v1121_v54, %s3020_s21  ;;  %1147 = vrot.lane.b32.xlu2 %v1141_v13, %s3021_s24  ;;  %v1110_v54 = vstv %s2720_s25  ;;  %s2731_s25 = sld [smem:[#allocation2 + $0x22]] }
 0x231   : > { %1127 = vrot.lane.b32.xlu0 %v1120_v59, %s3020_s21  ;;  %v1113_v13 = vmul.f32 %v1110_v54, %v3183_v23  ;;  %v1112_v38 = vmul.f32 %v1110_v54, %v3180_v22 }
 0x238   : > { %1151 = vrot.lane.b32.xlu1 %v1143_v6, %s3021_s24  ;;  %1169 = vrot.lane.b32.xlu2 %v1163_v24, %s3022_s26 }
 0x239   : > { %1149 = vrot.lane.b32.xlu0 %v1142_v49, %s3021_s24  ;;  %v1111_v49 = vmul.f32 %v1110_v54, %v3175_v19 }
 0x23a   : > { %v3621_v61 = vpop.permute.xlu1 %782 }
 0x23b   : > { %v3623_v17 = vpop.permute.xlu0 %780 }
 0x240   : > { %1173 = vrot.lane.b32.xlu1 %v1165_v5, %s3022_s26  ;;  %1191 = vrot.lane.b32.xlu2 %v1185_v34, %s3023_s29 }
 0x241   : > { %1171 = vrot.lane.b32.xlu0 %v1164_v18, %s3022_s26 }
 0x248   : > { %1195 = vrot.lane.b32.xlu1 %v1187_v15, %s3023_s29  ;;  %1213 = vrot.lane.b32.xlu2 %v1207_v52, %s3024_s4 }
 0x249   : > { %1193 = vrot.lane.b32.xlu0 %v1186_v8, %s3023_s29 }
 0x24a   : > { %v3619_v7 = vpop.permute.xlu2 %936 }
 0x250   : > { %1217 = vrot.lane.b32.xlu1 %v1209_v40, %s3024_s4  ;;  %1235 = vrot.lane.b32.xlu2 %v1229_v47, %s3025_s9 }
 0x251   : > { %1215 = vrot.lane.b32.xlu0 %v1208_v26, %s3024_s4 }
 0x258   : > { %1239 = vrot.lane.b32.xlu1 %v1231_v48, %s3025_s9 }
 0x259   : > { %1237 = vrot.lane.b32.xlu0 %v1230_v63, %s3025_s9 }
 0x26a   : > { %v3627_v53 = vpop.permute.xlu1 %940 }
 0x26b   : > { %4404 = vst [vmem:[#allocation17_spill] sm:$0xff] %v3627_v53  ;;  %v3629_v32 = vpop.permute.xlu0 %938 }
 0x27a   : > { %v3625_v58 = vpop.permute.xlu2 %1094 }
 0x282   : > { %v1126_v1 = vpop.permute.xlu2 %1125 }
 0x28a   : > { %v1148_v33 = vpop.permute.xlu2 %1147 }
 0x292   : > { %v1170_v60 = vpop.permute.xlu2 %1169 }
 0x29a   : > { %v3631_v3 = vpop.permute.xlu1 %1098  ;;  %v1192_v46 = vpop.permute.xlu2 %1191 }
 0x29b   : > { %4405 = vst [vmem:[#allocation18_spill] sm:$0xff] %v3631_v3  ;;  %v3633_v16 = vpop.permute.xlu0 %1096 }
 0x2a2   : > { %v1130_v2 = vpop.permute.xlu1 %1129  ;;  %v1214_v24 = vpop.permute.xlu2 %1213 }
 0x2a3   : > { %v1128_v41 = vpop.permute.xlu0 %1127  ;;  %v1138_v6 = vadd.f32 %v1130_v2, %v1113_v13 }
 0x2a4   : > { %v1131_v59 = vsel %vm361_vm2, %v1126_v1, %v1128_v41  ;;  %v1132_v4 = vsel %vm361_vm2, %v1128_v41, %v1130_v2 }
 0x2a5   : > { %v1136_v56 = vadd.f32 %v1131_v59, %v1111_v49  ;;  %v1137_v15 = vadd.f32 %v1132_v4, %v1112_v38  ;;  %v1276_v38 = vstv %s2728_s28  ;;  %s2732_s28 = sld [smem:[#allocation2 + $0x29]] }
 0x2aa   : > { %v1152_v45 = vpop.permute.xlu1 %1151 }
 0x2ab   : > { %v1150_v11 = vpop.permute.xlu0 %1149  ;;  %v1160_v52 = vadd.f32 %v1152_v45, %v1138_v6 }
 0x2ac   : > { %v1153_v5 = vsel %vm382_vm3, %v1148_v33, %v1150_v11  ;;  %v1154_v34 = vsel %vm382_vm3, %v1150_v11, %v1152_v45 }
 0x2ad   : > { %v1158_v47 = vadd.f32 %v1153_v5, %v1136_v56  ;;  %v1159_v26 = vadd.f32 %v1154_v34, %v1137_v15  ;;  %v1279_v5 = vmul.f32 %v1276_v38, %v3183_v23  ;;  %v1277_v34 = vmul.f32 %v1276_v38, %v3175_v19 }
 0x2ae   : > { %v1298_v56 = vstv %s2729_s17  ;;  %s2733_s17 = sld [smem:[#allocation2 + $0x30]] }
 0x2af   : > { %v1301_v15 = vmul.f32 %v1298_v56, %v3183_v23 }
 0x2b2   : > { %v1174_v27 = vpop.permute.xlu1 %1173 }
 0x2b3   : > { %v1172_v12 = vpop.permute.xlu0 %1171  ;;  %v1182_v48 = vadd.f32 %v1174_v27, %v1160_v52  ;;  %v1299_v52 = vmul.f32 %v1298_v56, %v3175_v19 }
 0x2b4   : > { %v1175_v39 = vsel %vm403_vm4, %v1170_v60, %v1172_v12  ;;  %v1176_v40 = vsel %vm403_vm4, %v1172_v12, %v1174_v27  ;;  %v1236_v12 = vpop.permute.xlu2 %1235 }
 0x2b5   : > { %v1180_v2 = vadd.f32 %v1175_v39, %v1158_v47  ;;  %v1181_v33 = vadd.f32 %v1176_v40, %v1159_v26  ;;  %v1320_v39 = vstv %s2730_s20  ;;  %s2727_s20 = sld [smem:[#allocation2 + $0x6]] }
 0x2b6   : > { %v1323_v40 = vmul.f32 %v1320_v39, %v3183_v23  ;;  %v1321_v47 = vmul.f32 %v1320_v39, %v3175_v19  ;;  %v1322_v26 = vmul.f32 %v1320_v39, %v3180_v22 }
 0x2ba   : > { %v1196_v31 = vpop.permute.xlu1 %1195 }
 0x2bb   : > { %v1194_v55 = vpop.permute.xlu0 %1193  ;;  %v1204_v41 = vadd.f32 %v1196_v31, %v1182_v48  ;;  %v1342_v48 = vstv %s2731_s25  ;;  %s3031_s25 = smov 122  }
 0x2bc   : > { %v1197_v63 = vsel %vm424_vm5, %v1192_v46, %v1194_v55  ;;  %v1198_v1 = vsel %vm424_vm5, %v1194_v55, %v1196_v31 }
 0x2bd   : > { %v1202_v45 = vadd.f32 %v1197_v63, %v1180_v2  ;;  %v1203_v13 = vadd.f32 %v1198_v1, %v1181_v33  ;;  %v1345_v63 = vmul.f32 %v1342_v48, %v3183_v23  ;;  %v1343_v1 = vmul.f32 %v1342_v48, %v3175_v19 }
 0x2be   : > { %v1344_v2 = vmul.f32 %v1342_v48, %v3180_v22  ;;  %v1364_v33 = vstv %s2732_s28  ;;  %v1268_v48 = vstv %s2727_s20  ;;  %s2735_s28 = sld [smem:[#allocation2 + $0x38]] }
 0x2bf   : > { %s2737_s20 = sld [smem:[#allocation2 + $0x46]] }
 0x2c2   : > { %v1218_v18 = vpop.permute.xlu1 %1217 }
 0x2c3   : > { %v1216_v8 = vpop.permute.xlu0 %1215  ;;  %v1226_v59 = vadd.f32 %v1218_v18, %v1204_v41  ;;  %v1367_v41 = vmul.f32 %v1364_v33, %v3183_v23 }
 0x2c4   : > { %v1219_v11 = vsel %vm445_vm6, %v1214_v24, %v1216_v8  ;;  %v1220_v54 = vsel %vm445_vm6, %v1216_v8, %v1218_v18  ;;  %v1278_v18 = vmul.f32 %v1276_v38, %v3180_v22  ;;  %v1300_v8 = vmul.f32 %v1298_v56, %v3180_v22 }
 0x2c5   : > { %v1224_v4 = vadd.f32 %v1219_v11, %v1202_v45  ;;  %v1225_v6 = vadd.f32 %v1220_v54, %v1203_v13  ;;  %v1365_v11 = vmul.f32 %v1364_v33, %v3175_v19  ;;  %v1366_v54 = vmul.f32 %v1364_v33, %v3180_v22 }
 0x2c6   : > { %v1386_v45 = vstv %s2733_s17  ;;  %s2736_s17 = sld [smem:[#allocation2 + $0x3f]] }
 0x2c7   : > { %v1389_v13 = vmul.f32 %v1386_v45, %v3183_v23 }
 0x2ca   : > { %v1240_v60 = vpop.permute.xlu1 %1239 }
 0x2cb   : > { %v1248_v27 = vadd.f32 %v1240_v60, %v1226_v59  ;;  %v1238_v49 = vpop.permute.xlu0 %1237  ;;  %v1387_v59 = vmul.f32 %v1386_v45, %v3175_v19 }
 0x2cc   : > { %v1241_v46 = vsel %vm466_vm7, %v1236_v12, %v1238_v49  ;;  %v1242_v55 = vsel %vm466_vm7, %v1238_v49, %v1240_v60  ;;  %v1388_v60 = vmul.f32 %v1386_v45, %v3180_v22  ;;  %v1270_v45 = vmul.f32 %v1268_v48, %v3180_v22 }
 0x2cd   : > { %1256 = vrot.lane.b32.xlu1 %v1248_v27, %s3030_s10  ;;  %v1246_v31 = vadd.f32 %v1241_v46, %v1224_v4  ;;  %v1247_v24 = vadd.f32 %v1242_v55, %v1225_v6 }
 0x2cf   : > { %1252 = vrot.lane.b32.xlu2 %v1246_v31, %s3030_s10  ;;  %1254 = vrot.lane.b32.xlu0 %v1247_v24, %s3030_s10 }
 0x2d5   : > { %1287 = vrot.lane.b32.xlu1 %v1279_v5, %s3020_s21 }
 0x2d7   : > { %1283 = vrot.lane.b32.xlu2 %v1277_v34, %s3020_s21  ;;  %1285 = vrot.lane.b32.xlu0 %v1278_v18, %s3020_s21  ;;  %v240_v18 = vld.sshfl [vmem:[#allocation1 + $0x8] sm:$0xff pattern:$0x75316420] }
 0x2dd   : > { %1309 = vrot.lane.b32.xlu1 %v1301_v15, %s3021_s24  ;;  %v239_v15 = vld.sshfl [vmem:[#allocation1] sm:$0xff pattern:$0x75316420] }
 0x2df   : > { %1305 = vrot.lane.b32.xlu2 %v1299_v52, %s3021_s24  ;;  %1307 = vrot.lane.b32.xlu0 %v1300_v8, %s3021_s24  ;;  %v250_v52 = vsel %vm4388_vm0, %v240_v18, 0.0  ;;  %v243_v8 = vsel %vm4388_vm0, %v239_v15, 0.0  ;;  %vm1416_vm0 = vcmask 998400  }
 0x2e5   : > { %1331 = vrot.lane.b32.xlu1 %v1323_v40, %s3022_s26 }
 0x2e7   : > { %1327 = vrot.lane.b32.xlu2 %v1321_v47, %s3022_s26  ;;  %1329 = vrot.lane.b32.xlu0 %v1322_v26, %s3022_s26  ;;  %v251_v47 = vrot.slane %v250_v52, 4  ;;  %v244_v26 = vrot.slane %v243_v8, 4 }
 0x2ed   : > { %1353 = vrot.lane.b32.xlu1 %v1345_v63, %s3023_s29  ;;  %v1271_v63 = vmul.f32 %v1268_v48, %v3183_v23 }
 0x2ef   : > { %1349 = vrot.lane.b32.xlu2 %v1343_v1, %s3023_s29  ;;  %1351 = vrot.lane.b32.xlu0 %v1344_v2, %s3023_s29  ;;  %v252_v1 = vadd.f32 %v251_v47, %v250_v52  ;;  %v245_v2 = vadd.f32 %v244_v26, %v243_v8 }
 0x2f1   : > { %v253_v8 = vrot.slane %v252_v1, 2  ;;  %v246_v47 = vrot.slane %v245_v2, 2 }
 0x2f5   : > { %1375 = vrot.lane.b32.xlu1 %v1367_v41, %s3024_s4 }
 0x2f7   : > { %1371 = vrot.lane.b32.xlu2 %v1365_v11, %s3024_s4  ;;  %1373 = vrot.lane.b32.xlu0 %v1366_v54, %s3024_s4  ;;  %v1269_v54 = vmul.f32 %v1268_v48, %v3175_v19 }
 0x2fd   : > { %1397 = vrot.lane.b32.xlu1 %v1389_v13, %s3025_s9 }
 0x2ff   : > { %1393 = vrot.lane.b32.xlu2 %v1387_v59, %s3025_s9  ;;  %1395 = vrot.lane.b32.xlu0 %v1388_v60, %s3025_s9 }
 0x329   : > { %v3689_v12 = vpop.permute.xlu2 %1252 }
 0x331   : > { %v1284_v4 = vpop.permute.xlu2 %1283 }
 0x339   : > { %v1306_v46 = vpop.permute.xlu2 %1305 }
 0x33f   : > { %v3691_v6 = vpop.permute.xlu1 %1256 }
 0x340   : > { %4406 = vst [vmem:[#allocation19_spill] sm:$0xff] %v3691_v6 }
 0x341   : > { %v3693_v27 = vpop.permute.xlu0 %1254  ;;  %v1328_v38 = vpop.permute.xlu2 %1327 }
 0x347   : > { %v1288_v49 = vpop.permute.xlu1 %1287 }
 0x348   : > { %v1296_v33 = vadd.f32 %v1288_v49, %v1271_v63 }
 0x349   : > { %v1286_v55 = vpop.permute.xlu0 %1285  ;;  %v1350_v56 = vpop.permute.xlu2 %1349 }
 0x34a   : > { %v1289_v41 = vsel %vm361_vm2, %v1284_v4, %v1286_v55  ;;  %v1290_v11 = vsel %vm361_vm2, %v1286_v55, %v1288_v49 }
 0x34b   : > { %v1294_v6 = vadd.f32 %v1289_v41, %v1269_v54  ;;  %v1295_v23 = vadd.f32 %v1290_v11, %v1270_v45 }
 0x34f   : > { %v1310_v31 = vpop.permute.xlu1 %1309 }
 0x350   : > { %v1318_v60 = vadd.f32 %v1310_v31, %v1296_v33 }
 0x351   : > { %v1308_v24 = vpop.permute.xlu0 %1307  ;;  %v1372_v13 = vpop.permute.xlu2 %1371 }
 0x352   : > { %v1311_v18 = vsel %vm382_vm3, %v1306_v46, %v1308_v24  ;;  %v1312_v15 = vsel %vm382_vm3, %v1308_v24, %v1310_v31  ;;  %v254_v31 = vadd.f32 %v253_v8, %v252_v1  ;;  %v247_v24 = vadd.f32 %v246_v47, %v245_v2 }
 0x353   : > { %v1316_v55 = vadd.f32 %v1311_v18, %v1294_v6  ;;  %v1317_v63 = vadd.f32 %v1312_v15, %v1295_v23  ;;  %v1444_v8 = vstv %s2735_s28  ;;  %s2739_s28 = sld [smem:[#allocation2 + $0x54]] }
 0x354   : > { %v248_v23 = vrot.slane %v247_v24, 1 }
 0x357   : > { %v1332_v5 = vpop.permute.xlu1 %1331 }
 0x358   : > { %v1340_v26 = vadd.f32 %v1332_v5, %v1318_v60 }
 0x359   : > { %v1330_v34 = vpop.permute.xlu0 %1329  ;;  %v1394_v6 = vpop.permute.xlu2 %1393 }
 0x35a   : > { %v1333_v4 = vsel %vm403_vm4, %v1328_v38, %v1330_v34  ;;  %v1334_v49 = vsel %vm403_vm4, %v1330_v34, %v1332_v5 }
 0x35b   : > { %v1338_v46 = vadd.f32 %v1333_v4, %v1316_v55  ;;  %v1339_v3 = vadd.f32 %v1334_v49, %v1317_v63  ;;  %v1464_v49 = vstv %s2736_s17  ;;  %v1484_v63 = vstv %s2737_s20  ;;  %s2740_s17 = sld [smem:[#allocation2 + $0x5b]] }
 0x35c   : > { %s2742_s20 = sld [smem:[#allocation2 + $0x39]] }
 0x35f   : > { %v1354_v39 = vpop.permute.xlu1 %1353 }
 0x360   : > { %v1362_v48 = vadd.f32 %v1354_v39, %v1340_v26 }
 0x361   : > { %v1352_v40 = vpop.permute.xlu0 %1351 }
 0x362   : > { %v1355_v53 = vsel %vm424_vm5, %v1350_v56, %v1352_v40  ;;  %v1356_v33 = vsel %vm424_vm5, %v1352_v40, %v1354_v39  ;;  %v255_v56 = vrot.slane %v254_v31, 1 }
 0x363   : > { %v1360_v45 = vadd.f32 %v1355_v53, %v1338_v46  ;;  %v1361_v38 = vadd.f32 %v1356_v33, %v1339_v3  ;;  %v249_v3 = vadd.f32 %v248_v23, %v247_v24  ;;  %v1576_v23 = vstv %s2742_s20  ;;  %s2746_s20 = sld [smem:[#allocation2 + $0x55]] }
 0x364   : > { %v256_v53 = vadd.f32 %v255_v56, %v254_v31 }
 0x367   : > { %v1376_v59 = vpop.permute.xlu1 %1375 }
 0x368   : > { %v1384_v41 = vadd.f32 %v1376_v59, %v1362_v48 }
 0x369   : > { %v1374_v52 = vpop.permute.xlu0 %1373 }
 0x36a   : > { %v1377_v11 = vsel %vm445_vm6, %v1372_v13, %v1374_v52  ;;  %v1378_v54 = vsel %vm445_vm6, %v1374_v52, %v1376_v59  ;;  %v258_v13 = vmul.f32 0.25, %v256_v53  ;;  %v257_v59 = vmul.f32 0.25, %v249_v3 }
 0x36b   : > { %v1382_v34 = vadd.f32 %v1377_v11, %v1360_v45  ;;  %v1383_v18 = vadd.f32 %v1378_v54, %v1361_v38  ;;  %v1524_v38 = vstv %s2739_s28  ;;  %s2744_s28 = sld [smem:[#allocation2 + $0x47]] }
 0x36f   : > { %v1398_v60 = vpop.permute.xlu1 %1397 }
 0x370   : > { %v1406_v5 = vadd.f32 %v1398_v60, %v1384_v41 }
 0x371   : > { %v1396_v15 = vpop.permute.xlu0 %1395 }
 0x372   : > { %v1399_v39 = vsel %vm466_vm7, %v1394_v6, %v1396_v15  ;;  %v1400_v40 = vsel %vm466_vm7, %v1396_v15, %v1398_v60  ;;  %1414 = vrot.lane.b32.xlu1 %v1406_v5, %s3031_s25 }
 0x373   : > { %v1405_v1 = vadd.f32 %v1400_v40, %v1383_v18  ;;  %v1404_v2 = vadd.f32 %v1399_v39, %v1382_v34  ;;  %v1544_v34 = vstv %s2740_s17  ;;  %s2745_s17 = sld [smem:[#allocation2 + $0x4e]] }
 0x375   : > { %1412 = vrot.lane.b32.xlu0 %v1405_v1, %s3031_s25  ;;  %1410 = vrot.lane.b32.xlu2 %v1404_v2, %s3031_s25 }
 0x37d   : > { %1429 = vrot.lane.b32.xlu0 %v258_v13, %s3019_s18  ;;  %1427 = vrot.lane.b32.xlu2 %v257_v59, %s3019_s18  ;;  %s2738_s18 = sld [smem:[#allocation2 + $0x4d]]  ;;  %v1620_v59 = vstv %s2744_s28 }
 0x37e   : > { %s2734_s28 = sld [smem:[#allocation2 + $0x31]] }
 0x383   : > { %v1504_v46 = vstv %s2738_s18  ;;  %s2743_s18 = sld [smem:[#allocation2 + $0x40]] }
 0x389   : > { %v1598_v2 = vstv %s2743_s18  ;;  %s2747_s18 = sld [smem:[#allocation2 + $0x5c]] }
 0x3cf   : > { %v3717_v52 = vpop.permute.xlu2 %1410 }
 0x3d7   : > { %v1428_v47 = vpop.permute.xlu2 %1427 }
 0x3d8   : > { %v3720_v26 = vsel %vm334_vm1, 0.0, %v1428_v47 }
 0x3d9   : > { %v1445_v4 = vmul.f32 %v1444_v8, %v3720_v26  ;;  %v1465_v55 = vmul.f32 %v1464_v49, %v3720_v26  ;;  %v1485_v33 = vmul.f32 %v1484_v63, %v3720_v26  ;;  %v1505_v54 = vmul.f32 %v1504_v46, %v3720_v26 }
 0x3da   : > { %v1525_v5 = vmul.f32 %v1524_v38, %v3720_v26  ;;  %v1545_v15 = vmul.f32 %v1544_v34, %v3720_v26  ;;  %v1577_v40 = vmul.f32 %v1576_v23, %v3720_v26  ;;  %v1599_v3 = vmul.f32 %v1598_v2, %v3720_v26 }
 0x3db   : > { %1451 = vrot.lane.b32.xlu1 %v1445_v4, %s3020_s21 }
 0x3e3   : > { %1471 = vrot.lane.b32.xlu1 %v1465_v55, %s3021_s24 }
 0x3e7   : > { %v3726_v48 = vpop.permute.xlu0 %1412 }
 0x3eb   : > { %1491 = vrot.lane.b32.xlu1 %v1485_v33, %s3022_s26 }
 0x3ef   : > { %v1430_v31 = vpop.permute.xlu0 %1429 }
 0x3f0   : > { %v3731_v24 = vsel %vm334_vm1, %v1428_v47, %v1430_v31  ;;  %v3734_v41 = vsel %vm334_vm1, %v1430_v31, 0.0  ;;  %v1621_v47 = vmul.f32 %v1620_v59, %v3720_v26 }
 0x3f1   : > { %v1447_v11 = vmul.f32 %v1444_v8, %v3734_v41  ;;  %v1446_v45 = vmul.f32 %v1444_v8, %v3731_v24  ;;  %v1467_v60 = vmul.f32 %v1464_v49, %v3734_v41  ;;  %v1466_v6 = vmul.f32 %v1464_v49, %v3731_v24 }
 0x3f2   : > { %v1487_v18 = vmul.f32 %v1484_v63, %v3734_v41  ;;  %v1486_v56 = vmul.f32 %v1484_v63, %v3731_v24  ;;  %v1507_v39 = vmul.f32 %v1504_v46, %v3734_v41  ;;  %v1506_v1 = vmul.f32 %v1504_v46, %v3731_v24 }
 0x3f3   : > { %1455 = vrot.lane.b32.xlu0 %v1447_v11, %s3020_s21  ;;  %1511 = vrot.lane.b32.xlu1 %v1505_v54, %s3023_s29  ;;  %v1527_v53 = vmul.f32 %v1524_v38, %v3734_v41  ;;  %v1526_v13 = vmul.f32 %v1524_v38, %v3731_v24  ;;  %v1547_v8 = vmul.f32 %v1544_v34, %v3734_v41  ;;  %v1642_v49 = vstv %s2745_s17  ;;  %s3805_s17 = sld [smem:[#allocation2]] }
 0x3f4   : > { %1453 = vrot.lane.b32.xlu2 %v1446_v45, %s3020_s21  ;;  %v1546_v4 = vmul.f32 %v1544_v34, %v3731_v24  ;;  %v1579_v55 = vmul.f32 %v1576_v23, %v3734_v41  ;;  %v1643_v63 = vmul.f32 %v1642_v49, %v3720_v26  ;;  %v1578_v33 = vmul.f32 %v1576_v23, %v3731_v24 }
 0x3f5   : > { %v1664_v46 = vstv %s2746_s20  ;;  %v1601_v31 = vmul.f32 %v1598_v2, %v3734_v41  ;;  %v1600_v54 = vmul.f32 %v1598_v2, %v3731_v24  ;;  %v1686_v45 = vstv %s2747_s18  ;;  %s2741_s20 = sld [smem:[#allocation2 + $0x32]] }
 0x3f6   : > { %v1665_v11 = vmul.f32 %v1664_v46, %v3720_v26  ;;  %v1623_v38 = vmul.f32 %v1620_v59, %v3734_v41  ;;  %v1644_v34 = vmul.f32 %v1642_v49, %v3731_v24  ;;  %v1689_v23 = vmul.f32 %v1686_v45, %v3734_v41  ;;  %s2749_s18 = sld [smem:[#allocation2 + $0x3a]] }
 0x3fb   : > { %1475 = vrot.lane.b32.xlu0 %v1467_v60, %s3021_s24  ;;  %1531 = vrot.lane.b32.xlu1 %v1525_v5, %s3024_s4  ;;  %v1687_v60 = vmul.f32 %v1686_v45, %v3720_v26  ;;  %v1622_v5 = vmul.f32 %v1620_v59, %v3731_v24 }
 0x3fc   : > { %1473 = vrot.lane.b32.xlu2 %v1466_v6, %s3021_s24  ;;  %v1645_v6 = vmul.f32 %v1642_v49, %v3734_v41  ;;  %v342_v49 = vstv %s3805_s17  ;;  %s2751_s17 = sld [smem:[#allocation2 + $0x48]] }
 0x403   : > { %1495 = vrot.lane.b32.xlu0 %v1487_v18, %s3022_s26  ;;  %1551 = vrot.lane.b32.xlu1 %v1545_v15, %s3025_s9  ;;  %v1667_v18 = vmul.f32 %v1664_v46, %v3734_v41  ;;  %v1666_v15 = vmul.f32 %v1664_v46, %v3731_v24  ;;  %v343_v46 = vmul.f32 %v342_v49, %v3175_v19 }
 0x404   : > { %1493 = vrot.lane.b32.xlu2 %v1486_v56, %s3022_s26  ;;  %v3798_v56 = vpop.permute.xlu1 %1414  ;;  %v425_v19 = vsel %vm424_vm5, %v3283_v28, %v3309_v43  ;;  %v467_v28 = vsel %vm466_vm7, %v3307_v42, %v3333_v57 }
 0x40b   : > { %1515 = vrot.lane.b32.xlu0 %v1507_v39, %s3023_s29  ;;  %1583 = vrot.lane.b32.xlu1 %v1577_v40, %s3020_s21  ;;  %v1688_v39 = vmul.f32 %v1686_v45, %v3731_v24  ;;  %v259_v45 = vlaneseq }
 0x40c   : > { %1513 = vrot.lane.b32.xlu2 %v1506_v1, %s3023_s29 }
 0x413   : > { %1535 = vrot.lane.b32.xlu0 %v1527_v53, %s3024_s4  ;;  %1605 = vrot.lane.b32.xlu1 %v1599_v3, %s3021_s24  ;;  %v1438_v53 = vstv %s2734_s28  ;;  %s2750_s28 = sld [smem:[#allocation2 + $0x41]] }
 0x414   : > { %1533 = vrot.lane.b32.xlu2 %v1526_v13, %s3024_s4  ;;  %v1439_v3 = vmul.f32 %v1438_v53, %v3720_v26 }
 0x41b   : > { %1555 = vrot.lane.b32.xlu0 %v1547_v8, %s3025_s9  ;;  %1627 = vrot.lane.b32.xlu1 %v1621_v47, %s3022_s26 }
 0x41c   : > { %1553 = vrot.lane.b32.xlu2 %v1546_v4, %s3025_s9 }
 0x423   : > { %1587 = vrot.lane.b32.xlu0 %v1579_v55, %s3020_s21  ;;  %1649 = vrot.lane.b32.xlu1 %v1643_v63, %s3023_s29  ;;  %v362_v63 = vsel %vm361_vm2, %v3273_v20, %v3287_v30  ;;  %v1440_v20 = vmul.f32 %v1438_v53, %v3731_v24 }
 0x424   : > { %1585 = vrot.lane.b32.xlu2 %v1578_v33, %s3020_s21 }
 0x42b   : > { %1609 = vrot.lane.b32.xlu0 %v1601_v31, %s3021_s24  ;;  %1671 = vrot.lane.b32.xlu1 %v1665_v11, %s3024_s4 }
 0x42c   : > { %1607 = vrot.lane.b32.xlu2 %v1600_v54, %s3021_s24  ;;  %v366_v54 = vadd.f32 %v362_v63, %v343_v46 }
 0x433   : > { %1631 = vrot.lane.b32.xlu0 %v1623_v38, %s3022_s26  ;;  %1693 = vrot.lane.b32.xlu1 %v1687_v60, %s3025_s9  ;;  %v383_v38 = vsel %vm382_vm3, %v3265_v14, %v3285_v29  ;;  %v404_v60 = vsel %vm403_vm4, %v3275_v21, %v3297_v36 }
 0x434   : > { %1629 = vrot.lane.b32.xlu2 %v1622_v5, %s3022_s26  ;;  %v387_v5 = vadd.f32 %v383_v38, %v366_v54  ;;  %v943_v54 = vsel %vm942_vm13, %v3619_v7, %v3629_v32 }
 0x436   : > { %v408_v14 = vadd.f32 %v404_v60, %v387_v5  ;;  %v1259_v60 = vsel %vm1258_vm15, %v3689_v12, %v3693_v27 }
 0x438   : > { %v429_v53 = vadd.f32 %v425_v19, %v408_v14  ;;  %v1417_v19 = vsel %vm1416_vm0, %v3717_v52, %v3726_v48 }
 0x43b   : > { %1653 = vrot.lane.b32.xlu0 %v1645_v6, %s3023_s29 }
 0x43c   : > { %1651 = vrot.lane.b32.xlu2 %v1644_v34, %s3023_s29 }
 0x443   : > { %1675 = vrot.lane.b32.xlu0 %v1667_v18, %s3024_s4  ;;  %v3827_v18 = vand.u32 127, %v259_v45  ;;  %v1101_v45 = vsel %vm4395_vm14, %v3625_v58, %v3633_v16 }
 0x444   : > { %1673 = vrot.lane.b32.xlu2 %v1666_v15, %s3024_s4 }
 0x44b   : > { %1697 = vrot.lane.b32.xlu0 %v1689_v23, %s3025_s9 }
 0x44c   : > { %1695 = vrot.lane.b32.xlu2 %v1688_v39, %s3025_s9 }
 0x44d   : > { %v1452_v40 = vpop.permute.xlu1 %1451 }
 0x44e   : > { %v1454_v1 = vpop.permute.xlu2 %1453 }
 0x44f   : > { %v1457_v2 = vsel %vm361_vm2, %v1452_v40, %v1454_v1  ;;  %v446_v40 = vsel %vm445_vm6, %v3295_v35, %v3321_v50 }
 0x450   : > { %v1461_v59 = vadd.f32 %v1457_v2, %v1439_v3  ;;  %v450_v3 = vadd.f32 %v446_v40, %v429_v53  ;;  %v344_v40 = vmul.f32 %v342_v49, %v3180_v22 }
 0x455   : > { %v1472_v13 = vpop.permute.xlu1 %1471 }
 0x456   : > { %v1474_v8 = vpop.permute.xlu2 %1473 }
 0x457   : > { %v1477_v47 = vsel %vm382_vm3, %v1472_v13, %v1474_v8  ;;  %v627_v13 = vsel %vm626_vm8, %v3611_v25, %v3617_v10 }
 0x458   : > { %v1481_v4 = vadd.f32 %v1477_v47, %v1461_v59  ;;  %v471_v59 = vadd.f32 %v467_v28, %v450_v3 }
 0x45d   : > { %v1492_v55 = vpop.permute.xlu1 %1491 }
 0x45e   : > { %v1494_v33 = vpop.permute.xlu2 %1493 }
 0x45f   : > { %v1497_v31 = vsel %vm403_vm4, %v1492_v55, %v1494_v33 }
 0x460   : > { %v1501_v11 = vadd.f32 %v1497_v31, %v1481_v4  ;;  %v785_v4 = vsel %vm4394_vm9, %v3613_v0, %v3623_v17 }
 0x465   : > { %v1456_v6 = vpop.permute.xlu0 %1455  ;;  %v1512_v34 = vpop.permute.xlu1 %1511 }
 0x466   : > { %v1458_v15 = vsel %vm361_vm2, %v1454_v1, %v1456_v6  ;;  %v3830_v23 = vpop.permute.xlu2 %1513  ;;  %v3841_v1 = vand.u32 15, %v3827_v18 }
 0x467   : > { %v1462_v39 = vadd.f32 %v1458_v15, %v1440_v20  ;;  %v1517_v21 = vsel %vm424_vm5, %v1512_v34, %v3830_v23 }
 0x468   : > { %v1521_v2 = vadd.f32 %v1517_v21, %v1501_v11  ;;  %vm4390_vm10 = vcmp.ge.s32.totalorder %v3841_v1, 2  ;;  %vm286_vm11 = vcmp.ge.s32.totalorder %v3841_v1, 3  ;;  %vm4389_vm12 = vcmp.ge.s32.totalorder %v3841_v1, 1 }
 0x469   : > { %v631_v46 = vsel %vm4390_vm10, %v627_v13, 0.0  ;;  %v473_v0 = vsel %vm286_vm11, %v471_v59, 0.0  ;;  %vm4393_vm1 = vcmp.lt.s32.totalorder %v3841_v1, 15  ;;  %vm4391_vm10 = vcmp.lt.s32.totalorder %v3841_v1, 13 }
 0x46a   : > { %v633_v11 = vadd.f32 %v631_v46, %v473_v0  ;;  %v1105_v58 = vsel %vm4393_vm1, %v1101_v45, 0.0  ;;  %v1421_v52 = vsel %vm4391_vm10, %v1417_v19, 0.0  ;;  %v4409_v45 = vld [vmem:[#allocation18_spill] sm:$0xff] }
 0x46d   : > { %v1476_v35 = vpop.permute.xlu0 %1475  ;;  %v1532_v47 = vpop.permute.xlu1 %1531 }
 0x46e   : > { %v1478_v42 = vsel %vm382_vm3, %v1474_v8, %v1476_v35  ;;  %v3851_v55 = vpop.permute.xlu2 %1533  ;;  %v789_v8 = vsel %vm4389_vm12, %v785_v4, 0.0  ;;  %vm4392_vm12 = vcmp.lt.s32.totalorder %v3841_v1, 14 }
 0x46f   : > { %v1482_v63 = vadd.f32 %v1478_v42, %v1462_v39  ;;  %v1537_v25 = vsel %vm445_vm6, %v1532_v47, %v3851_v55  ;;  %v791_v38 = vadd.f32 %v789_v8, %v633_v11  ;;  %v1263_v39 = vsel %vm4392_vm12, %v1259_v60, 0.0  ;;  %v4411_v60 = vld [vmem:[#allocation19_spill] sm:$0xff] }
 0x470   : > { %v1541_v31 = vadd.f32 %v1537_v25, %v1521_v2  ;;  %v384_v2 = vsel %vm382_vm3, %v3285_v29, %v3299_v37  ;;  %v426_v29 = vsel %vm424_vm5, %v3309_v43, %v3323_v51  ;;  %v261_v37 = vadd.s32 128, %v3827_v18  ;;  %v4408_v25 = vld [vmem:[#allocation16_spill] sm:$0xff] }
 0x471   : > { %v949_v34 = vadd.f32 %v943_v54, %v791_v38  ;;  %v628_v43 = vsel %vm626_vm8, %v3617_v10, %v3615_v62  ;;  %v1102_v38 = vsel %vm4395_vm14, %v3633_v16, %v4409_v45 }
 0x472   : > { %v3916_v46 = vand.u32 15, %v261_v37 }
 0x473   : > { %v1107_v21 = vadd.f32 %v1105_v58, %v949_v34 }
 0x474   : > { %vm287_vm10 = vcmp.ge.s32.totalorder %v3916_v46, 3  ;;  %vm299_vm12 = vcmp.ge.s32.totalorder %v3916_v46, 1  ;;  %vm313_vm1 = vcmp.lt.s32.totalorder %v3916_v46, 15  ;;  %vm325_vm14 = vcmp.lt.s32.totalorder %v3916_v46, 13 }
 0x475   : > { %v1496_v5 = vpop.permute.xlu0 %1495  ;;  %v1552_v6 = vpop.permute.xlu1 %1551  ;;  %v1265_v53 = vadd.f32 %v1263_v39, %v1107_v21  ;;  %v1106_v16 = vsel %vm313_vm1, %v1102_v38, 0.0 }
 0x476   : > { %v1498_v20 = vsel %vm403_vm4, %v1494_v33, %v1496_v5  ;;  %v1554_v7 = vpop.permute.xlu2 %1553  ;;  %v363_v33 = vsel %vm361_vm2, %v3287_v30, %v3257_v9  ;;  %v405_v9 = vsel %vm403_vm4, %v3297_v36, %v3311_v44  ;;  %v4407_v36 = vld [vmem:[#allocation15_spill] sm:$0xff]  ;;  %v1260_v5 = vsel %vm1258_vm15, %v3693_v27, %v4411_v60 }
 0x477   : > { %v1502_v15 = vadd.f32 %v1498_v20, %v1482_v63  ;;  %v1557_v14 = vsel %vm466_vm7, %v1552_v6, %v1554_v7  ;;  %v367_v28 = vadd.f32 %v363_v33, %v344_v40  ;;  %v1423_v59 = vadd.f32 %v1421_v52, %v1265_v53 }
 0x478   : > { %v1561_v12 = vadd.f32 %v1557_v14, %v1541_v31  ;;  %v447_v44 = vsel %vm445_vm6, %v3321_v50, %v4407_v36 }
 0x479   : > { %v388_v22 = vadd.f32 %v384_v2, %v367_v28  ;;  %v1568_v2 = vstv %s2741_s20  ;;  %s2752_s20 = sld [smem:[#allocation2 + $0x4f]] }
 0x47a   : > { %v1563_v3 = vsel %vm286_vm11, %v1561_v12, 0.0  ;;  %vm293_vm11 = vcmp.ge.s32.totalorder %v3916_v46, 2  ;;  %v1569_v28 = vmul.f32 %v1568_v2, %v3720_v26 }
 0x47b   : > { %v3908_v4 = vadd.f32 %v1563_v3, %v1423_v59  ;;  %v409_v42 = vadd.f32 %v405_v9, %v388_v22  ;;  %v632_v62 = vsel %vm293_vm11, %v628_v43, 0.0 }
 0x47d   : > { %v1516_v30 = vpop.permute.xlu0 %1515  ;;  %v1584_v13 = vpop.permute.xlu1 %1583  ;;  %v430_v63 = vadd.f32 %v426_v29, %v409_v42 }
 0x47e   : > { %v1518_v49 = vsel %vm424_vm5, %v3830_v23, %v1516_v30  ;;  %v3902_v35 = vpop.permute.xlu2 %1585  ;;  %v468_v23 = vsel %vm466_vm7, %v3333_v57, %v4408_v25  ;;  %v786_v57 = vsel %vm4394_vm9, %v3623_v17, %v3621_v61  ;;  %v4410_v61 = vld [vmem:[#allocation17_spill] sm:$0xff]  ;;  %vm319_vm9 = vcmp.lt.s32.totalorder %v3916_v46, 14 }
 0x47f   : > { %v1522_v47 = vadd.f32 %v1518_v49, %v1502_v15  ;;  %v451_v31 = vadd.f32 %v447_v44, %v430_v63  ;;  %v944_v17 = vsel %vm942_vm13, %v3629_v32, %v4410_v61  ;;  %v1418_v15 = vsel %vm1416_vm0, %v3726_v48, %v3798_v56 }
 0x480   : > { %v1264_v27 = vsel %vm319_vm9, %v1260_v5, 0.0  ;;  %v1589_v53 = vsel %vm361_vm2, %v1584_v13, %v3902_v35 }
 0x481   : > { %v472_v0 = vadd.f32 %v468_v23, %v451_v31  ;;  %v1594_v59 = vadd.f32 %v1589_v53, %v1569_v28 }
 0x483   : > { %v474_v10 = vsel %vm287_vm10, %v472_v0, 0.0  ;;  %v1571_v0 = vmul.f32 %v1568_v2, %v3734_v41 }
 0x484   : > { %v634_v54 = vadd.f32 %v632_v62, %v474_v10 }
 0x485   : > { %v1536_v51 = vpop.permute.xlu0 %1535  ;;  %v1606_v18 = vpop.permute.xlu1 %1605 }
 0x486   : > { %v1538_v50 = vsel %vm445_vm6, %v3851_v55, %v1536_v51  ;;  %v3924_v8 = vpop.permute.xlu2 %1607  ;;  %v790_v55 = vsel %vm299_vm12, %v786_v57, 0.0  ;;  %v1733_v51 = vstv %s2749_s18  ;;  %v1570_v57 = vmul.f32 %v1568_v2, %v3731_v24  ;;  %s2753_s18 = sld [smem:[#allocation2 + $0x56]] }
 0x487   : > { %v1542_v11 = vadd.f32 %v1538_v50, %v1522_v47  ;;  %v792_v34 = vadd.f32 %v790_v55, %v634_v54  ;;  %v1611_v3 = vsel %vm382_vm3, %v1606_v18, %v3924_v8  ;;  %v1734_v18 = vmul.f32 %v1733_v51, %v3720_v26 }
 0x488   : > { %v1616_v29 = vadd.f32 %v1611_v3, %v1594_v59  ;;  %v1755_v54 = vstv %s2750_s28  ;;  %s2754_s28 = sld [smem:[#allocation2 + $0x5d]] }
 0x489   : > { %v950_v14 = vadd.f32 %v944_v17, %v792_v34 }
 0x48b   : > { %v1108_v12 = vadd.f32 %v1106_v16, %v950_v14 }
 0x48d   : > { %v1556_v6 = vpop.permute.xlu0 %1555  ;;  %v1628_v20 = vpop.permute.xlu1 %1627  ;;  %v1266_v39 = vadd.f32 %v1264_v27, %v1108_v12  ;;  %v1799_v12 = vstv %s2752_s20  ;;  %s2757_s20 = sld [smem:[#allocation2 + $0x42]] }
 0x48e   : > { %v1558_v58 = vsel %vm466_vm7, %v1554_v7, %v1556_v6  ;;  %v1630_v19 = vpop.permute.xlu2 %1629  ;;  %v1422_v7 = vsel %vm325_vm14, %v1418_v15, 0.0  ;;  %v1777_v15 = vstv %s2751_s17  ;;  %v1843_v2 = vstv %s2754_s28  ;;  %s2756_s17 = sld [smem:[#allocation2 + $0x3b]] }
 0x48f   : > { %v1562_v32 = vadd.f32 %v1558_v58, %v1542_v11  ;;  %v1424_v52 = vadd.f32 %v1422_v7, %v1266_v39  ;;  %v1633_v49 = vsel %vm403_vm4, %v1628_v20, %v1630_v19  ;;  %v1778_v27 = vmul.f32 %v1777_v15, %v3720_v26  ;;  %s2759_s28 = sld [smem:[#allocation2 + $0x50]] }
 0x490   : > { %v1638_v47 = vadd.f32 %v1633_v49, %v1616_v29  ;;  %v1736_v7 = vmul.f32 %v1733_v51, %v3734_v41  ;;  %v1735_v39 = vmul.f32 %v1733_v51, %v3731_v24  ;;  %v1780_v53 = vmul.f32 %v1777_v15, %v3734_v41 }
 0x491   : > { %v1564_v33 = vsel %vm287_vm10, %v1562_v32, 0.0  ;;  %v1779_v28 = vmul.f32 %v1777_v15, %v3731_v24  ;;  %v1844_v3 = vmul.f32 %v1843_v2, %v3720_v26  ;;  %v1846_v49 = vmul.f32 %v1843_v2, %v3734_v41 }
 0x492   : > { %v3961_v56 = vadd.f32 %v1564_v33, %v1424_v52  ;;  %v1800_v33 = vmul.f32 %v1799_v12, %v3720_v26  ;;  %v1757_v52 = vmul.f32 %v1755_v54, %v3731_v24  ;;  %v1845_v29 = vmul.f32 %v1843_v2, %v3731_v24 }
 0x493   : > { %vm4412_vm10 = vcmp.ge.s32.totalorder %v3841_v1, 2 }
 0x495   : > { %v1588_v21 = vpop.permute.xlu0 %1587  ;;  %v1650_v40 = vpop.permute.xlu1 %1649 }
 0x496   : > { %v1652_v48 = vpop.permute.xlu2 %1651  ;;  %v1590_v50 = vsel %vm361_vm2, %v3902_v35, %v1588_v21  ;;  %v1596_v11 = vadd.f32 %v1588_v21, %v1571_v0  ;;  %v1756_v35 = vmul.f32 %v1755_v54, %v3720_v26  ;;  %v1821_v21 = vstv %s2753_s18  ;;  %s2758_s18 = sld [smem:[#allocation2 + $0x49]] }
 0x497   : > { %v1655_v37 = vsel %vm424_vm5, %v1650_v40, %v1652_v48  ;;  %v1595_v10 = vadd.f32 %v1590_v50, %v1570_v57  ;;  %v1758_v40 = vmul.f32 %v1755_v54, %v3734_v41  ;;  %v1824_v59 = vmul.f32 %v1821_v21, %v3734_v41 }
 0x498   : > { %v1660_v36 = vadd.f32 %v1655_v37, %v1638_v47 }
 0x49d   : > { %v1610_v9 = vpop.permute.xlu0 %1609  ;;  %v1672_v30 = vpop.permute.xlu1 %1671 }
 0x49e   : > { %v1674_v22 = vpop.permute.xlu2 %1673  ;;  %v1612_v62 = vsel %vm382_vm3, %v3924_v8, %v1610_v9  ;;  %v1618_v45 = vadd.f32 %v1610_v9, %v1596_v11  ;;  %v1802_v9 = vmul.f32 %v1799_v12, %v3734_v41 }
 0x49f   : > { %v1677_v42 = vsel %vm445_vm6, %v1672_v30, %v1674_v22  ;;  %v1617_v61 = vadd.f32 %v1612_v62, %v1595_v10  ;;  %v1801_v30 = vmul.f32 %v1799_v12, %v3731_v24 }
 0x4a0   : > { %v1682_v63 = vadd.f32 %v1677_v42, %v1660_v36 }
 0x4a5   : > { %v1632_v44 = vpop.permute.xlu0 %1631  ;;  %v1694_v13 = vpop.permute.xlu1 %1693 }
 0x4a6   : > { %v1696_v25 = vpop.permute.xlu2 %1695  ;;  %v1634_v38 = vsel %vm403_vm4, %v1630_v19, %v1632_v44  ;;  %v1640_v17 = vadd.f32 %v1632_v44, %v1618_v45 }
 0x4a7   : > { %v1699_v23 = vsel %vm466_vm7, %v1694_v13, %v1696_v25  ;;  %v1639_v5 = vadd.f32 %v1634_v38, %v1617_v61 }
 0x4a8   : > { %v1704_v31 = vadd.f32 %v1699_v23, %v1682_v63 }
 0x4aa   : > { %1710 = vrot.lane.b32.xlu1 %v1704_v31, %s3026_s30 }
 0x4ad   : > { %v1654_v43 = vpop.permute.xlu0 %1653 }
 0x4ae   : > { %v1656_v60 = vsel %vm424_vm5, %v1652_v48, %v1654_v43  ;;  %v1662_v6 = vadd.f32 %v1654_v43, %v1640_v17  ;;  %v1822_v48 = vmul.f32 %v1821_v21, %v3720_v26 }
 0x4af   : > { %v1661_v8 = vadd.f32 %v1656_v60, %v1639_v5 }
 0x4b2   : > { %1740 = vrot.lane.b32.xlu1 %v1734_v18, %s3020_s21 }
 0x4b5   : > { %v1676_v55 = vpop.permute.xlu0 %1675 }
 0x4b6   : > { %v1678_v20 = vsel %vm445_vm6, %v1674_v22, %v1676_v55  ;;  %v1684_v34 = vadd.f32 %v1676_v55, %v1662_v6  ;;  %v1823_v22 = vmul.f32 %v1821_v21, %v3731_v24 }
 0x4b7   : > { %v1683_v58 = vadd.f32 %v1678_v20, %v1661_v8 }
 0x4ba   : > { %1762 = vrot.lane.b32.xlu1 %v1756_v35, %s3021_s24 }
 0x4bd   : > { %v1698_v16 = vpop.permute.xlu0 %1697 }
 0x4be   : > { %v1700_v19 = vsel %vm466_vm7, %v1696_v25, %v1698_v16  ;;  %v1706_v32 = vadd.f32 %v1698_v16, %v1684_v34 }
 0x4bf   : > { %v1705_v14 = vadd.f32 %v1700_v19, %v1683_v58 }
 0x4c0   : > { %1714 = vrot.lane.b32.xlu0 %v1706_v32, %s3026_s30 }
 0x4c1   : > { %1712 = vrot.lane.b32.xlu2 %v1705_v14, %s3026_s30  ;;  %s2748_s30 = sld [smem:[#allocation2 + $0x33]]  ;;  %v1890_v14 = vstv %s2756_s17 }
 0x4c2   : > { %1784 = vrot.lane.b32.xlu1 %v1778_v27, %s3022_s26  ;;  %v1891_v27 = vmul.f32 %v1890_v14, %v3720_v26  ;;  %s2755_s17 = sld [smem:[#allocation2 + $0x34]] }
 0x4c7   : > { %v1725_v62 = vstv %s2748_s30  ;;  %s2760_s30 = sld [smem:[#allocation2 + $0x57]] }
 0x4c8   : > { %1744 = vrot.lane.b32.xlu0 %v1736_v7, %s3020_s21  ;;  %v1726_v55 = vmul.f32 %v1725_v62, %v3720_v26  ;;  %v1728_v12 = vmul.f32 %v1725_v62, %v3734_v41 }
 0x4c9   : > { %1742 = vrot.lane.b32.xlu2 %v1735_v39, %s3020_s21  ;;  %v1727_v39 = vmul.f32 %v1725_v62, %v3731_v24 }
 0x4ca   : > { %1806 = vrot.lane.b32.xlu1 %v1800_v33, %s3023_s29 }
 0x4d0   : > { %1766 = vrot.lane.b32.xlu0 %v1758_v40, %s3021_s24 }
 0x4d1   : > { %1764 = vrot.lane.b32.xlu2 %v1757_v52, %s3021_s24 }
 0x4d2   : > { %1828 = vrot.lane.b32.xlu1 %v1822_v48, %s3024_s4 }
 0x4d8   : > { %1788 = vrot.lane.b32.xlu0 %v1780_v53, %s3022_s26  ;;  %v1912_v53 = vstv %s2757_s20  ;;  %s2763_s20 = sld [smem:[#allocation2 + $0x3c]] }
 0x4d9   : > { %1786 = vrot.lane.b32.xlu2 %v1779_v28, %s3022_s26 }
 0x4da   : > { %1850 = vrot.lane.b32.xlu1 %v1844_v3, %s3025_s9 }
 0x4e0   : > { %1810 = vrot.lane.b32.xlu0 %v1802_v9, %s3023_s29 }
 0x4e1   : > { %1808 = vrot.lane.b32.xlu2 %v1801_v30, %s3023_s29 }
 0x4e8   : > { %1832 = vrot.lane.b32.xlu0 %v1824_v59, %s3024_s4  ;;  %v1913_v59 = vmul.f32 %v1912_v53, %v3720_v26 }
 0x4e9   : > { %1830 = vrot.lane.b32.xlu2 %v1823_v22, %s3024_s4 }
 0x4f0   : > { %1854 = vrot.lane.b32.xlu0 %v1846_v49, %s3025_s9 }
 0x4f1   : > { %1852 = vrot.lane.b32.xlu2 %v1845_v29, %s3025_s9 }
 0x51b   : > { %v1713_v37 = vpop.permute.xlu2 %1712 }
 0x51c   : > { %v1711_v47 = vpop.permute.xlu1 %1710 }
 0x51d   : > { %v1716_v42 = vsel %vm626_vm8, %v1711_v47, %v1713_v37 }
 0x51e   : > { %v1720_v36 = vsel %vm4412_vm10, %v1716_v42, 0.0 }
 0x51f   : > { %v4025_v44 = vadd.f32 %v1720_v36, %v3908_v4 }
 0x523   : > { %v1743_v13 = vpop.permute.xlu2 %1742 }
 0x524   : > { %v1741_v63 = vpop.permute.xlu1 %1740 }
 0x525   : > { %v1746_v10 = vsel %vm361_vm2, %v1741_v63, %v1743_v13  ;;  %v1934_v63 = vstv %s2758_s18  ;;  %s2764_s18 = sld [smem:[#allocation2 + $0x43]] }
 0x526   : > { %v1751_v61 = vadd.f32 %v1746_v10, %v1726_v55  ;;  %v1937_v62 = vmul.f32 %v1934_v63, %v3734_v41  ;;  %v1936_v55 = vmul.f32 %v1934_v63, %v3731_v24 }
 0x52b   : > { %v1765_v25 = vpop.permute.xlu2 %1764 }
 0x52c   : > { %v1763_v23 = vpop.permute.xlu1 %1762 }
 0x52d   : > { %v1768_v45 = vsel %vm382_vm3, %v1763_v23, %v1765_v25  ;;  %v1935_v23 = vmul.f32 %v1934_v63, %v3720_v26 }
 0x52e   : > { %v1773_v35 = vadd.f32 %v1768_v45, %v1751_v61 }
 0x532   : > { %v1715_v31 = vpop.permute.xlu0 %1714 }
 0x533   : > { %v1717_v43 = vsel %vm626_vm8, %v1713_v37, %v1715_v31  ;;  %v1787_v51 = vpop.permute.xlu2 %1786  ;;  %v1893_v31 = vmul.f32 %v1890_v14, %v3734_v41  ;;  %vm4413_vm8 = vcmask 1031168  }
 0x534   : > { %v1721_v18 = vsel %vm293_vm11, %v1717_v43, 0.0  ;;  %v1785_v0 = vpop.permute.xlu1 %1784  ;;  %v1956_v43 = vstv %s2759_s28  ;;  %vm4414_vm11 = vcmp.ge.s32.totalorder %v3841_v1, 1  ;;  %vm4415_vm10 = vmmov %vm4413_vm8  ;;  %s2765_s28 = sld [smem:[#allocation2 + $0x4a]] }
 0x535   : > { %v4031_v50 = vadd.f32 %v1721_v18, %v3961_v56  ;;  %v1790_v60 = vsel %vm403_vm4, %v1785_v0, %v1787_v51  ;;  %v1957_v18 = vmul.f32 %v1956_v43, %v3720_v26  ;;  %v1915_v0 = vmul.f32 %v1912_v53, %v3734_v41 }
 0x536   : > { %v1795_v5 = vadd.f32 %v1790_v60, %v1773_v35  ;;  %v1959_v45 = vmul.f32 %v1956_v43, %v3734_v41 }
 0x53a   : > { %v1745_v57 = vpop.permute.xlu0 %1744 }
 0x53b   : > { %v1809_v11 = vpop.permute.xlu2 %1808  ;;  %v1747_v7 = vsel %vm361_vm2, %v1743_v13, %v1745_v57  ;;  %v1753_v33 = vadd.f32 %v1745_v57, %v1728_v12  ;;  %v1978_v57 = vstv %s2760_s30  ;;  %s2766_s30 = sld [smem:[#allocation2 + $0x51]] }
 0x53c   : > { %v1807_v4 = vpop.permute.xlu1 %1806  ;;  %v1752_v40 = vadd.f32 %v1747_v7, %v1727_v39  ;;  %v1981_v61 = vmul.f32 %v1978_v57, %v3734_v41 }
 0x53d   : > { %v1812_v56 = vsel %vm424_vm5, %v1807_v4, %v1809_v11  ;;  %v1979_v4 = vmul.f32 %v1978_v57, %v3720_v26 }
 0x53e   : > { %v1817_v20 = vadd.f32 %v1812_v56, %v1795_v5 }
 0x542   : > { %v1767_v54 = vpop.permute.xlu0 %1766 }
 0x543   : > { %v1831_v38 = vpop.permute.xlu2 %1830  ;;  %v1769_v21 = vsel %vm382_vm3, %v1765_v25, %v1767_v54  ;;  %v1775_v48 = vadd.f32 %v1767_v54, %v1753_v33 }
 0x544   : > { %v1829_v17 = vpop.permute.xlu1 %1828  ;;  %v1774_v28 = vadd.f32 %v1769_v21, %v1752_v40  ;;  %v1882_v21 = vstv %s2755_s17  ;;  %s2770_s17 = sld [smem:[#allocation2 + $0x3d]] }
 0x545   : > { %v1834_v6 = vsel %vm445_vm6, %v1829_v17, %v1831_v38  ;;  %v1980_v17 = vmul.f32 %v1978_v57, %v3731_v24 }
 0x546   : > { %v1839_v58 = vadd.f32 %v1834_v6, %v1817_v20 }
 0x54a   : > { %v1789_v8 = vpop.permute.xlu0 %1788 }
 0x54b   : > { %v1853_v34 = vpop.permute.xlu2 %1852  ;;  %v1791_v2 = vsel %vm403_vm4, %v1787_v51, %v1789_v8  ;;  %v1797_v3 = vadd.f32 %v1789_v8, %v1775_v48  ;;  %v1892_v51 = vmul.f32 %v1890_v14, %v3731_v24  ;;  %v1883_v48 = vmul.f32 %v1882_v21, %v3720_v26 }
 0x54c   : > { %v1851_v16 = vpop.permute.xlu1 %1850  ;;  %v1796_v30 = vadd.f32 %v1791_v2, %v1774_v28 }
 0x54d   : > { %v1856_v15 = vsel %vm466_vm7, %v1851_v16, %v1853_v34 }
 0x54e   : > { %v1861_v19 = vadd.f32 %v1856_v15, %v1839_v58 }
 0x550   : > { %1867 = vrot.lane.b32.xlu1 %v1861_v19, %s3027_s8 }
 0x552   : > { %v1811_v32 = vpop.permute.xlu0 %1810 }
 0x553   : > { %v1813_v9 = vsel %vm424_vm5, %v1809_v11, %v1811_v32  ;;  %v1819_v22 = vadd.f32 %v1811_v32, %v1797_v3  ;;  %v1914_v11 = vmul.f32 %v1912_v53, %v3731_v24 }
 0x554   : > { %v1818_v29 = vadd.f32 %v1813_v9, %v1796_v30 }
 0x558   : > { %1897 = vrot.lane.b32.xlu1 %v1891_v27, %s3020_s21 }
 0x55a   : > { %v1833_v52 = vpop.permute.xlu0 %1832 }
 0x55b   : > { %v1835_v49 = vsel %vm445_vm6, %v1831_v38, %v1833_v52  ;;  %v1841_v37 = vadd.f32 %v1833_v52, %v1819_v22  ;;  %v1958_v38 = vmul.f32 %v1956_v43, %v3731_v24 }
 0x55c   : > { %v1840_v47 = vadd.f32 %v1835_v49, %v1818_v29 }
 0x560   : > { %1919 = vrot.lane.b32.xlu1 %v1913_v59, %s3021_s24 }
 0x562   : > { %v1855_v42 = vpop.permute.xlu0 %1854 }
 0x563   : > { %v1857_v36 = vsel %vm466_vm7, %v1853_v34, %v1855_v42  ;;  %v1863_v13 = vadd.f32 %v1855_v42, %v1841_v37 }
 0x564   : > { %v1862_v25 = vadd.f32 %v1857_v36, %v1840_v47 }
 0x565   : > { %1871 = vrot.lane.b32.xlu0 %v1863_v13, %s3027_s8 }
 0x566   : > { %1869 = vrot.lane.b32.xlu2 %v1862_v25, %s3027_s8  ;;  %s2761_s8 = sld [smem:[#allocation2 + $0x5e]]  ;;  %v2047_v25 = vstv %s2763_s20 }
 0x567   : > { %v2048_v43 = vmul.f32 %v2047_v25, %v3720_v26  ;;  %s2771_s20 = sld [smem:[#allocation2 + $0x44]] }
 0x568   : > { %1941 = vrot.lane.b32.xlu1 %v1935_v23, %s3022_s26  ;;  %v1885_v23 = vmul.f32 %v1882_v21, %v3734_v41 }
 0x56c   : > { %v2000_v10 = vstv %s2761_s8  ;;  %s2767_s8 = sld [smem:[#allocation2 + $0x58]] }
 0x56d   : > { %1901 = vrot.lane.b32.xlu0 %v1893_v31, %s3020_s21  ;;  %v2001_v54 = vmul.f32 %v2000_v10, %v3720_v26  ;;  %v2003_v60 = vmul.f32 %v2000_v10, %v3734_v41  ;;  %v2002_v35 = vmul.f32 %v2000_v10, %v3731_v24 }
 0x56e   : > { %1899 = vrot.lane.b32.xlu2 %v1892_v51, %s3020_s21  ;;  %v1884_v51 = vmul.f32 %v1882_v21, %v3731_v24 }
 0x570   : > { %1963 = vrot.lane.b32.xlu1 %v1957_v18, %s3023_s29 }
 0x575   : > { %1923 = vrot.lane.b32.xlu0 %v1915_v0, %s3021_s24 }
 0x576   : > { %1921 = vrot.lane.b32.xlu2 %v1914_v11, %s3021_s24 }
 0x578   : > { %1985 = vrot.lane.b32.xlu1 %v1979_v4, %s3024_s4 }
 0x57d   : > { %1945 = vrot.lane.b32.xlu0 %v1937_v62, %s3022_s26 }
 0x57e   : > { %1943 = vrot.lane.b32.xlu2 %v1936_v55, %s3022_s26  ;;  %v2069_v55 = vstv %s2764_s18  ;;  %s2777_s18 = sld [smem:[#allocation2 + $0x3e]] }
 0x580   : > { %2007 = vrot.lane.b32.xlu1 %v2001_v54, %s3025_s9 }
 0x585   : > { %1967 = vrot.lane.b32.xlu0 %v1959_v45, %s3023_s29 }
 0x586   : > { %1965 = vrot.lane.b32.xlu2 %v1958_v38, %s3023_s29 }
 0x58d   : > { %1989 = vrot.lane.b32.xlu0 %v1981_v61, %s3024_s4 }
 0x58e   : > { %1987 = vrot.lane.b32.xlu2 %v1980_v17, %s3024_s4 }
 0x595   : > { %2011 = vrot.lane.b32.xlu0 %v2003_v60, %s3025_s9  ;;  %v2070_v60 = vmul.f32 %v2069_v55, %v3720_v26 }
 0x596   : > { %2009 = vrot.lane.b32.xlu2 %v2002_v35, %s3025_s9 }
 0x5c0   : > { %v1870_v56 = vpop.permute.xlu2 %1869 }
 0x5c2   : > { %v1868_v5 = vpop.permute.xlu1 %1867 }
 0x5c3   : > { %v1873_v6 = vsel %vm4413_vm8, %v1868_v5, %v1870_v56  ;;  %vm4421_vm8 = vcmask 1043456  }
 0x5c4   : > { %v1877_v20 = vsel %vm4414_vm11, %v1873_v6, 0.0 }
 0x5c5   : > { %v4091_v8 = vadd.f32 %v1877_v20, %v4025_v44 }
 0x5c8   : > { %v1900_v34 = vpop.permute.xlu2 %1899 }
 0x5ca   : > { %v1898_v58 = vpop.permute.xlu1 %1897 }
 0x5cb   : > { %v1903_v40 = vsel %vm361_vm2, %v1898_v58, %v1900_v34 }
 0x5cc   : > { %v1908_v28 = vadd.f32 %v1903_v40, %v1883_v48 }
 0x5d0   : > { %v1922_v16 = vpop.permute.xlu2 %1921 }
 0x5d2   : > { %v1920_v15 = vpop.permute.xlu1 %1919 }
 0x5d3   : > { %v1925_v53 = vsel %vm382_vm3, %v1920_v15, %v1922_v16 }
 0x5d7   : > { %v1872_v19 = vpop.permute.xlu0 %1871 }
 0x5d8   : > { %v1874_v32 = vsel %vm4415_vm10, %v1870_v56, %v1872_v19  ;;  %v1944_v14 = vpop.permute.xlu2 %1943  ;;  %v2050_v19 = vmul.f32 %v2047_v25, %v3734_v41 }
 0x5d9   : > { %v1878_v27 = vsel %vm299_vm12, %v1874_v32, 0.0  ;;  %v2049_v32 = vmul.f32 %v2047_v25, %v3731_v24 }
 0x5da   : > { %v4097_v12 = vadd.f32 %v1878_v27, %v4031_v50  ;;  %v1942_v7 = vpop.permute.xlu1 %1941  ;;  %v1930_v50 = vadd.f32 %v1925_v53, %v1908_v28  ;;  %v2204_v28 = vstv %s2770_s17  ;;  %s2774_s17 = sld [smem:[#allocation2 + $0x59]] }
 0x5db   : > { %v1947_v9 = vsel %vm403_vm4, %v1942_v7, %v1944_v14  ;;  %v2072_v7 = vmul.f32 %v2069_v55, %v3734_v41 }
 0x5dc   : > { %v1952_v59 = vadd.f32 %v1947_v9, %v1930_v50 }
 0x5df   : > { %v1902_v39 = vpop.permute.xlu0 %1901 }
 0x5e0   : > { %v1966_v33 = vpop.permute.xlu2 %1965  ;;  %v1904_v31 = vsel %vm361_vm2, %v1900_v34, %v1902_v39  ;;  %v1910_v18 = vadd.f32 %v1902_v39, %v1885_v23  ;;  %v2071_v39 = vmul.f32 %v2069_v55, %v3731_v24 }
 0x5e1   : > { %v1909_v57 = vadd.f32 %v1904_v31, %v1884_v51 }
 0x5e2   : > { %v1964_v44 = vpop.permute.xlu1 %1963 }
 0x5e3   : > { %v1969_v30 = vsel %vm424_vm5, %v1964_v44, %v1966_v33 }
 0x5e4   : > { %v1974_v29 = vadd.f32 %v1969_v30, %v1952_v59  ;;  %v2226_v30 = vstv %s2771_s20  ;;  %s2780_s20 = sld [smem:[#allocation2 + $0x53]] }
 0x5e5   : > { %v2228_v59 = vmul.f32 %v2226_v30, %v3731_v24  ;;  %v2229_v25 = vmul.f32 %v2226_v30, %v3734_v41  ;;  %v2227_v51 = vmul.f32 %v2226_v30, %v3720_v26 }
 0x5e7   : > { %v1924_v52 = vpop.permute.xlu0 %1923 }
 0x5e8   : > { %v1988_v2 = vpop.permute.xlu2 %1987  ;;  %v1926_v0 = vsel %vm382_vm3, %v1922_v16, %v1924_v52  ;;  %v1932_v4 = vadd.f32 %v1924_v52, %v1910_v18  ;;  %v2091_v16 = vstv %s2765_s28  ;;  %s2772_s28 = sld [smem:[#allocation2 + $0x4b]] }
 0x5e9   : > { %v1931_v10 = vadd.f32 %v1926_v0, %v1909_v57  ;;  %v2092_v15 = vmul.f32 %v2091_v16, %v3720_v26  ;;  %v2094_v21 = vmul.f32 %v2091_v16, %v3734_v41  ;;  %v2093_v40 = vmul.f32 %v2091_v16, %v3731_v24 }
 0x5ea   : > { %v1986_v3 = vpop.permute.xlu1 %1985 }
 0x5eb   : > { %v1991_v22 = vsel %vm445_vm6, %v1986_v3, %v1988_v2  ;;  %v2206_v3 = vmul.f32 %v2204_v28, %v3731_v24 }
 0x5ec   : > { %v1996_v47 = vadd.f32 %v1991_v22, %v1974_v29  ;;  %v2361_v29 = vstv %s2777_s18  ;;  %s2781_s18 = sld [smem:[#allocation2 + $0x5a]] }
 0x5ef   : > { %v1946_v49 = vpop.permute.xlu0 %1945 }
 0x5f0   : > { %v2010_v37 = vpop.permute.xlu2 %2009  ;;  %v1948_v62 = vsel %vm403_vm4, %v1944_v14, %v1946_v49  ;;  %v1954_v54 = vadd.f32 %v1946_v49, %v1932_v4  ;;  %v2113_v14 = vstv %s2766_s30  ;;  %s2778_s30 = sld [smem:[#allocation2 + $0x45]] }
 0x5f1   : > { %v1953_v38 = vadd.f32 %v1948_v62, %v1931_v10  ;;  %v2114_v27 = vmul.f32 %v2113_v14, %v3720_v26  ;;  %v2115_v53 = vmul.f32 %v2113_v14, %v3731_v24 }
 0x5f2   : > { %v2008_v42 = vpop.permute.xlu1 %2007 }
 0x5f3   : > { %v2013_v36 = vsel %vm466_vm7, %v2008_v42, %v2010_v37  ;;  %v2207_v42 = vmul.f32 %v2204_v28, %v3734_v41 }
 0x5f4   : > { %v2018_v13 = vadd.f32 %v2013_v36, %v1996_v47  ;;  %v2205_v47 = vmul.f32 %v2204_v28, %v3720_v26  ;;  %v2248_v36 = vstv %s2772_s28  ;;  %s2769_s28 = sld [smem:[#allocation2 + $0x36]] }
 0x5f5   : > { %v2249_v55 = vmul.f32 %v2248_v36, %v3720_v26 }
 0x5f6   : > { %2024 = vrot.lane.b32.xlu1 %v2018_v13, %s3028_s11  ;;  %v2251_v13 = vmul.f32 %v2248_v36, %v3734_v41  ;;  %v2383_v23 = vstv %s2778_s30 }
 0x5f7   : > { %v1968_v63 = vpop.permute.xlu0 %1967  ;;  %v2386_v31 = vmul.f32 %v2383_v23, %v3734_v41  ;;  %v2385_v57 = vmul.f32 %v2383_v23, %v3731_v24 }
 0x5f8   : > { %v1970_v45 = vsel %vm424_vm5, %v1966_v33, %v1968_v63  ;;  %v1976_v61 = vadd.f32 %v1968_v63, %v1954_v54  ;;  %v2135_v33 = vstv %s2767_s8  ;;  %v2363_v63 = vmul.f32 %v2361_v29, %v3731_v24  ;;  %s2773_s8 = sld [smem:[#allocation2 + $0x52]] }
 0x5f9   : > { %v1975_v35 = vadd.f32 %v1970_v45, %v1953_v38  ;;  %v2136_v44 = vmul.f32 %v2135_v33, %v3720_v26  ;;  %v2138_v9 = vmul.f32 %v2135_v33, %v3734_v41  ;;  %v2137_v50 = vmul.f32 %v2135_v33, %v3731_v24 }
 0x5fa   : > { %v2292_v54 = vstv %s2774_s17  ;;  %s2565_s17 = scalar_lea.sflag [#allocation4], %s3156_s7 }
 0x5fb   : > { %v2295_v45 = vmul.f32 %v2292_v54, %v3734_v41 }
 0x5fe   : > { %2054 = vrot.lane.b32.xlu1 %v2048_v43, %s3020_s21  ;;  %v2250_v43 = vmul.f32 %v2248_v36, %v3731_v24  ;;  %v2270_v18 = vstv %s2773_s8  ;;  %s215_s8 = scalar_lea.vmem [#allocation9], %s2684_s23  ;;  %s2961_s23 = scalar_lea.hbm %s4386_s3, 16 }
 0x5ff   : > { %v1990_v11 = vpop.permute.xlu0 %1989  ;;  %v2273_v0 = vmul.f32 %v2270_v18, %v3734_v41  ;;  %v2272_v10 = vmul.f32 %v2270_v18, %v3731_v24  ;;  %v2271_v16 = vmul.f32 %v2270_v18, %v3720_v26 }
 0x600   : > { %v1992_v17 = vsel %vm445_vm6, %v1988_v2, %v1990_v11  ;;  %v1998_v56 = vadd.f32 %v1990_v11, %v1976_v61  ;;  %v2116_v2 = vmul.f32 %v2113_v14, %v3734_v41  ;;  %v2362_v11 = vmul.f32 %v2361_v29, %v3720_v26 }
 0x601   : > { %v1997_v5 = vadd.f32 %v1992_v17, %v1975_v35  ;;  %v2384_v35 = vmul.f32 %v2383_v23, %v3720_v26 }
 0x606   : > { %2076 = vrot.lane.b32.xlu1 %v2070_v60, %s3021_s24 }
 0x607   : > { %v2012_v6 = vpop.permute.xlu0 %2011 }
 0x608   : > { %v2014_v20 = vsel %vm466_vm7, %v2010_v37, %v2012_v6  ;;  %v2020_v34 = vadd.f32 %v2012_v6, %v1998_v56  ;;  %v2364_v37 = vmul.f32 %v2361_v29, %v3734_v41 }
 0x609   : > { %v2019_v58 = vadd.f32 %v2014_v20, %v1997_v5  ;;  %v2427_v5 = vstv %s2780_s20 }
 0x60a   : > { %2028 = vrot.lane.b32.xlu0 %v2020_v34, %s3028_s11  ;;  %v2430_v6 = vmul.f32 %v2427_v5, %v3734_v41  ;;  %v2429_v14 = vmul.f32 %v2427_v5, %v3731_v24  ;;  %v2428_v30 = vmul.f32 %v2427_v5, %v3720_v26 }
 0x60b   : > { %2026 = vrot.lane.b32.xlu2 %v2019_v58, %s3028_s11  ;;  %s2768_s11 = sld [smem:[#allocation2 + $0x5f]]  ;;  %v2294_v58 = vmul.f32 %v2292_v54, %v3731_v24 }
 0x60e   : > { %2098 = vrot.lane.b32.xlu1 %v2092_v15, %s3022_s26 }
 0x611   : > { %v2157_v52 = vstv %s2768_s11  ;;  %s2779_s11 = sld [smem:[#allocation2 + $0x4c]] }
 0x612   : > { %2058 = vrot.lane.b32.xlu0 %v2050_v19, %s3020_s21  ;;  %v2158_v48 = vmul.f32 %v2157_v52, %v3720_v26  ;;  %v2160_v22 = vmul.f32 %v2157_v52, %v3734_v41  ;;  %v2159_v49 = vmul.f32 %v2157_v52, %v3731_v24 }
 0x613   : > { %2056 = vrot.lane.b32.xlu2 %v2049_v32, %s3020_s21 }
 0x616   : > { %2120 = vrot.lane.b32.xlu1 %v2114_v27, %s3023_s29 }
 0x617   : > { %v2405_v4 = vstv %s2779_s11  ;;  %s2578_s11 = sshll.u32 %s215_s8, 4  ;;  %s2579_s11 = int_to_ptr.vmem [resolvable:$true] %s2578_s11 }
 0x618   : > { %v2408_v62 = vmul.f32 %v2405_v4, %v3734_v41  ;;  %v2407_v17 = vmul.f32 %v2405_v4, %v3731_v24  ;;  %v2406_v27 = vmul.f32 %v2405_v4, %v3720_v26 }
 0x61a   : > { %2080 = vrot.lane.b32.xlu0 %v2072_v7, %s3021_s24  ;;  %v2449_v7 = vstv %s2781_s18 }
 0x61b   : > { %2078 = vrot.lane.b32.xlu2 %v2071_v39, %s3021_s24  ;;  %v2452_v33 = vmul.f32 %v2449_v7, %v3734_v41  ;;  %v2450_v29 = vmul.f32 %v2449_v7, %v3720_v26 }
 0x61e   : > { %2142 = vrot.lane.b32.xlu1 %v2136_v44, %s3024_s4 }
 0x622   : > { %2102 = vrot.lane.b32.xlu0 %v2094_v21, %s3022_s26 }
 0x623   : > { %2100 = vrot.lane.b32.xlu2 %v2093_v40, %s3022_s26 }
 0x626   : > { %2164 = vrot.lane.b32.xlu1 %v2158_v48, %s3025_s9 }
 0x62a   : > { %2124 = vrot.lane.b32.xlu0 %v2116_v2, %s3023_s29  ;;  %v2293_v2 = vmul.f32 %v2292_v54, %v3720_v26 }
 0x62b   : > { %2122 = vrot.lane.b32.xlu2 %v2115_v53, %s3023_s29 }
 0x62e   : > { %2213 = vrot.lane.b32.xlu1 %v2206_v3, %s3020_s21 }
 0x632   : > { %2146 = vrot.lane.b32.xlu0 %v2138_v9, %s3024_s4 }
 0x633   : > { %2144 = vrot.lane.b32.xlu2 %v2137_v50, %s3024_s4  ;;  %v2451_v50 = vmul.f32 %v2449_v7, %v3731_v24 }
 0x636   : > { %2235 = vrot.lane.b32.xlu1 %v2228_v59, %s3021_s24 }
 0x63a   : > { %2168 = vrot.lane.b32.xlu0 %v2160_v22, %s3025_s9 }
 0x63b   : > { %2166 = vrot.lane.b32.xlu2 %v2159_v49, %s3025_s9 }
 0x63e   : > { %2372 = vrot.lane.b32.xlu1 %v2364_v37, %s3020_s21 }
 0x642   : > { %2211 = vrot.lane.b32.xlu0 %v2205_v47, %s3020_s21 }
 0x643   : > { %2215 = vrot.lane.b32.xlu2 %v2207_v42, %s3020_s21 }
 0x646   : > { %2259 = vrot.lane.b32.xlu1 %v2251_v13, %s3022_s26 }
 0x64a   : > { %2370 = vrot.lane.b32.xlu0 %v2363_v63, %s3020_s21 }
 0x64b   : > { %2237 = vrot.lane.b32.xlu2 %v2229_v25, %s3021_s24 }
 0x64e   : > { %2394 = vrot.lane.b32.xlu1 %v2386_v31, %s3021_s24 }
 0x652   : > { %2257 = vrot.lane.b32.xlu0 %v2250_v43, %s3022_s26 }
 0x653   : > { %2233 = vrot.lane.b32.xlu2 %v2227_v51, %s3021_s24 }
 0x656   : > { %2281 = vrot.lane.b32.xlu1 %v2273_v0, %s3023_s29 }
 0x65a   : > { %2392 = vrot.lane.b32.xlu0 %v2385_v57, %s3021_s24 }
 0x65b   : > { %2368 = vrot.lane.b32.xlu2 %v2362_v11, %s3020_s21  ;;  %s2775_s21 = sld [smem:[#allocation2 + $0x60]] }
 0x65e   : > { %2416 = vrot.lane.b32.xlu1 %v2408_v62, %s3022_s26  ;;  %v2196_v62 = vstv %s2769_s28 }
 0x65f   : > { %v2199_v54 = vmul.f32 %v2196_v62, %v3734_v41 }
 0x662   : > { %2279 = vrot.lane.b32.xlu0 %v2272_v10, %s3023_s29 }
 0x663   : > { %2255 = vrot.lane.b32.xlu2 %v2249_v55, %s3022_s26 }
 0x665   : > { %v2027_v38 = vpop.permute.xlu2 %2026 }
 0x666   : > { %2303 = vrot.lane.b32.xlu1 %v2295_v45, %s3024_s4 }
 0x668   : > { %v2025_v61 = vpop.permute.xlu1 %2024 }
 0x669   : > { %v2030_v60 = vsel %vm942_vm13, %v2025_v61, %v2027_v38 }
 0x66a   : > { %v4193_v56 = vadd.f32 %v2030_v60, %v4091_v8  ;;  %2414 = vrot.lane.b32.xlu0 %v2407_v17, %s3022_s26  ;;  %v2314_v8 = vstv %s2775_s21 }
 0x66b   : > { %2390 = vrot.lane.b32.xlu2 %v2384_v35, %s3021_s24  ;;  %v2317_v15 = vmul.f32 %v2314_v8, %v3734_v41  ;;  %s2782_s24 = sld [smem:[#allocation2 + $0x61]]  ;;  %v2316_v48 = vmul.f32 %v2314_v8, %v3731_v24  ;;  %v2315_v47 = vmul.f32 %v2314_v8, %v3720_v26  ;;  %v2198_v35 = vmul.f32 %v2196_v62, %v3731_v24 }
 0x66d   : > { %v4198_v20 = vpop.permute.xlu2 %2056 }
 0x66e   : > { %2438 = vrot.lane.b32.xlu1 %v2430_v6, %s3023_s29 }
 0x670   : > { %v2055_v34 = vpop.permute.xlu1 %2054 }
 0x671   : > { %v2471_v53 = vstv %s2782_s24  ;;  %v2060_v42 = vsel %vm361_vm2, %v2055_v34, %v4198_v20 }
 0x672   : > { %2301 = vrot.lane.b32.xlu0 %v2294_v58, %s3024_s4  ;;  %v2473_v3 = vmul.f32 %v2471_v53, %v3731_v24  ;;  %v2472_v18 = vmul.f32 %v2471_v53, %v3720_v26  ;;  %v2474_v57 = vmul.f32 %v2471_v53, %v3734_v41 }
 0x673   : > { %2277 = vrot.lane.b32.xlu2 %v2271_v16, %s3023_s29 }
 0x675   : > { %v4206_v19 = vpop.permute.xlu2 %2078 }
 0x676   : > { %2325 = vrot.lane.b32.xlu1 %v2317_v15, %s3025_s9 }
 0x678   : > { %v2077_v32 = vpop.permute.xlu1 %2076 }
 0x679   : > { %v2082_v63 = vsel %vm382_vm3, %v2077_v32, %v4206_v19 }
 0x67a   : > { %2436 = vrot.lane.b32.xlu0 %v2429_v14, %s3023_s29 }
 0x67b   : > { %2412 = vrot.lane.b32.xlu2 %v2406_v27, %s3022_s26  ;;  %s2762_s26 = sld [smem:[#allocation2 + $0x35]] }
 0x67c   : > { %v2029_v39 = vpop.permute.xlu0 %2028 }
 0x67d   : > { %v2031_v44 = vsel %vm942_vm13, %v2027_v38, %v2029_v39  ;;  %v4215_v21 = vpop.permute.xlu2 %2100 }
 0x67e   : > { %v4218_v40 = vadd.f32 %v2031_v44, %v4097_v12  ;;  %2460 = vrot.lane.b32.xlu1 %v2452_v33, %s3024_s4 }
 0x680   : > { %v2099_v52 = vpop.permute.xlu1 %2098 }
 0x681   : > { %v2039_v37 = vstv %s2762_s26  ;;  %v2104_v31 = vsel %vm403_vm4, %v2099_v52, %v4215_v21 }
 0x682   : > { %2323 = vrot.lane.b32.xlu0 %v2316_v48, %s3025_s9  ;;  %v2040_v36 = vmul.f32 %v2039_v37, %v3720_v26  ;;  %v2042_v6 = vmul.f32 %v2039_v37, %v3734_v41  ;;  %v2041_v16 = vmul.f32 %v2039_v37, %v3731_v24 }
 0x683   : > { %2299 = vrot.lane.b32.xlu2 %v2293_v2, %s3024_s4 }
 0x684   : > { %v2059_v28 = vpop.permute.xlu0 %2058  ;;  %v2065_v23 = vadd.f32 %v2060_v42, %v2040_v36 }
 0x685   : > { %v2123_v9 = vpop.permute.xlu2 %2122  ;;  %v2061_v34 = vsel %vm361_vm2, %v4198_v20, %v2059_v28  ;;  %v2067_v15 = vadd.f32 %v2059_v28, %v2042_v6 }
 0x686   : > { %2480 = vrot.lane.b32.xlu1 %v2473_v3, %s3025_s9  ;;  %v2087_v43 = vadd.f32 %v2082_v63, %v2065_v23  ;;  %v2066_v14 = vadd.f32 %v2061_v34, %v2041_v16 }
 0x688   : > { %v2121_v12 = vpop.permute.xlu1 %2120  ;;  %v2109_v11 = vadd.f32 %v2104_v31, %v2087_v43 }
 0x689   : > { %v2126_v0 = vsel %vm424_vm5, %v2121_v12, %v2123_v9 }
 0x68a   : > { %2458 = vrot.lane.b32.xlu0 %v2451_v50, %s3024_s4  ;;  %v2131_v10 = vadd.f32 %v2126_v0, %v2109_v11 }
 0x68b   : > { %2434 = vrot.lane.b32.xlu2 %v2428_v30, %s3023_s29  ;;  %s2776_s29 = sld [smem:[#allocation2 + $0x37]] }
 0x68c   : > { %v2081_v59 = vpop.permute.xlu0 %2080 }
 0x68d   : > { %v2145_v22 = vpop.permute.xlu2 %2144  ;;  %v2083_v32 = vsel %vm382_vm3, %v4206_v19, %v2081_v59  ;;  %v2089_v7 = vadd.f32 %v2081_v59, %v2067_v15 }
 0x68e   : > { %v2088_v44 = vadd.f32 %v2083_v32, %v2066_v14 }
 0x690   : > { %v2143_v49 = vpop.permute.xlu1 %2142 }
 0x691   : > { %v2148_v4 = vsel %vm445_vm6, %v2143_v49, %v2145_v22  ;;  %v4272_v31 = vstv %s2776_s29 }
 0x692   : > { %2456 = vrot.lane.b32.xlu0 %v2450_v29, %s3024_s4  ;;  %v2153_v61 = vadd.f32 %v2148_v4, %v2131_v10  ;;  %s4321_s4 = sld [smem:[#allocation6]] }
 0x693   : > { %2321 = vrot.lane.b32.xlu2 %v2315_v47, %s3025_s9 }
 0x694   : > { %v2103_v13 = vpop.permute.xlu0 %2102 }
 0x695   : > { %v2167_v25 = vpop.permute.xlu2 %2166  ;;  %v2105_v39 = vsel %vm403_vm4, %v4215_v21, %v2103_v13  ;;  %v2111_v20 = vadd.f32 %v2103_v13, %v2089_v7  ;;  %v2356_v7 = vmul.f32 %v4272_v31, %v3734_v41 }
 0x696   : > { %v2110_v48 = vadd.f32 %v2105_v39, %v2088_v44 }
 0x698   : > { %v2165_v51 = vpop.permute.xlu1 %2164 }
 0x699   : > { %v2170_v45 = vsel %vm466_vm7, %v2165_v51, %v2167_v25  ;;  %v2355_v51 = vmul.f32 %v4272_v31, %v3731_v24 }
 0x69a   : > { %2478 = vrot.lane.b32.xlu0 %v2472_v18, %s3025_s9  ;;  %v2175_v60 = vadd.f32 %v2170_v45, %v2153_v61 }
 0x69b   : > { %2482 = vrot.lane.b32.xlu2 %v2474_v57, %s3025_s9  ;;  %s4326_s9 = sld [smem:[#allocation6 + $0x1]] }
 0x69c   : > { %v2125_v55 = vpop.permute.xlu0 %2124 }
 0x69d   : > { %v2216_v38 = vpop.permute.xlu2 %2215  ;;  %v2127_v52 = vsel %vm424_vm5, %v2123_v9, %v2125_v55  ;;  %v2133_v53 = vadd.f32 %v2125_v55, %v2111_v20 }
 0x69e   : > { %v4250_v17 = vadd.f32 %v2216_v38, %v2199_v54  ;;  %v2132_v12 = vadd.f32 %v2127_v52, %v2110_v48 }
 0x6a0   : > { %v2214_v5 = vpop.permute.xlu1 %2213 }
 0x6a1   : > { %v2218_v58 = vsel %vm361_vm2, %v2214_v5, %v2216_v38 }
 0x6a2   : > { %v2223_v8 = vadd.f32 %v2218_v58, %v2198_v35  ;;  %2181 = vrot.lane.b32.xlu0 %v2175_v60, %s3029_s22 }
 0x6a4   : > { %v2147_v27 = vpop.permute.xlu0 %2146 }
 0x6a5   : > { %v2238_v33 = vpop.permute.xlu2 %2237  ;;  %v2149_v3 = vsel %vm445_vm6, %v2145_v22, %v2147_v27  ;;  %v2155_v50 = vadd.f32 %v2147_v27, %v2133_v53  ;;  %v2197_v22 = vmul.f32 %v2196_v62, %v3720_v26 }
 0x6a6   : > { %v2154_v30 = vadd.f32 %v2149_v3, %v2132_v12  ;;  %v2246_v34 = vadd.f32 %v2238_v33, %v4250_v17 }
 0x6a8   : > { %v2236_v2 = vpop.permute.xlu1 %2235 }
 0x6a9   : > { %v2240_v28 = vsel %vm382_vm3, %v2236_v2, %v2238_v33 }
 0x6aa   : > { %v2245_v19 = vadd.f32 %v2240_v28, %v2223_v8 }
 0x6ac   : > { %v2169_v59 = vpop.permute.xlu0 %2168 }
 0x6ad   : > { %v2171_v49 = vsel %vm466_vm7, %v2167_v25, %v2169_v59  ;;  %v2177_v21 = vadd.f32 %v2169_v59, %v2155_v50  ;;  %v2234_v29 = vpop.permute.xlu2 %2233 }
 0x6ae   : > { %v2176_v37 = vadd.f32 %v2171_v49, %v2154_v30  ;;  %v2239_v63 = vsel %vm382_vm3, %v2234_v29, %v2236_v2 }
 0x6af   : > { %2185 = vrot.lane.b32.xlu2 %v2177_v21, %s3029_s22 }
 0x6b0   : > { %v2373_v9 = vpop.permute.xlu1 %2372  ;;  %2183 = vrot.lane.b32.xlu1 %v2176_v37, %s3029_s22  ;;  %s2792_s22 = sshll.u32 %s3073_s16, 3 }
 0x6b1   : > { %v2381_v39 = vadd.f32 %v2373_v9, %v2356_v7  ;;  %s2576_s30 = scalar_lea.hbm %s4386_s3, %s2792_s22 }
 0x6b2   : > { %s2580_s16 = sshll.u32 %s2576_s30, 4  ;;  %s2581_s16 = int_to_ptr.hbm [resolvable:$true] %s2580_s16 }
 0x6b3   : > { %s2955_s20 = sshra.s32 %s2581_s16, 4  ;;  %s2956_s20 = int_to_ptr.hbm [resolvable:$true] %s2955_s20 }
 0x6b4   : > { %v2212_v47 = vpop.permute.xlu0 %2211  ;;  %s2957_s21 = scalar_lea.hbm %s2956_s20, 8  ;;  %p2962_p9 = scmp.lt.s32.totalorder %s2956_s20, %s4386_s3 }
 0x6b5   : > { %v2217_v42 = vsel %vm361_vm2, %v2212_v47, %v2214_v5  ;;  %v2369_v36 = vpop.permute.xlu2 %2368  ;;  %p2958_p1 = scmp.ne.s32.totalorder %s2956_s20, %s2957_s21  ;;  %p2963_p10 = scmp.lt.s32.totalorder %s2961_s23, %s2957_s21 }
 0x6b6   : > { %v2222_v13 = vadd.f32 %v2217_v42, %v2197_v22 }
 0x6b7   : > { %p2959_p4 = pnand %p2958_p1, %p3121_p5  ;;  %p2964_p2 = por %p2963_p10, %p2962_p9 }
 0x6b8   : > { %v2260_v23 = vpop.permute.xlu1 %2259  ;;  %v2244_v25 = vadd.f32 %v2239_v63, %v2222_v13 }
 0x6b9   : > { %v2268_v58 = vadd.f32 %v2260_v23, %v2246_v34  ;;  %p2960_p8 = pneg %p2959_p4 }
 0x6bb   : > { %p2965_p11 = pnand %p2964_p2, %p2960_p8 }
 0x6bc   : > { %v2371_v43 = vpop.permute.xlu0 %2370 }
 0x6bd   : > { %v4277_v18 = vsel %vm361_vm2, %v2369_v36, %v2371_v43  ;;  %v2375_v0 = vsel %vm361_vm2, %v2371_v43, %v2373_v9  ;;  %v2256_v57 = vpop.permute.xlu2 %2255  ;;  %vm4416_vm2 = vcmask 1014784  }
 0x6be   : > { %v2380_v11 = vadd.f32 %v2375_v0, %v2355_v51 }
 0x6c0   : > { %v2395_v4 = vpop.permute.xlu1 %2394 }
 0x6c1   : > { %v2403_v17 = vadd.f32 %v2395_v4, %v2381_v39 }
 0x6c4   : > { %v2258_v62 = vpop.permute.xlu0 %2257 }
 0x6c5   : > { %v4280_v10 = vpop.permute.xlu2 %2390  ;;  %v2261_v20 = vsel %vm403_vm4, %v2256_v57, %v2258_v62  ;;  %v2262_v52 = vsel %vm403_vm4, %v2258_v62, %v2260_v23 }
 0x6c6   : > { %v2266_v53 = vadd.f32 %v2261_v20, %v2244_v25  ;;  %v2267_v3 = vadd.f32 %v2262_v52, %v2245_v19 }
 0x6c8   : > { %v2282_v55 = vpop.permute.xlu1 %2281 }
 0x6c9   : > { %v2290_v8 = vadd.f32 %v2282_v55, %v2268_v58 }
 0x6cc   : > { %v4282_v54 = vpop.permute.xlu0 %2392 }
 0x6cd   : > { %v2278_v45 = vpop.permute.xlu2 %2277  ;;  %v2397_v47 = vsel %vm382_vm3, %v4282_v54, %v2395_v4 }
 0x6ce   : > { %v2402_v25 = vadd.f32 %v2397_v47, %v2380_v11  ;;  %v2354_v11 = vmul.f32 %v4272_v31, %v3720_v26 }
 0x6d0   : > { %v2417_v38 = vpop.permute.xlu1 %2416 }
 0x6d1   : > { %v2425_v28 = vadd.f32 %v2417_v38, %v2403_v17 }
 0x6d4   : > { %v2280_v61 = vpop.permute.xlu0 %2279 }
 0x6d5   : > { %v4284_v60 = vpop.permute.xlu2 %2412  ;;  %v2283_v33 = vsel %vm424_vm5, %v2278_v45, %v2280_v61  ;;  %v2284_v2 = vsel %vm424_vm5, %v2280_v61, %v2282_v55 }
 0x6d6   : > { %v2288_v30 = vadd.f32 %v2283_v33, %v2266_v53  ;;  %v2289_v59 = vadd.f32 %v2284_v2, %v2267_v3  ;;  %v2510_v2 = vstv %s4321_s4 }
 0x6d8   : > { %v2304_v24 = vpop.permute.xlu1 %2303 }
 0x6d9   : > { %v2312_v32 = vadd.f32 %v2304_v24, %v2290_v8 }
 0x6dc   : > { %v2415_v35 = vpop.permute.xlu0 %2414 }
 0x6dd   : > { %v2300_v5 = vpop.permute.xlu2 %2299  ;;  %v2419_v23 = vsel %vm403_vm4, %v2415_v35, %v2417_v38  ;;  %v2396_v38 = vsel %vm382_vm3, %v4280_v10, %v4282_v54  ;;  %vm4417_vm3 = vmmov %vm4416_vm2 }
 0x6de   : > { %v2424_v51 = vadd.f32 %v2419_v23, %v2402_v25 }
 0x6e0   : > { %v2439_v6 = vpop.permute.xlu1 %2438 }
 0x6e1   : > { %v2447_v49 = vadd.f32 %v2439_v6, %v2425_v28  ;;  %v2514_v28 = vstv %s4326_s9 }
 0x6e4   : > { %v2302_v16 = vpop.permute.xlu0 %2301 }
 0x6e5   : > { %v2435_v15 = vpop.permute.xlu2 %2434  ;;  %v2305_v12 = vsel %vm445_vm6, %v2300_v5, %v2302_v16  ;;  %v2306_v41 = vsel %vm445_vm6, %v2302_v16, %v2304_v24  ;;  %v2379_v24 = vadd.f32 %v4277_v18, %v2354_v11 }
 0x6e6   : > { %v2310_v21 = vadd.f32 %v2305_v12, %v2288_v30  ;;  %v2311_v29 = vadd.f32 %v2306_v41, %v2289_v59 }
 0x6e7   : > { %v2401_v34 = vadd.f32 %v2396_v38, %v2379_v24 }
 0x6e8   : > { %v2326_v14 = vpop.permute.xlu1 %2325 }
 0x6e9   : > { %v2334_v27 = vadd.f32 %v2326_v14, %v2312_v32 }
 0x6eb   : > { %2342 = vrot.lane.b32.xlu2 %v2334_v27, %s3030_s10 }
 0x6ec   : > { %v2437_v44 = vpop.permute.xlu0 %2436 }
 0x6ed   : > { %v2322_v48 = vpop.permute.xlu2 %2321  ;;  %v2441_v43 = vsel %vm424_vm5, %v2437_v44, %v2439_v6  ;;  %v2418_v6 = vsel %vm403_vm4, %v4284_v60, %v2415_v35  ;;  %v2440_v58 = vsel %vm424_vm5, %v2435_v15, %v2437_v44  ;;  %vm4418_vm4 = vcmp.lt.s32.totalorder %v3841_v1, 15 }
 0x6ee   : > { %v2446_v0 = vadd.f32 %v2441_v43, %v2424_v51  ;;  %v2423_v16 = vadd.f32 %v2418_v6, %v2401_v34  ;;  %vm4419_vm5 = vcmp.lt.s32.totalorder %v3841_v1, 14 }
 0x6f0   : > { %v2461_v50 = vpop.permute.xlu1 %2460  ;;  %v2445_v32 = vadd.f32 %v2440_v58, %v2423_v16 }
 0x6f1   : > { %v2469_v37 = vadd.f32 %v2461_v50, %v2447_v49 }
 0x6f4   : > { %v2324_v9 = vpop.permute.xlu0 %2323 }
 0x6f5   : > { %v2327_v22 = vsel %vm466_vm7, %v2322_v48, %v2324_v9  ;;  %v2328_v19 = vsel %vm466_vm7, %v2324_v9, %v2326_v14  ;;  %v2483_v42 = vpop.permute.xlu2 %2482 }
 0x6f6   : > { %v2332_v36 = vadd.f32 %v2327_v22, %v2310_v21  ;;  %v2333_v13 = vadd.f32 %v2328_v19, %v2311_v29  ;;  %v2491_v63 = vadd.f32 %v2483_v42, %v2469_v37 }
 0x6f8   : > { %2338 = vrot.lane.b32.xlu0 %v2332_v36, %s3030_s10  ;;  %2340 = vrot.lane.b32.xlu1 %v2333_v13, %s3030_s10  ;;  %v2481_v57 = vpop.permute.xlu1 %2480 }
 0x6f9   : > { %2499 = vrot.lane.b32.xlu2 %v2491_v63, %s3031_s25  ;;  %v2485_v45 = vsel %vm466_vm7, %v2481_v57, %v2483_v42 }
 0x6fc   : > { %v2459_v4 = vpop.permute.xlu0 %2458 }
 0x6fd   : > { %v2463_v62 = vsel %vm445_vm6, %v2459_v4, %v2461_v50 }
 0x6fe   : > { %v2468_v55 = vadd.f32 %v2463_v62, %v2446_v0 }
 0x700   : > { %v2490_v61 = vadd.f32 %v2485_v45, %v2468_v55 }
 0x702   : > { %2497 = vrot.lane.b32.xlu1 %v2490_v61, %s3031_s25 }
 0x704   : > { %v2457_v5 = vpop.permute.xlu0 %2456 }
 0x705   : > { %v2462_v8 = vsel %vm445_vm6, %v2457_v5, %v2459_v4  ;;  %vm4420_vm6 = vcmp.lt.s32.totalorder %v3841_v1, 13 }
 0x706   : > { %v2467_v26 = vadd.f32 %v2462_v8, %v2445_v32 }
 0x709   : > { %v2186_v10 = vpop.permute.xlu2 %2185 }
 0x70c   : > { %v2479_v31 = vpop.permute.xlu0 %2478 }
 0x70d   : > { %v2484_v14 = vsel %vm466_vm7, %v2479_v31, %v2481_v57 }
 0x70e   : > { %v2489_v27 = vadd.f32 %v2484_v14, %v2467_v26 }
 0x710   : > { %2495 = vrot.lane.b32.xlu0 %v2489_v27, %s3031_s25  ;;  %v4422_v27 = vld [vmem:[#allocation14_spill] sm:$0xff] }
 0x714   : > { %v2182_v39 = vpop.permute.xlu0 %2181 }
 0x722   : > { %v2184_v18 = vpop.permute.xlu1 %2183 }
 0x723   : > { %v2188_v60 = vsel %vm4416_vm2, %v2184_v18, %v2186_v10  ;;  %v2187_v50 = vsel %vm4417_vm3, %v2182_v39, %v2184_v18 }
 0x724   : > { %v2192_v15 = vsel %vm313_vm1, %v2188_v60, 0.0 }
 0x725   : > { %v2194_v20 = vadd.f32 %v2192_v15, %v4218_v40  ;;  %v2191_v40 = vsel %vm4418_vm4, %v2187_v50, 0.0 }
 0x726   : > { %v2193_v46 = vadd.f32 %v2191_v40, %v4193_v56 }
 0x745   : > { %v2343_v54 = vpop.permute.xlu2 %2342 }
 0x753   : > { %v2500_v52 = vpop.permute.xlu2 %2499 }
 0x76a   : > { %v2341_v7 = vpop.permute.xlu1 %2340  ;;  %v2339_v41 = vpop.permute.xlu0 %2338 }
 0x76b   : > { %v2345_v35 = vsel %vm1258_vm15, %v2341_v7, %v2343_v54  ;;  %v2344_v59 = vsel %vm1258_vm15, %v2339_v41, %v2341_v7 }
 0x76c   : > { %v2349_v44 = vsel %vm319_vm9, %v2345_v35, 0.0  ;;  %v2348_v21 = vsel %vm4419_vm5, %v2344_v59, 0.0 }
 0x76d   : > { %v2351_v17 = vadd.f32 %v2349_v44, %v2194_v20  ;;  %v2350_v37 = vadd.f32 %v2348_v21, %v2193_v46 }
 0x774   : > { %v2498_v48 = vpop.permute.xlu1 %2497 }
 0x775   : > { %v2502_v33 = vsel %vm1416_vm0, %v2498_v48, %v2500_v52 }
 0x776   : > { %v2506_v53 = vsel %vm325_vm14, %v2502_v33, 0.0 }
 0x777   : > { %v2508_v3 = vadd.f32 %v2506_v53, %v2351_v17 }
 0x779   : > { %v2512_v12 = vmul.f32 %v2510_v2, %v2508_v3 }
 0x77b   : > { %v2516_v30 = vadd.f32 %v2514_v28, %v2512_v12 }
 0x77d   : > { %v2785_v49 = vmul.f32 -1.442695, %v2516_v30 }
 0x77f   : > { %2873 = vpow2.f32 %v2785_v49 }
 0x782   : > { %v2496_v29 = vpop.permute.xlu0 %2495 }
 0x783   : > { %v2501_v9 = vsel %vm1416_vm0, %v2496_v29, %v2498_v48 }
 0x784   : > { %v2505_v47 = vsel %vm4420_vm6, %v2501_v9, 0.0 }
 0x785   : > { %v2874_v22 = vpop.eup %2873  ;;  %v2507_v19 = vadd.f32 %v2505_v47, %v2350_v37 }
 0x786   : > { %v2524_v42 = vadd.f32 1.0, %v2874_v22 }
 0x787   : > { %v2511_v36 = vmul.f32 %v2510_v2, %v2507_v19 }
 0x788   : > { %2875 = vrcp.f32 %v2524_v42  ;;  %v2551_v1 = vand.u32 2147483648, %v2524_v42  ;;  %vm2545_vm7 = vweird.f32 %v2524_v42  ;;  %v2549_v4 = vand.u32 2147483647, %v2524_v42 }
 0x789   : > { %v2515_v13 = vadd.f32 %v2514_v28, %v2511_v36 }
 0x78a   : > { %v2552_v61 = vor.u32 1.1754944e-38, %v2551_v1  ;;  %vm2550_vm12 = vcmp.eq.f32.partialorder %v2549_v4, 8.507059e+37 }
 0x78b   : > { %v2784_v63 = vmul.f32 -1.442695, %v2515_v13 }
 0x78d   : > { %2877 = vpow2.f32 %v2784_v63 }
 0x78e   : > { %v2876_v23 = vpop.eup %2875 }
 0x78f   : > { %v2541_v25 = vmul.f32 %v2876_v23, %v2524_v42  ;;  %vm2546_vm0 = vweird.f32 %v2876_v23 }
 0x790   : > { %vm2547_vm9 = vmor %vm2545_vm7, %vm2546_vm0 }
 0x791   : > { %v2542_v43 = vsub.f32 1.0, %v2541_v25 }
 0x793   : > { %v2878_v51 = vpop.eup %2877  ;;  %v2543_v0 = vmul.f32 %v2876_v23, %v2542_v43 }
 0x794   : > { %v2523_v56 = vadd.f32 1.0, %v2878_v51 }
 0x795   : > { %v2544_v57 = vadd.f32 %v2876_v23, %v2543_v0 }
 0x796   : > { %2879 = vrcp.f32 %v2523_v56  ;;  %v2536_v38 = vand.u32 2147483648, %v2523_v56  ;;  %v2534_v6 = vand.u32 2147483647, %v2523_v56  ;;  %vm2530_vm14 = vweird.f32 %v2523_v56 }
 0x797   : > { %v2548_v45 = vsel %vm2547_vm9, %v2876_v23, %v2544_v57 }
 0x798   : > { %v2553_v24 = vsel %vm2550_vm12, %v2552_v61, %v2548_v45  ;;  %v2537_v16 = vor.u32 1.1754944e-38, %v2536_v38  ;;  %vm2535_vm1 = vcmp.eq.f32.partialorder %v2534_v6, 8.507059e+37 }
 0x799   : > { %v2556_v58 = vperm.slane %v2553_v24, 0 }
 0x79b   : > { %v2559_v31 = vrot.slane %v2556_v58, 4 }
 0x79c   : > { %v2880_v62 = vpop.eup %2879 }
 0x79d   : > { %v2526_v55 = vmul.f32 %v2880_v62, %v2523_v56  ;;  %vm2531_vm13 = vweird.f32 %v2880_v62 }
 0x79e   : > { %vm2532_vm15 = vmor %vm2530_vm14, %vm2531_vm13 }
 0x79f   : > { %v2527_v11 = vsub.f32 1.0, %v2526_v55 }
 0x7a1   : > { %v2528_v5 = vmul.f32 %v2880_v62, %v2527_v11 }
 0x7a3   : > { %v2529_v34 = vadd.f32 %v2880_v62, %v2528_v5 }
 0x7a5   : > { %v2533_v8 = vsel %vm2532_vm15, %v2880_v62, %v2529_v34 }
 0x7a6   : > { %v2538_v32 = vsel %vm2535_vm1, %v2537_v16, %v2533_v8 }
 0x7a7   : > { %v2555_v26 = vperm.slane %v2538_v32, 0 }
 0x7a9   : > { %v2560_v14 = vsel %vm4421_vm8, %v2555_v26, %v2559_v31 }
 0x7aa   : > { %v2562_v10 = vmul.f32 %v2560_v14, %v4422_v27 }
 0x7ac   : > { %2563 = vst [vmem:[%s215_s8] sm:$0xff] %v2562_v10 }
 0x7ad   : > { %2968 = shalt.err (!%p2965_p11)
}
 0x7ae   : > { %2803 = dma.vmem_to_hbm [thread:$0]  (%p3121_p5), %s2579_s11, 128, %s2581_s16, %s2565_s17  }
 0x7af PF: > { %s2592_s7 = sand.u32 1, %s3003_s12   ;;  %p4423_p12 = scmp.ge.s32.totalorder %s3015_s15, 2 }
 0x7b0   : > { %s2593_s29 = scalar_lea.sflag [#allocation4], %s2592_s7 }
 0x7b1   : > { %p2817_p13 = pnand %p4423_p12, %p3087_p6 }
 0x7b3   : > { %p2818_p0 = pneg %p2817_p13 }
 0x7b5   : > { %2998 = dma.done.wait (%p2818_p0), %s2593_s29, 128  }
 0x7b6   : > { %3000 = vsyncadd (%p2818_p0), %s2593_s29, 4294967168  ;;  %p18_p3 = scmp.ge.s32.totalorder %s3108_s27, 4   ;;  %s4424_s12 = smov %s3007_s13 }
 0x7b7   : > { %s4425_s13 = smov %s3011_s14  ;;  %s4426_s14 = smov %s3117_s5 }
 0x7b8   : > { %s4427_s15 = smov %s3108_s27  ;;  %20 = sbr.rel (!%p18_p3) target bundleno = 7 (0x7), region = 86 }
 0x7bd   :  { %2599 = vsyncpa [#allocation3], 1 }
 0x7be   :  { %2601 = vsyncpa [#allocation3 + $0x1], 1 }
 0x7bf   :  { %2602 = vsyncpa [#allocation4], 1 }
 0x7c0   :  { %2604 = vsyncpa [#allocation4 + $0x1], 1 }
 0x7c1   :  { %2605 = vsyncpa [#allocation5], 1 }
 0x7c2   :  { %2607 = vsyncpa [#allocation5 + $0x1], 1 }
 0x7c3   :  { %2608 = vsyncpa [#allocation7], 1 }

</bundles_post_ra>
